<compile_context>
chip_gen: v5e
topology: v5e:2x2
jax: 0.10.0
libtpu: 0.0.40
codegen_flags: <defaults>
</compile_context>

<pallas_src>
import functools

import jax
import jax.numpy as jnp
import numpy as np
from jax.experimental import pallas as pl
from jax.experimental.pallas import tpu as pltpu

BN_EPS = 1e-5

CK = 1024   # contraction (K) chunk size
CN = 1024   # output-channel (N) chunk size

# (c_in, c_out, has_bn, relu, pool_after, is_output) for every Conv2d(...,1,1)
LAYER_CFG = (
    (1024, 4096, True,  True,  False, False),   # extralayers
    (4096, 4096, True,  True,  False, False),
    (4096, 4096, True,  True,  False, False),
    (4096, 2048, True,  True,  False, False),
    (2048, 1024, False, False, True,  False),   # MaxPool2d((H, W)) fused after this layer
    (1024, 1024, True,  True,  False, False),   # MLP
    (1024, 1024, True,  True,  False, False),
    (1024,  512, False, False, False, True),    # final layer -> kernel output
)
NK_MAX = max(cfg[0] // CK for cfg in LAYER_CFG)   # 4 activation K-chunks max
OUT_N = LAYER_CFG[-1][1]                          # 512


# ----------------------------------------------------------------------------
# The single fused streaming kernel.
# Grid = (num_weight_chunks,).  Each step consumes one (CK, CN) bf16 weight
# chunk.  Scalar-prefetched schedule arrays drive everything else.
# ----------------------------------------------------------------------------
def _finetune_kernel(rd_ref, wr_ref, first_ref, last_ref, relu_ref, pool_ref,
                     isout_ref, x_ref, w_ref, sh_ref, o_ref, act_ref, acc_ref,
                     *, batch, hw, out_n):
    s = pl.program_id(0)

    # Load the external input into activation slot 0 exactly once.
    @pl.when(s == 0)
    def _():
        act_ref[0] = x_ref[...]

    # (M, CK) bf16 activation chunk  @  (CK, CN) bf16 weight chunk  -> f32
    part = jnp.dot(act_ref[rd_ref[s]], w_ref[0],
                   preferred_element_type=jnp.float32)

    is_first = first_ref[s] == 1

    @pl.when(is_first)
    def _():
        acc_ref[...] = part                       # assign: no zero + RMW pass

    @pl.when(jnp.logical_not(is_first))
    def _():
        acc_ref[...] = acc_ref[...] + part

    # Epilogue on the last K-chunk of a (layer, n) group.
    @pl.when(last_ref[s] == 1)
    def _():
        y = acc_ref[...] + sh_ref[0]              # folded conv-bias + BN shift
        y = jnp.where(relu_ref[s] == 1, jnp.maximum(y, 0.0), y)
        wr = wr_ref[s]
        do_pool = pool_ref[s] == 1
        do_out = isout_ref[s] == 1

        # Normal layer output: write all rows to the next ping-pong buffer.
        @pl.when(jnp.logical_not(jnp.logical_or(do_pool, do_out)))
        def _():
            act_ref[wr] = y.astype(jnp.bfloat16)

        # Global max-pool over the spatial positions, fused right here.
        @pl.when(do_pool)
        def _():
            rows = [jnp.max(y[b * hw:(b + 1) * hw, :], axis=0, keepdims=True)
                    for b in range(batch)]
            pooled = jnp.concatenate(rows, axis=0)            # (B, CN) f32
            pad = jnp.zeros((y.shape[0] - batch, y.shape[1]), y.dtype)
            act_ref[wr] = jnp.concatenate([pooled, pad],
                                          axis=0).astype(jnp.bfloat16)

        # Final MLP layer: write the real (B, 512) output (rest is padding).
        @pl.when(do_out)
        def _():
            o_ref[...] = y[:batch, :out_n].astype(jnp.float32)


# ----------------------------------------------------------------------------
# Parameter construction: kaiming-normal(fan_out) like init_weights(), with
# conv bias and eval-mode BN folded into (w_bf16, shift_f32).
# ----------------------------------------------------------------------------
def make_layer_params(key, c_in, c_out, has_bn):
    kw, kb = jax.random.split(key)
    std = np.sqrt(2.0 / c_out)                     # kaiming_normal fan_out, 1x1 conv
    w = jax.random.normal(kw, (c_in, c_out), jnp.float32) * std
    b = jax.random.normal(kb, (c_out,), jnp.float32) * 0.01
    if has_bn:
        gamma = jnp.ones((c_out,), jnp.float32)
        beta = jnp.zeros((c_out,), jnp.float32)
        mean = jnp.zeros((c_out,), jnp.float32)
        var = jnp.ones((c_out,), jnp.float32)
        scale = gamma / jnp.sqrt(var + BN_EPS)
        shift_bn = beta - mean * scale
    else:
        scale = jnp.ones((c_out,), jnp.float32)
        shift_bn = jnp.zeros((c_out,), jnp.float32)
    w_folded = (w * scale[None, :]).astype(jnp.bfloat16)
    shift = (b * scale + shift_bn).astype(jnp.float32)
    return {"w": w_folded, "shift": shift}


def pack_for_kernel(layers):
    """Pre-tile all weights/shifts into contiguous per-step chunks + schedule."""
    w_chunks, sh_chunks = [], []
    rd, wr, first, last, relu_f, pool_f, out_f = ([] for _ in range(7))
    for li, (cfg, p) in enumerate(zip(LAYER_CFG, layers)):
        c_in, c_out, _has_bn, relu, pool, is_out = cfg
        nk = c_in // CK
        n_pad = ((c_out + CN - 1) // CN) * CN
        nn = n_pad // CN
        w = p["w"]
        sh = p["shift"]
        if n_pad != c_out:                         # pad last layer 512 -> 1024
            w = jnp.pad(w, ((0, 0), (0, n_pad - c_out)))
            sh = jnp.pad(sh, (0, n_pad - c_out))
        # chunk order: n outer, k inner (reduction axis last)
        wc = w.reshape(nk, CK, nn, CN).transpose(2, 0, 1, 3).reshape(nn * nk, CK, CN)
        w_chunks.append(wc)
        sh_chunks.append(jnp.repeat(sh.reshape(nn, 1, CN), nk, axis=0))
        cur = li % 2                               # ping-pong buffer holding the input
        for n in range(nn):
            for k in range(nk):
                last_k = (k == nk - 1)
                rd.append(cur * NK_MAX + k)
                wr.append((1 - cur) * NK_MAX + n)
                first.append(1 if k == 0 else 0)
                last.append(1 if last_k else 0)
                relu_f.append(1 if relu else 0)
                pool_f.append(1 if (pool and last_k) else 0)
                out_f.append(1 if (is_out and last_k) else 0)
    sched = {
        "rd_slot": rd, "wr_slot": wr, "is_first": first, "is_last": last,
        "do_relu": relu_f, "do_pool": pool_f, "do_out": out_f,
    }
    sched = {k: jnp.asarray(np.asarray(v, np.int32)) for k, v in sched.items()}
    w_packed = jnp.concatenate(w_chunks, axis=0)       # (S, CK, CN) bf16
    sh_packed = jnp.concatenate(sh_chunks, axis=0)     # (S, 1, CN)  f32
    return w_packed, sh_packed, sched


def build_params(key):
    layers = []
    for (c_in, c_out, has_bn, *_rest) in LAYER_CFG:
        key, sub = jax.random.split(key)
        layers.append(make_layer_params(sub, c_in, c_out, has_bn))
    w_packed, sh_packed, sched = pack_for_kernel(layers)
    return {"layers": layers, "w_packed": w_packed,
            "sh_packed": sh_packed, "sched": sched}


# ----------------------------------------------------------------------------
# Forward pass: one fused pallas_call (matches Finetune.forward, NCHW in/out).
# ----------------------------------------------------------------------------
def finetune_forward(params, x_nchw):
    b, c, h, w = x_nchw.shape
    assert c == LAYER_CFG[0][0]
    hw = h * w
    m = b * hw
    assert m % 8 == 0, "B*H*W must be a multiple of 8 for the sublane tiling"

    x2d = jnp.transpose(x_nchw, (0, 2, 3, 1)).reshape(m, c).astype(jnp.bfloat16)
    w_packed = params["w_packed"]
    sh_packed = params["sh_packed"]
    sched = params["sched"]
    steps = w_packed.shape[0]

    kernel = functools.partial(_finetune_kernel, batch=b, hw=hw, out_n=OUT_N)
    flops = 2 * m * CK * CN * steps
    bytes_accessed = (w_packed.size * 2 + sh_packed.size * 4
                      + x2d.size * 2 + b * OUT_N * 4)

    out = pl.pallas_call(
        kernel,
        out_shape=jax.ShapeDtypeStruct((b, OUT_N), jnp.float32),
        grid_spec=pltpu.PrefetchScalarGridSpec(
            num_scalar_prefetch=7,
            grid=(steps,),
            in_specs=[
                pl.BlockSpec((m, CK), lambda s, *_: (0, 0)),        # x (resident)
                pl.BlockSpec((1, CK, CN), lambda s, *_: (s, 0, 0)),  # weight chunk
                pl.BlockSpec((1, 1, CN), lambda s, *_: (s, 0, 0)),   # shift chunk
            ],
            out_specs=pl.BlockSpec((b, OUT_N), lambda s, *_: (0, 0)),
            scratch_shapes=[
                pltpu.VMEM((2 * NK_MAX, m, CK), jnp.bfloat16),   # activation ping-pong
                pltpu.VMEM((m, CN), jnp.float32),                # f32 accumulator
            ],
        ),
        compiler_params=pltpu.CompilerParams(
            dimension_semantics=("arbitrary",)),
        cost_estimate=pl.CostEstimate(flops=flops, transcendentals=0,
                                      bytes_accessed=bytes_accessed),
    )(sched["rd_slot"], sched["wr_slot"], sched["is_first"], sched["is_last"],
      sched["do_relu"], sched["do_pool"], sched["do_out"],
      x2d, w_packed, sh_packed)

    return out.reshape(b, OUT_N, 1, 1)               # NCHW (B, 512, 1, 1)


# ----------------------------------------------------------------------------
# Pure-JAX reference with the SAME K-chunked f32 accumulation order and the
# same bf16 inter-layer casts as the kernel (this was the previous mismatch).
# ----------------------------------------------------------------------------
def finetune_reference(params, x_nchw):
    b, c, h, w = x_nchw.shape
    x = jnp.transpose(x_nchw, (0, 2, 3, 1)).reshape(b * h * w, c)
    x = x.astype(jnp.bfloat16)
    out = None
    c_out = OUT_N
    for cfg, p in zip(LAYER_CFG, params["layers"]):
        c_in, c_out, _has_bn, relu, pool, is_out = cfg
        acc = None
        for k0 in range(0, c_in, CK):
            part = jnp.dot(x[:, k0:k0 + CK], p["w"][k0:k0 + CK, :],
                           preferred_element_type=jnp.float32)
            acc = part if acc is None else acc + part
        y = acc + p["shift"][None, :]
        if relu:
            y = jnp.maximum(y, 0.0)
        if pool:
            y = jnp.max(y.reshape(b, h * w, c_out), axis=1)
        if is_out:
            out = y
        x = y.astype(jnp.bfloat16)
    return out.reshape(b, c_out, 1, 1)


if __name__ == "__main__":
    key = jax.random.PRNGKey(0)
    kp, kx = jax.random.split(key)

    params = build_params(kp)

    # Small input consistent with the module: batch=2, channels=1024, 4x4 map.
    x = jax.random.normal(kx, (2, 1024, 4, 4), jnp.float32)

    out = jax.jit(finetune_forward)(params, x)
    out = jax.block_until_ready(out)
    assert out.shape == (2, 512, 1, 1), out.shape

    ref = jax.jit(finetune_reference)(params, x)
    ref = jax.block_until_ready(ref)

    np.testing.assert_allclose(np.asarray(out, np.float32),
                               np.asarray(ref, np.float32),
                               rtol=1e-1, atol=1e-1)
    print("KERNEL_OK")
</pallas_src>

<mosaic_0001>
module attributes {stable_mosaic.version = 11 : i64} {
  func.func @_finetune_kernel(%arg0: i32, %arg1: memref<49xi32, #tpu.memory_space<smem>>, %arg2: memref<49xi32, #tpu.memory_space<smem>>, %arg3: memref<49xi32, #tpu.memory_space<smem>>, %arg4: memref<49xi32, #tpu.memory_space<smem>>, %arg5: memref<49xi32, #tpu.memory_space<smem>>, %arg6: memref<49xi32, #tpu.memory_space<smem>>, %arg7: memref<49xi32, #tpu.memory_space<smem>>, %arg8: memref<32x1024xbf16, #tpu.memory_space<vmem>>, %arg9: memref<1x1024x1024xbf16, #tpu.memory_space<vmem>>, %arg10: memref<1x1x1024xf32, #tpu.memory_space<vmem>>, %arg11: memref<2x512xf32, #tpu.memory_space<vmem>>, %arg12: memref<8x32x1024xbf16, #tpu.memory_space<vmem>>, %arg13: memref<32x1024xf32, #tpu.memory_space<vmem>>) attributes {dimension_semantics = [#tpu.dimension_semantics<arbitrary>], iteration_bounds = array<i64: 49>, scalar_prefetch = 7 : i64, scratch_operands = 2 : i64, tpu.core_type = #tpu.core_type<tc>, window_params = [{pipeline_mode = #tpu.pipeline_mode<synchronous>, transform_indices = @transform_0, window_bounds = array<i64: 32, 1024>}, {transform_indices = @transform_1, window_bounds = array<i64: 1, 1024, 1024>}, {transform_indices = @transform_2, window_bounds = array<i64: 1, 1, 1024>}, {pipeline_mode = #tpu.pipeline_mode<synchronous>, transform_indices = @transform_3, window_bounds = array<i64: 2, 512>}]} {
    %c0_i32 = arith.constant 0 : i32
    %0 = arith.cmpi eq, %arg0, %c0_i32 : i32
    %1 = arith.extui %0 : i1 to i32
    %c0_i32_0 = arith.constant 0 : i32
    %2 = arith.cmpi ne, %1, %c0_i32_0 : i32
    scf.if %2 {
      %c0_9 = arith.constant 0 : index
      %c0_10 = arith.constant 0 : index
      %24 = vector.load %arg8[%c0_9, %c0_10] : memref<32x1024xbf16, #tpu.memory_space<vmem>>, vector<32x1024xbf16>
      %c0_11 = arith.constant 0 : index
      %c0_12 = arith.constant 0 : index
      %c0_13 = arith.constant 0 : index
      %25 = vector.load %arg12[%c0_11, %c0_12, %c0_13] : memref<8x32x1024xbf16, #tpu.memory_space<vmem>>, vector<1x32x1024xbf16>
      %26 = vector.shape_cast %25 : vector<1x32x1024xbf16> to vector<32x1024xbf16>
      %27 = vector.shape_cast %24 : vector<32x1024xbf16> to vector<1x32x1024xbf16>
      tpu.vector_store %arg12[%c0_11, %c0_12, %c0_13], %27 {strides = array<i32>} : memref<8x32x1024xbf16, #tpu.memory_space<vmem>>, vector<1x32x1024xbf16>,
    } else {
    }
    %3 = arith.index_cast %arg0 : i32 to index
    %4 = memref.load %arg1[%3] : memref<49xi32, #tpu.memory_space<smem>>
    %5 = arith.index_cast %4 : i32 to index
    %c0 = arith.constant 0 : index
    %c0_1 = arith.constant 0 : index
    %6 = vector.load %arg12[%5, %c0, %c0_1] : memref<8x32x1024xbf16, #tpu.memory_space<vmem>>, vector<1x32x1024xbf16>
    %7 = vector.shape_cast %6 : vector<1x32x1024xbf16> to vector<32x1024xbf16>
    %c0_2 = arith.constant 0 : index
    %c0_3 = arith.constant 0 : index
    %c0_4 = arith.constant 0 : index
    %8 = vector.load %arg9[%c0_2, %c0_3, %c0_4] : memref<1x1024x1024xbf16, #tpu.memory_space<vmem>>, vector<1x1024x1024xbf16>
    %9 = vector.shape_cast %8 : vector<1x1024x1024xbf16> to vector<1024x1024xbf16>
    %cst = arith.constant dense<0.000000e+00> : vector<32x1024xf32>
    %10 = tpu.matmul %7, %9, %cst {dimension_numbers = #tpu.dot_dimension_numbers<[1], [0], [0], [1], [0, 0, 1, 1], [], []>} : vector<32x1024xbf16>, vector<1024x1024xbf16>, vector<32x1024xf32> -> vector<32x1024xf32>
    %11 = arith.index_cast %arg0 : i32 to index
    %12 = memref.load %arg3[%11] : memref<49xi32, #tpu.memory_space<smem>>
    %c1_i32 = arith.constant 1 : i32
    %13 = arith.cmpi eq, %12, %c1_i32 : i32
    %14 = arith.extui %13 : i1 to i32
    %c0_i32_5 = arith.constant 0 : i32
    %15 = arith.cmpi ne, %14, %c0_i32_5 : i32
    scf.if %15 {
      %c0_9 = arith.constant 0 : index
      %c0_10 = arith.constant 0 : index
      %24 = vector.load %arg13[%c0_9, %c0_10] : memref<32x1024xf32, #tpu.memory_space<vmem>>, vector<32x1024xf32>
      tpu.vector_store %arg13[%c0_9, %c0_10], %10 {strides = array<i32>} : memref<32x1024xf32, #tpu.memory_space<vmem>>, vector<32x1024xf32>,
    } else {
    }
    %true = arith.constant true
    %16 = arith.xori %13, %true : i1
    %17 = arith.extui %16 : i1 to i32
    %c0_i32_6 = arith.constant 0 : i32
    %18 = arith.cmpi ne, %17, %c0_i32_6 : i32
    scf.if %18 {
      %c0_9 = arith.constant 0 : index
      %c0_10 = arith.constant 0 : index
      %24 = vector.load %arg13[%c0_9, %c0_10] : memref<32x1024xf32, #tpu.memory_space<vmem>>, vector<32x1024xf32>
      %25 = arith.addf %24, %10 : vector<32x1024xf32>
      %c0_11 = arith.constant 0 : index
      %c0_12 = arith.constant 0 : index
      %26 = vector.load %arg13[%c0_11, %c0_12] : memref<32x1024xf32, #tpu.memory_space<vmem>>, vector<32x1024xf32>
      tpu.vector_store %arg13[%c0_11, %c0_12], %25 {strides = array<i32>} : memref<32x1024xf32, #tpu.memory_space<vmem>>, vector<32x1024xf32>,
    } else {
    }
    %19 = arith.index_cast %arg0 : i32 to index
    %20 = memref.load %arg4[%19] : memref<49xi32, #tpu.memory_space<smem>>
    %c1_i32_7 = arith.constant 1 : i32
    %21 = arith.cmpi eq, %20, %c1_i32_7 : i32
    %22 = arith.extui %21 : i1 to i32
    %c0_i32_8 = arith.constant 0 : i32
    %23 = arith.cmpi ne, %22, %c0_i32_8 : i32
    scf.if %23 {
      %c0_9 = arith.constant 0 : index
      %c0_10 = arith.constant 0 : index
      %24 = vector.load %arg13[%c0_9, %c0_10] : memref<32x1024xf32, #tpu.memory_space<vmem>>, vector<32x1024xf32>
      %c0_11 = arith.constant 0 : index
      %c0_12 = arith.constant 0 : index
      %c0_13 = arith.constant 0 : index
      %25 = vector.load %arg10[%c0_11, %c0_12, %c0_13] : memref<1x1x1024xf32, #tpu.memory_space<vmem>>, vector<1x1x1024xf32>
      %26 = vector.shape_cast %25 : vector<1x1x1024xf32> to vector<1x1024xf32>
      %27 = vector.broadcast %26 : vector<1x1024xf32> to vector<32x1024xf32>
      %28 = arith.addf %24, %27 : vector<32x1024xf32>
      %29 = arith.index_cast %arg0 : i32 to index
      %30 = memref.load %arg5[%29] : memref<49xi32, #tpu.memory_space<smem>>
      %c1_i32_14 = arith.constant 1 : i32
      %31 = arith.cmpi eq, %30, %c1_i32_14 : i32
      %cst_15 = arith.constant 0.000000e+00 : f32
      %32 = vector.broadcast %cst_15 : f32 to vector<32x1024xf32>
      %33 = arith.maximumf %28, %32 : vector<32x1024xf32>
      %34 = arith.select %31, %33, %28 : vector<32x1024xf32>
      %35 = arith.index_cast %arg0 : i32 to index
      %36 = memref.load %arg2[%35] : memref<49xi32, #tpu.memory_space<smem>>
      %37 = arith.index_cast %arg0 : i32 to index
      %38 = memref.load %arg6[%37] : memref<49xi32, #tpu.memory_space<smem>>
      %c1_i32_16 = arith.constant 1 : i32
      %39 = arith.cmpi eq, %38, %c1_i32_16 : i32
      %40 = arith.index_cast %arg0 : i32 to index
      %41 = memref.load %arg7[%40] : memref<49xi32, #tpu.memory_space<smem>>
      %c1_i32_17 = arith.constant 1 : i32
      %42 = arith.cmpi eq, %41, %c1_i32_17 : i32
      %43 = arith.ori %39, %42 : i1
      %true_18 = arith.constant true
      %44 = arith.xori %43, %true_18 : i1
      %45 = arith.extui %44 : i1 to i32
      %c0_i32_19 = arith.constant 0 : i32
      %46 = arith.cmpi ne, %45, %c0_i32_19 : i32
      scf.if %46 {
        %51 = arith.truncf %34 : vector<32x1024xf32> to vector<32x1024xbf16>
        %52 = arith.index_cast %36 : i32 to index
        %c0_22 = arith.constant 0 : index
        %c0_23 = arith.constant 0 : index
        %53 = vector.load %arg12[%52, %c0_22, %c0_23] : memref<8x32x1024xbf16, #tpu.memory_space<vmem>>, vector<1x32x1024xbf16>
        %54 = vector.shape_cast %53 : vector<1x32x1024xbf16> to vector<32x1024xbf16>
        %55 = vector.shape_cast %51 : vector<32x1024xbf16> to vector<1x32x1024xbf16>
        tpu.vector_store %arg12[%52, %c0_22, %c0_23], %55 {strides = array<i32>} : memref<8x32x1024xbf16, #tpu.memory_space<vmem>>, vector<1x32x1024xbf16>,
      } else {
      }
      %47 = arith.extui %39 : i1 to i32
      %c0_i32_20 = arith.constant 0 : i32
      %48 = arith.cmpi ne, %47, %c0_i32_20 : i32
      scf.if %48 {
        %51 = vector.extract_strided_slice %34 {offsets = [0, 0], sizes = [16, 1024], strides = [1, 1]} : vector<32x1024xf32> to vector<16x1024xf32>
        %cst_22 = arith.constant dense<0xFF800000> : vector<1024xf32>
        %52 = vector.multi_reduction <maximumf>, %51, %cst_22 [0] : vector<16x1024xf32> to vector<1024xf32>
        %53 = vector.shape_cast %52 : vector<1024xf32> to vector<1x1024xf32>
        %54 = vector.extract_strided_slice %34 {offsets = [16, 0], sizes = [16, 1024], strides = [1, 1]} : vector<32x1024xf32> to vector<16x1024xf32>
        %cst_23 = arith.constant dense<0xFF800000> : vector<1024xf32>
        %55 = vector.multi_reduction <maximumf>, %54, %cst_23 [0] : vector<16x1024xf32> to vector<1024xf32>
        %56 = vector.shape_cast %55 : vector<1024xf32> to vector<1x1024xf32>
        %57 = tpu.concatenate %53, %56 in 0 : vector<1x1024xf32>, vector<1x1024xf32> -> vector<2x1024xf32>
        %cst_24 = arith.constant 0.000000e+00 : f32
        %58 = vector.broadcast %cst_24 : f32 to vector<30x1024xf32>
        %59 = tpu.concatenate %57, %58 in 0 : vector<2x1024xf32>, vector<30x1024xf32> -> vector<32x1024xf32>
        %60 = arith.truncf %59 : vector<32x1024xf32> to vector<32x1024xbf16>
        %61 = arith.index_cast %36 : i32 to index
        %c0_25 = arith.constant 0 : index
        %c0_26 = arith.constant 0 : index
        %62 = vector.load %arg12[%61, %c0_25, %c0_26] : memref<8x32x1024xbf16, #tpu.memory_space<vmem>>, vector<1x32x1024xbf16>
        %63 = vector.shape_cast %62 : vector<1x32x1024xbf16> to vector<32x1024xbf16>
        %64 = vector.shape_cast %60 : vector<32x1024xbf16> to vector<1x32x1024xbf16>
        tpu.vector_store %arg12[%61, %c0_25, %c0_26], %64 {strides = array<i32>} : memref<8x32x1024xbf16, #tpu.memory_space<vmem>>, vector<1x32x1024xbf16>,
      } else {
      }
      %49 = arith.extui %42 : i1 to i32
      %c0_i32_21 = arith.constant 0 : i32
      %50 = arith.cmpi ne, %49, %c0_i32_21 : i32
      scf.if %50 {
        %51 = vector.extract_strided_slice %34 {offsets = [0, 0], sizes = [2, 512], strides = [1, 1]} : vector<32x1024xf32> to vector<2x512xf32>
        %c0_22 = arith.constant 0 : index
        %c0_23 = arith.constant 0 : index
        %52 = vector.load %arg11[%c0_22, %c0_23] : memref<2x512xf32, #tpu.memory_space<vmem>>, vector<2x512xf32>
        tpu.vector_store %arg11[%c0_22, %c0_23], %51 {strides = array<i32>} : memref<2x512xf32, #tpu.memory_space<vmem>>, vector<2x512xf32>,
      } else {
      }
    } else {
    }
    return
  }
  func.func @transform_0(%arg0: i32, %arg1: memref<49xi32, #tpu.memory_space<smem>>, %arg2: memref<49xi32, #tpu.memory_space<smem>>, %arg3: memref<49xi32, #tpu.memory_space<smem>>, %arg4: memref<49xi32, #tpu.memory_space<smem>>, %arg5: memref<49xi32, #tpu.memory_space<smem>>, %arg6: memref<49xi32, #tpu.memory_space<smem>>, %arg7: memref<49xi32, #tpu.memory_space<smem>>) -> (i32, i32) {
    %c0_i32 = arith.constant 0 : i32
    %c0_i32_0 = arith.constant 0 : i32
    %c0_i32_1 = arith.constant 0 : i32
    return %c0_i32, %c0_i32_0 : i32, i32
  }
  func.func @transform_1(%arg0: i32, %arg1: memref<49xi32, #tpu.memory_space<smem>>, %arg2: memref<49xi32, #tpu.memory_space<smem>>, %arg3: memref<49xi32, #tpu.memory_space<smem>>, %arg4: memref<49xi32, #tpu.memory_space<smem>>, %arg5: memref<49xi32, #tpu.memory_space<smem>>, %arg6: memref<49xi32, #tpu.memory_space<smem>>, %arg7: memref<49xi32, #tpu.memory_space<smem>>) -> (i32, i32, i32) {
    %c0_i32 = arith.constant 0 : i32
    %c0_i32_0 = arith.constant 0 : i32
    %c0_i32_1 = arith.constant 0 : i32
    return %arg0, %c0_i32, %c0_i32_0 : i32, i32, i32
  }
  func.func @transform_2(%arg0: i32, %arg1: memref<49xi32, #tpu.memory_space<smem>>, %arg2: memref<49xi32, #tpu.memory_space<smem>>, %arg3: memref<49xi32, #tpu.memory_space<smem>>, %arg4: memref<49xi32, #tpu.memory_space<smem>>, %arg5: memref<49xi32, #tpu.memory_space<smem>>, %arg6: memref<49xi32, #tpu.memory_space<smem>>, %arg7: memref<49xi32, #tpu.memory_space<smem>>) -> (i32, i32, i32) {
    %c0_i32 = arith.constant 0 : i32
    %c0_i32_0 = arith.constant 0 : i32
    %c0_i32_1 = arith.constant 0 : i32
    return %arg0, %c0_i32, %c0_i32_0 : i32, i32, i32
  }
  func.func @transform_3(%arg0: i32, %arg1: memref<49xi32, #tpu.memory_space<smem>>, %arg2: memref<49xi32, #tpu.memory_space<smem>>, %arg3: memref<49xi32, #tpu.memory_space<smem>>, %arg4: memref<49xi32, #tpu.memory_space<smem>>, %arg5: memref<49xi32, #tpu.memory_space<smem>>, %arg6: memref<49xi32, #tpu.memory_space<smem>>, %arg7: memref<49xi32, #tpu.memory_space<smem>>) -> (i32, i32) {
    %c0_i32 = arith.constant 0 : i32
    %c0_i32_0 = arith.constant 0 : i32
    %c0_i32_1 = arith.constant 0 : i32
    return %c0_i32, %c0_i32_0 : i32, i32
  }
}

</mosaic_0001>

<bundles_post_ra>
// kernel: finetune_forward.1
= control target key start
LH: loop header
LB: loop body
LE: loop exit
PB: predicated region body
PF: predicated region fallthrough
CT: control target
= control target key end

     0   :  { %s8175_s19 = smov [#allocation5]   ;;  %s8176_s20 = smov [#allocation6]   ;;  %s10219_s0 = inlined_call_operand.hbm [shape: s32[49], index: 0, kind: input, shape index: {}]   ;;  %s10220_s7 = inlined_call_operand.vmem [shape: bf16[32,1024], index: 7, kind: input, shape index: {}]   ;;  %s10221_s8 = inlined_call_operand.hbm [shape: bf16[49,1024,1024], index: 8, kind: input, shape index: {}]   ;;  %s10222_s9 = inlined_call_operand.hbm [shape: f32[49,1,1024], index: 9, kind: input, shape index: {}]   ;;  %s10223_s10 = inlined_call_operand.vmem [shape: f32[2,512], index: 10, kind: output, shape index: {}]   ;;  %s10224_s1 = inlined_call_operand.hbm [shape: s32[49], index: 1, kind: input, shape index: {}]   ;;  %s10225_s2 = inlined_call_operand.hbm [shape: s32[49], index: 2, kind: input, shape index: {}]   ;;  %s10226_s3 = inlined_call_operand.hbm [shape: s32[49], index: 3, kind: input, shape index: {}]   ;;  %s10227_s4 = inlined_call_operand.hbm [shape: s32[49], index: 4, kind: input, shape index: {}]   ;;  %s10228_s5 = inlined_call_operand.hbm [shape: s32[49], index: 5, kind: input, shape index: {}]   ;;  %s10229_s6 = inlined_call_operand.hbm [shape: s32[49], index: 6, kind: input, shape index: {}]  }
   0x1   :  { %s16_s15 = sshll.u32 %s10219_s0, 4  ;;  %s21_s18 = sshll.u32 %s10224_s1, 4  ;;  %s17_s15 = int_to_ptr.hbm [resolvable:$true] %s16_s15  ;;  %s22_s18 = int_to_ptr.hbm [resolvable:$true] %s21_s18 }
   0x2   :  { %19 = dma.hbm_to_smem %s17_s15, 16, %s8175_s19, [#allocation4] }
   0x3   :  { %24 = dma.hbm_to_smem %s22_s18, 16, %s8176_s20, [#allocation4] }
   0x4   :  { %s26_s23 = sshll.u32 %s10225_s2, 4  ;;  %s31_s26 = sshll.u32 %s10226_s3, 4  ;;  %s27_s23 = int_to_ptr.hbm [resolvable:$true] %s26_s23  ;;  %s32_s26 = int_to_ptr.hbm [resolvable:$true] %s31_s26 }
   0x5   :  { %s8177_s0 = smov [#allocation7]   ;;  %s8178_s27 = smov [#allocation8]  }
   0x6   :  { %29 = dma.hbm_to_smem %s27_s23, 16, %s8177_s0, [#allocation4] }
   0x7   :  { %34 = dma.hbm_to_smem %s32_s26, 16, %s8178_s27, [#allocation4] }
   0x8   :  { %s36_s29 = sshll.u32 %s10227_s4, 4  ;;  %s41_s12 = sshll.u32 %s10228_s5, 4  ;;  %s37_s29 = int_to_ptr.hbm [resolvable:$true] %s36_s29  ;;  %s42_s12 = int_to_ptr.hbm [resolvable:$true] %s41_s12 }
   0x9   :  { %s8179_s2 = smov [#allocation9]   ;;  %s8180_s13 = smov [#allocation10]  }
   0xa   :  { %39 = dma.hbm_to_smem %s37_s29, 16, %s8179_s2, [#allocation4] }
   0xb   :  { %44 = dma.hbm_to_smem %s42_s12, 16, %s8180_s13, [#allocation4] }
   0xc   :  { %s46_s15 = sshll.u32 %s10229_s6, 4  ;;  %s8181_s16 = smov [#allocation11]   ;;  %s47_s15 = int_to_ptr.hbm [resolvable:$true] %s46_s15 }
   0xd   :  { %49 = dma.hbm_to_smem %s47_s15, 16, %s8181_s16, [#allocation4] }
   0xe   :  { %8149 = dma.done.wait [#allocation4], 112 }
   0xf   :  { %8150 = vsyncadd [#allocation4], 4294967184 }
  0x10   :  { %52 = sfence }
  0x11   :  { %53 = vsyncpa [#allocation13], 0 }
  0x12   :  { %55 = vsyncpa [#allocation13 + $0x1], 0 }
  0x13   :  { %56 = vsyncpa [#allocation15], 0 }
  0x14   :  { %58 = vsyncpa [#allocation15 + $0x1], 0  ;;  %s8261_s4 = smov 0   ;;  %s8263_s5 = smov 0  }
  0x15   :  { %s8265_s17 = smov 0   ;;  %s8267_s18 = smov 0  }
  0x16 LB: > { %s8280_s6 = sadd.s32 4294967295, %s8173_s18   ;;  %s8283_s19 = sadd.s32 1, %s8173_s18   ;;  %s8173_s18 = sphi %s8267_s18, %s10262_s18   ;;  %s8169_s17 = sphi %s8265_s17, %s10261_s17   ;;  %s8165_s5 = sphi %s8263_s5, %s10260_s5   ;;  %s8161_s4 = sphi %s8261_s4, %s10259_s4  }
  0x17   : > { %s89_s20 = ssub.s32 %s8173_s18, %s8283_s19  ;;  %s92_s21 = sadd.s32 1, %s8169_s17 }
  0x18   : > { %p90_p0 = scmp.eq.s32.totalorder %s89_s20, 0  ;;  %p99_p1 = scmp.ne.s32.totalorder %s8169_s17, %s8165_s5 }
  0x19   : > { %p100_p2 = scmp.eq.s32.totalorder %s8173_s18, 0  ;;  %p105_p3 = scmp.ne.s32.totalorder %s8165_s5, %s8161_s4 }
  0x1a   : > { %s8293_s22 = scalar_select %p90_p0, %s8169_s17, %s92_s21  }
  0x1b   : > { %p8295_p4 = por %p100_p2, %p99_p1  ;;  %p106_p5 = scmp.eq.s32.totalorder %s8280_s6, 0 }
  0x1c   : > { %p7946_p6 = scmp.lt.s32.totalorder %s8173_s18, 49  ;;  %s8306_s25 = sand.u32 1, %s8169_s17  }
  0x1d   : > { %p8301_p7 = por %p106_p5, %p105_p3  ;;  %s5269_s26 = sshll.u32 %s8306_s25, 12 }
  0x1e   : > { %s7403_s0 = sshll.u32 %s8173_s18, 12  ;;  %s183_s29 = scalar_lea.vmem [#allocation12], %s5269_s26 }
  0x1f   : > { %s188_s28 = scalar_lea.hbm %s10221_s8, %s7403_s0  ;;  %s191_s30 = sshll.u32 %s183_s29, 4  ;;  %s192_s30 = int_to_ptr.vmem [resolvable:$true] %s191_s30 }
  0x20   : > { %s189_s11 = sshll.u32 %s188_s28, 4  ;;  %p8315_p8 = pnand %p7946_p6, %p8295_p4  ;;  %s190_s11 = int_to_ptr.hbm [resolvable:$true] %s189_s11 }
  0x21   : > { %p5274_p9 = scmp.ge.s32.totalorder %s8173_s18, 1  ;;  %s180_s2 = scalar_lea.sflag [#allocation13], %s8306_s25 }
  0x22   : > { %s8073_s13 = sshra.s32 %s190_s11, 4  ;;  %p8077_p11 = pneg %p8315_p8  ;;  %s8074_s13 = int_to_ptr.hbm [resolvable:$true] %s8073_s13 }
  0x23   : > { %s8075_s3 = scalar_lea.hbm %s8074_s13, 4096  ;;  %s8080_s16 = scalar_lea.hbm %s10221_s8, 200704 }
  0x24   : > { %p8076_p10 = scmp.ne.s32.totalorder %s8074_s13, %s8075_s3  ;;  %p8081_p0 = scmp.lt.s32.totalorder %s8074_s13, %s10221_s8 }
  0x25   : > { %p8082_p1 = scmp.lt.s32.totalorder %s8080_s16, %s8075_s3 }
  0x26   : > { %p8078_p12 = pnand %p8077_p11, %p8076_p10 }
  0x27   : > { %p8083_p2 = por %p8082_p1, %p8081_p0 }
  0x28   : > { %p8079_p13 = pneg %p8078_p12 }
  0x2a   : > { %p8084_p3 = pnand %p8083_p2, %p8079_p13 }
  0x2c   : > { %8087 = shalt.err (!%p8084_p3)
}
  0x2d   : > { %s8182_s21 = smov 512   ;;  %s8183_s23 = smov 32  }
  0x2e   : > { %7942 = dma.hbm_to_vmem [thread:$0]  (!%p8315_p8), %s190_s11, 65536, %s192_s30, %s180_s2, %s8182_s21, %s8182_s21, %s8183_s23  }
  0x2f   : > { %p218_p4 = scmp.lt.s32.totalorder %s8173_s18, 50  ;;  %s5272_s26 = sshll.u32 %s8306_s25, 3 }
  0x30   : > { %s5273_s0 = sshll.u32 %s8173_s18, 3  ;;  %s205_s13 = scalar_lea.vmem [#allocation14], %s5272_s26 }
  0x31   : > { %p8339_p5 = pnand %p5274_p9, %p218_p4  ;;  %s209_s29 = scalar_lea.hbm %s10222_s9, %s5273_s0 }
  0x32   : > { %s213_s3 = sshll.u32 %s205_s13, 4  ;;  %s211_s14 = sshll.u32 %s209_s29, 4  ;;  %s214_s3 = int_to_ptr.vmem [resolvable:$true] %s213_s3  ;;  %s212_s14 = int_to_ptr.hbm [resolvable:$true] %s211_s14 }
  0x33   : > { %s202_s15 = scalar_lea.sflag [#allocation15], %s8306_s25  ;;  %s8103_s30 = sshra.s32 %s212_s14, 4  ;;  %s8104_s30 = int_to_ptr.hbm [resolvable:$true] %s8103_s30 }
  0x34   : > { %s8105_s11 = scalar_lea.hbm %s8104_s30, 8  ;;  %s8110_s16 = scalar_lea.hbm %s10222_s9, 392 }
  0x35   : > { %p8106_p6 = scmp.ne.s32.totalorder %s8104_s30, %s8105_s11  ;;  %p8111_p12 = scmp.lt.s32.totalorder %s8104_s30, %s10222_s9 }
  0x36   : > { %p8112_p13 = scmp.lt.s32.totalorder %s8110_s16, %s8105_s11 }
  0x37   : > { %p8108_p9 = pnand %p8106_p6, %p8077_p11 }
  0x38   : > { %p8113_p0 = por %p8112_p13, %p8111_p12 }
  0x39   : > { %p8109_p10 = pneg %p8108_p9 }
  0x3b   : > { %p8114_p1 = pnand %p8113_p0, %p8109_p10 }
  0x3d   : > { %8117 = shalt.err (!%p8114_p1)
}
  0x3e   : > { %7945 = dma.hbm_to_vmem [thread:$0]  (!%p8315_p8), %s212_s14, 128, %s214_s3, %s202_s15  }
  0x3f   : > { %222 = sbr.rel (%p8339_p5) target bundleno = 1308 (0x51c), region = 32 }
  0x44   : > { %s224_s25 = sand.u32 1, %s8165_s5  }
  0x45   : > { %s5275_s21 = sshll.u32 %s224_s25, 12  ;;  %s225_s23 = scalar_lea.sflag [#allocation13], %s224_s25 }
  0x46   : > { %s8361_s26 = scalar_lea.vmem [#allocation12], %s5275_s21 }
  0x47   : > { %8152 = dma.done.wait (%p8301_p7), %s225_s23, 65536  }
  0x48   : > { %8154 = vsyncadd (%p8301_p7), %s225_s23, 4294901760  ;;  %s5276_s0 = sshll.u32 %s224_s25, 3  ;;  %s235_s1 = scalar_lea.sflag [#allocation15], %s224_s25 }
  0x49   : > { %s8367_s12 = scalar_lea.vmem [#allocation14], %s5276_s0 }
  0x4a   : > { %8156 = dma.done.wait (%p8301_p7), %s235_s1, 128  }
  0x4b   : > { %8158 = vsyncadd (%p8301_p7), %s235_s1, 4294967168  ;;  %p5277_p8 = scmp.ne.s32.totalorder %s8280_s6, 0 }
  0x4d   : > { %265 = sbr.rel (%p5277_p8) target bundleno = 99 (0x63), region = 44 }
  0x52   : > { %v266_v0 = vld [vmem:[%s10220_s7] sm:$0xff]  ;;  %v267_v1 = vld [vmem:[%s10220_s7 + $0x8] sm:$0xff]  ;;  %v268_v2 = vld [vmem:[%s10220_s7 + $0x10] sm:$0xff] }
  0x53   : > { %282 = vst [vmem:[#allocation2] sm:$0xff] %v266_v0  ;;  %v269_v3 = vld [vmem:[%s10220_s7 + $0x18] sm:$0xff]  ;;  %v270_v4 = vld [vmem:[%s10220_s7 + $0x20] sm:$0xff]  ;;  %v271_v5 = vld [vmem:[%s10220_s7 + $0x28] sm:$0xff] }
  0x54   : > { %283 = vst [vmem:[#allocation2 + $0x8] sm:$0xff] %v267_v1  ;;  %v272_v6 = vld [vmem:[%s10220_s7 + $0x30] sm:$0xff]  ;;  %v273_v7 = vld [vmem:[%s10220_s7 + $0x38] sm:$0xff]  ;;  %v274_v8 = vld [vmem:[%s10220_s7 + $0x40] sm:$0xff] }
  0x55   : > { %284 = vst [vmem:[#allocation2 + $0x10] sm:$0xff] %v268_v2  ;;  %v275_v9 = vld [vmem:[%s10220_s7 + $0x48] sm:$0xff]  ;;  %v276_v10 = vld [vmem:[%s10220_s7 + $0x50] sm:$0xff]  ;;  %v277_v11 = vld [vmem:[%s10220_s7 + $0x58] sm:$0xff] }
  0x56   : > { %285 = vst [vmem:[#allocation2 + $0x18] sm:$0xff] %v269_v3  ;;  %v278_v12 = vld [vmem:[%s10220_s7 + $0x60] sm:$0xff]  ;;  %v279_v13 = vld [vmem:[%s10220_s7 + $0x68] sm:$0xff]  ;;  %v280_v14 = vld [vmem:[%s10220_s7 + $0x70] sm:$0xff] }
  0x57   : > { %286 = vst [vmem:[#allocation2 + $0x20] sm:$0xff] %v270_v4  ;;  %v281_v15 = vld [vmem:[%s10220_s7 + $0x78] sm:$0xff] }
  0x58   : > { %287 = vst [vmem:[#allocation2 + $0x28] sm:$0xff] %v271_v5 }
  0x59   : > { %288 = vst [vmem:[#allocation2 + $0x30] sm:$0xff] %v272_v6 }
  0x5a   : > { %289 = vst [vmem:[#allocation2 + $0x38] sm:$0xff] %v273_v7 }
  0x5b   : > { %290 = vst [vmem:[#allocation2 + $0x40] sm:$0xff] %v274_v8 }
  0x5c   : > { %291 = vst [vmem:[#allocation2 + $0x48] sm:$0xff] %v275_v9 }
  0x5d   : > { %292 = vst [vmem:[#allocation2 + $0x50] sm:$0xff] %v276_v10 }
  0x5e   : > { %293 = vst [vmem:[#allocation2 + $0x58] sm:$0xff] %v277_v11 }
  0x5f   : > { %294 = vst [vmem:[#allocation2 + $0x60] sm:$0xff] %v278_v12 }
  0x60   : > { %295 = vst [vmem:[#allocation2 + $0x68] sm:$0xff] %v279_v13 }
  0x61   : > { %296 = vst [vmem:[#allocation2 + $0x70] sm:$0xff] %v280_v14 }
  0x62   : > { %297 = vst [vmem:[#allocation2 + $0x78] sm:$0xff] %v281_v15 }
  0x63 PF: > { %v5570_v16 = vld [vmem:[%s8361_s26 + $0x1c0] sm:$0xf]  ;;  %s8477_s16 = sld [smem:[#allocation5 + %s8280_s6]] }
  0x64   : > { %v7481_v17 = vld [vmem:[%s8361_s26 + $0x1dc] sm:$0xf0] }
  0x65   : > { %v5826_v18 = vld [vmem:[%s8361_s26 + $0x3c0] sm:$0xf]  ;;  %v5571_v19 = vor.u32 %v7481_v17, %v5570_v16 }
  0x66   : > { %v7545_v20 = vld [vmem:[%s8361_s26 + $0x3dc] sm:$0xf0] }
  0x67   : > { %v6082_v21 = vld [vmem:[%s8361_s26 + $0x5c0] sm:$0xf]  ;;  %v5827_v23 = vor.u32 %v7545_v20, %v5826_v18  ;;  %3470 = vmatpush.bf16.msra.mxu0 %v5571_v19 }
  0x68   : > { %v7609_v22 = vld [vmem:[%s8361_s26 + $0x5dc] sm:$0xf0] }
  0x69   : > { %v6083_v24 = vor.u32 %v7609_v22, %v6082_v21  ;;  %v6338_v25 = vld [vmem:[%s8361_s26 + $0x7c0] sm:$0xf]  ;;  %3489 = vmatpush.bf16.msra.mxu1 %v5827_v23  ;;  %s7404_s4 = sshll.u32 %s8477_s16, 7 }
  0x6a   : > { %v7673_v26 = vld [vmem:[%s8361_s26 + $0x7dc] sm:$0xf0]  ;;  %s8500_s20 = scalar_lea.vmem [#allocation2], %s7404_s4 }
  0x6b   : > { %v5538_v27 = vld [vmem:[%s8361_s26 + $0x180] sm:$0xf]  ;;  %v6339_v28 = vor.u32 %v7673_v26, %v6338_v25  ;;  %3508 = vmatpush.bf16.msra.mxu2 %v6083_v24 }
  0x6c   : > { %v7473_v29 = vld [vmem:[%s8361_s26 + $0x19c] sm:$0xf0] }
  0x6d   : > { %v5794_v30 = vld [vmem:[%s8361_s26 + $0x380] sm:$0xf]  ;;  %v5539_v32 = vor.u32 %v7473_v29, %v5538_v27  ;;  %3527 = vmatpush.bf16.msra.mxu3 %v6339_v28 }
  0x6e   : > { %v7537_v31 = vld [vmem:[%s8361_s26 + $0x39c] sm:$0xf0] }
  0x6f   : > { %v5795_v33 = vor.u32 %v7537_v31, %v5794_v30  ;;  %v6050_v34 = vld [vmem:[%s8361_s26 + $0x580] sm:$0xf]  ;;  %3471 = vmatpush.bf16.msra.mxu0 %v5539_v32 }
  0x70   : > { %v7601_v35 = vld [vmem:[%s8361_s26 + $0x59c] sm:$0xf0] }
  0x71   : > { %v6306_v36 = vld [vmem:[%s8361_s26 + $0x780] sm:$0xf]  ;;  %v6051_v37 = vor.u32 %v7601_v35, %v6050_v34  ;;  %3490 = vmatpush.bf16.msra.mxu1 %v5795_v33 }
  0x72   : > { %v7665_v38 = vld [vmem:[%s8361_s26 + $0x79c] sm:$0xf0] }
  0x73   : > { %v5506_v39 = vld [vmem:[%s8361_s26 + $0x140] sm:$0xf]  ;;  %v6307_v41 = vor.u32 %v7665_v38, %v6306_v36  ;;  %3509 = vmatpush.bf16.msra.mxu2 %v6051_v37 }
  0x74   : > { %v7465_v40 = vld [vmem:[%s8361_s26 + $0x15c] sm:$0xf0] }
  0x75   : > { %v5762_v42 = vld [vmem:[%s8361_s26 + $0x340] sm:$0xf]  ;;  %v5507_v45 = vor.u32 %v7465_v40, %v5506_v39  ;;  %3528 = vmatpush.bf16.msra.mxu3 %v6307_v41 }
  0x76   : > { %v7529_v43 = vld [vmem:[%s8361_s26 + $0x35c] sm:$0xf0] }
  0x77   : > { %v6018_v44 = vld [vmem:[%s8361_s26 + $0x540] sm:$0xf]  ;;  %v5763_v49 = vor.u32 %v7529_v43, %v5762_v42  ;;  %3472 = vmatpush.bf16.msra.mxu0 %v5507_v45 }
  0x78   : > { %v7593_v46 = vld [vmem:[%s8361_s26 + $0x55c] sm:$0xf0] }
  0x79   : > { %v6274_v47 = vld [vmem:[%s8361_s26 + $0x740] sm:$0xf]  ;;  %v6019_v50 = vor.u32 %v7593_v46, %v6018_v44  ;;  %3491 = vmatpush.bf16.msra.mxu1 %v5763_v49 }
  0x7a   : > { %v7657_v48 = vld [vmem:[%s8361_s26 + $0x75c] sm:$0xf0] }
  0x7b   : > { %v5474_v51 = vld [vmem:[%s8361_s26 + $0x100] sm:$0xf]  ;;  %v6275_v54 = vor.u32 %v7657_v48, %v6274_v47  ;;  %3510 = vmatpush.bf16.msra.mxu2 %v6019_v50 }
  0x7c   : > { %v7457_v52 = vld [vmem:[%s8361_s26 + $0x11c] sm:$0xf0] }
  0x7d   : > { %v5730_v53 = vld [vmem:[%s8361_s26 + $0x300] sm:$0xf]  ;;  %v5475_v60 = vor.u32 %v7457_v52, %v5474_v51  ;;  %3529 = vmatpush.bf16.msra.mxu3 %v6275_v54 }
  0x7e   : > { %v7521_v55 = vld [vmem:[%s8361_s26 + $0x31c] sm:$0xf0] }
  0x7f   : > { %v5986_v56 = vld [vmem:[%s8361_s26 + $0x500] sm:$0xf]  ;;  %v5731_v61 = vor.u32 %v7521_v55, %v5730_v53  ;;  %3473 = vmatpush.bf16.msra.mxu0 %v5475_v60  ;;  %v7405_v60 = vld [vmem:[%s8500_s20 + $0x4] sm:$0xf] }
  0x80   : > { %v7585_v57 = vld [vmem:[%s8361_s26 + $0x51c] sm:$0xf0] }
  0x81   : > { %v6242_v58 = vld [vmem:[%s8361_s26 + $0x700] sm:$0xf]  ;;  %v5987_v62 = vor.u32 %v7585_v57, %v5986_v56  ;;  %3492 = vmatpush.bf16.msra.mxu1 %v5731_v61 }
  0x82   : > { %v7649_v59 = vld [vmem:[%s8361_s26 + $0x71c] sm:$0xf0] }
  0x83   : > { %v5442_v63 = vld [vmem:[%s8361_s26 + $0xc0] sm:$0xf]  ;;  %v6243_v2 = vor.u32 %v7649_v59, %v6242_v58  ;;  %3511 = vmatpush.bf16.msra.mxu2 %v5987_v62 }
  0x84   : > { %v7449_v0 = vld [vmem:[%s8361_s26 + $0xdc] sm:$0xf0] }
  0x85   : > { %v5698_v1 = vld [vmem:[%s8361_s26 + $0x2c0] sm:$0xf]  ;;  %v5443_v8 = vor.u32 %v7449_v0, %v5442_v63  ;;  %3530 = vmatpush.bf16.msra.mxu3 %v6243_v2  ;;  %v5284_v0 = vld [vmem:[%s8500_s20 + $0x20] sm:$0xf0]  ;;  %v7410_v2 = vld [vmem:[%s8500_s20 + $0x24] sm:$0xf0] }
  0x86   : > { %v7513_v3 = vld [vmem:[%s8361_s26 + $0x2dc] sm:$0xf0] }
  0x87   : > { %v5954_v4 = vld [vmem:[%s8361_s26 + $0x4c0] sm:$0xf]  ;;  %v5699_v9 = vor.u32 %v7513_v3, %v5698_v1  ;;  %3474 = vmatpush.bf16.msra.mxu0 %v5443_v8  ;;  %v5290_v1 = vld [vmem:[%s8500_s20 + $0x8] sm:$0xf] }
  0x88   : > { %v7577_v5 = vld [vmem:[%s8361_s26 + $0x4dc] sm:$0xf0] }
  0x89   : > { %v6210_v6 = vld [vmem:[%s8361_s26 + $0x6c0] sm:$0xf]  ;;  %v5955_v10 = vor.u32 %v7577_v5, %v5954_v4  ;;  %3493 = vmatpush.bf16.msra.mxu1 %v5699_v9  ;;  %v8511_v4 = vor.u32 %v7405_v60, %v5284_v0  ;;  %v8513_v5 = vor.u32 %v7410_v2, %v5290_v1 }
  0x8a   : > { %v7641_v7 = vld [vmem:[%s8361_s26 + $0x6dc] sm:$0xf0] }
  0x8b   : > { %v5410_v11 = vld [vmem:[%s8361_s26 + $0x80] sm:$0xf]  ;;  %v6211_v14 = vor.u32 %v7641_v7, %v6210_v6  ;;  %3512 = vmatpush.bf16.msra.mxu2 %v5955_v10  ;;  %v7406_v6 = vld [vmem:[%s8500_s20 + $0xc] sm:$0xf] }
  0x8c   : > { %v7441_v12 = vld [vmem:[%s8361_s26 + $0x9c] sm:$0xf0]  ;;  %v5292_v7 = vld [vmem:[%s8500_s20 + $0x28] sm:$0xf0] }
  0x8d   : > { %v5666_v13 = vld [vmem:[%s8361_s26 + $0x280] sm:$0xf]  ;;  %v5411_v20 = vor.u32 %v7441_v12, %v5410_v11  ;;  %3531 = vmatpush.bf16.msra.mxu3 %v6211_v14  ;;  %v8518_v9 = vor.u32 %v7406_v6, %v5292_v7 }
  0x8e   : > { %v7505_v15 = vld [vmem:[%s8361_s26 + $0x29c] sm:$0xf0] }
  0x8f   : > { %v5922_v16 = vld [vmem:[%s8361_s26 + $0x480] sm:$0xf]  ;;  %v5667_v22 = vor.u32 %v7505_v15, %v5666_v13  ;;  %3475 = vmatpush.bf16.msra.mxu0 %v5411_v20 }
  0x90   : > { %v7569_v17 = vld [vmem:[%s8361_s26 + $0x49c] sm:$0xf0] }
  0x91   : > { %v6178_v18 = vld [vmem:[%s8361_s26 + $0x680] sm:$0xf]  ;;  %v5923_v23 = vor.u32 %v7569_v17, %v5922_v16  ;;  %3494 = vmatpush.bf16.msra.mxu1 %v5667_v22 }
  0x92   : > { %v7633_v19 = vld [vmem:[%s8361_s26 + $0x69c] sm:$0xf0] }
  0x93   : > { %v5378_v21 = vld [vmem:[%s8361_s26 + $0x40] sm:$0xf]  ;;  %v6179_v27 = vor.u32 %v7633_v19, %v6178_v18  ;;  %3513 = vmatpush.bf16.msra.mxu2 %v5923_v23 }
  0x94   : > { %v7433_v24 = vld [vmem:[%s8361_s26 + $0x5c] sm:$0xf0] }
  0x95   : > { %v5634_v25 = vld [vmem:[%s8361_s26 + $0x240] sm:$0xf]  ;;  %v5379_v32 = vor.u32 %v7433_v24, %v5378_v21  ;;  %3532 = vmatpush.bf16.msra.mxu3 %v6179_v27 }
  0x96   : > { %v7497_v26 = vld [vmem:[%s8361_s26 + $0x25c] sm:$0xf0] }
  0x97   : > { %v5890_v28 = vld [vmem:[%s8361_s26 + $0x440] sm:$0xf]  ;;  %v5635_v34 = vor.u32 %v7497_v26, %v5634_v25  ;;  %3476 = vmatpush.bf16.msra.mxu0 %v5379_v32 }
  0x98   : > { %v7561_v29 = vld [vmem:[%s8361_s26 + $0x45c] sm:$0xf0] }
  0x99   : > { %v6146_v30 = vld [vmem:[%s8361_s26 + $0x640] sm:$0xf]  ;;  %v5891_v35 = vor.u32 %v7561_v29, %v5890_v28  ;;  %3495 = vmatpush.bf16.msra.mxu1 %v5635_v34 }
  0x9a   : > { %v7625_v31 = vld [vmem:[%s8361_s26 + $0x65c] sm:$0xf0] }
  0x9b   : > { %v5346_v33 = vld [vmem:[%s8361_s26] sm:$0xf]  ;;  %v6147_v39 = vor.u32 %v7625_v31, %v6146_v30  ;;  %3514 = vmatpush.bf16.msra.mxu2 %v5891_v35 }
  0x9c   : > { %v7425_v36 = vld [vmem:[%s8361_s26 + $0x1c] sm:$0xf0] }
  0x9d   : > { %v5602_v37 = vld [vmem:[%s8361_s26 + $0x200] sm:$0xf]  ;;  %v5347_v46 = vor.u32 %v7425_v36, %v5346_v33  ;;  %3533 = vmatpush.bf16.msra.mxu3 %v6147_v39 }
  0x9e   : > { %v7489_v38 = vld [vmem:[%s8361_s26 + $0x21c] sm:$0xf0] }
  0x9f   : > { %v5858_v40 = vld [vmem:[%s8361_s26 + $0x400] sm:$0xf]  ;;  %v5603_v51 = vor.u32 %v7489_v38, %v5602_v37  ;;  %3477 = vmatpush.bf16.msra.mxu0 %v5347_v46 }
  0xa0   : > { %v7553_v41 = vld [vmem:[%s8361_s26 + $0x41c] sm:$0xf0] }
  0xa1   : > { %v6114_v42 = vld [vmem:[%s8361_s26 + $0x600] sm:$0xf]  ;;  %v5859_v52 = vor.u32 %v7553_v41, %v5858_v40  ;;  %3496 = vmatpush.bf16.msra.mxu1 %v5603_v51 }
  0xa2   : > { %v7617_v43 = vld [vmem:[%s8361_s26 + $0x61c] sm:$0xf0] }
  0xa3   : > { %v7106_v44 = vld [vmem:[%s8361_s26 + $0xdc0] sm:$0xf]  ;;  %v6115_v57 = vor.u32 %v7617_v43, %v6114_v42  ;;  %3515 = vmatpush.bf16.msra.mxu2 %v5859_v52  ;;  %v7418_v52 = vld [vmem:[%s8500_s20 + $0x64] sm:$0xf0] }
  0xa4   : > { %v7865_v45 = vld [vmem:[%s8361_s26 + $0xddc] sm:$0xf0]  ;;  %3497 = vmatmul.bf16.vlgmr.msra.gmra.mxu1 %v8511_v4 }
  0xa5   : > { %v6594_v47 = vld [vmem:[%s8361_s26 + $0x9c0] sm:$0xf]  ;;  %v7107_v61 = vor.u32 %v7865_v45, %v7106_v44  ;;  %3534 = vmatpush.bf16.msra.mxu3 %v6115_v57  ;;  %v7413_v44 = vld [vmem:[%s8500_s20 + $0x44] sm:$0xf] }
  0xa6   : > { %v7737_v48 = vld [vmem:[%s8361_s26 + $0x9dc] sm:$0xf0]  ;;  %3516 = vmatmul.bf16.vlgmr.msra.gmra.mxu2 %v8513_v5  ;;  %v5316_v45 = vld [vmem:[%s8500_s20 + $0x60] sm:$0xf0] }
  0xa7   : > { %v6850_v49 = vld [vmem:[%s8361_s26 + $0xbc0] sm:$0xf]  ;;  %v6595_v10 = vor.u32 %v7737_v48, %v6594_v47  ;;  %3584 = vmatpush.bf16.msrb.mxu2 %v7107_v61  ;;  %v5322_v48 = vld [vmem:[%s8500_s20 + $0x48] sm:$0xf]  ;;  %v8564_v2 = vor.u32 %v7413_v44, %v5316_v45 }
  0xa8   : > { %v7801_v50 = vld [vmem:[%s8361_s26 + $0xbdc] sm:$0xf0]  ;;  %3535 = vmatmul.bf16.vlgmr.msra.gmra.mxu3 %v8518_v9 }
  0xa9   : > { %v7362_v53 = vld [vmem:[%s8361_s26 + $0xfc0] sm:$0xf]  ;;  %v6851_v3 = vor.u32 %v7801_v50, %v6850_v49  ;;  %3546 = vmatpush.bf16.msrb.mxu0 %v6595_v10 }
  0xaa   : > { %v7929_v54 = vld [vmem:[%s8361_s26 + $0xfdc] sm:$0xf0] }
  0xab   : > { %v7074_v55 = vld [vmem:[%s8361_s26 + $0xd80] sm:$0xf]  ;;  %v7363_v11 = vor.u32 %v7929_v54, %v7362_v53  ;;  %3565 = vmatpush.bf16.msrb.mxu1 %v6851_v3  ;;  %v7414_v53 = vld [vmem:[%s8500_s20 + $0x4c] sm:$0xf]  ;;  %v8566_v3 = vor.u32 %v7418_v52, %v5322_v48  ;;  %v7407_v48 = vld [vmem:[%s8500_s20 + $0x14] sm:$0xf] }
  0xac   : > { %v7857_v56 = vld [vmem:[%s8361_s26 + $0xd9c] sm:$0xf0]  ;;  %v5324_v54 = vld [vmem:[%s8500_s20 + $0x68] sm:$0xf0]  ;;  %v5572_v52 = vld [vmem:[%s8361_s26 + $0x1e0] sm:$0xf0] }
  0xad   : > { %v5282_v58 = vld [vmem:[%s8500_s20] sm:$0xf]  ;;  %v7075_v12 = vor.u32 %v7857_v56, %v7074_v55  ;;  %3603 = vmatpush.bf16.msrb.mxu3 %v7363_v11 }
  0xae   : > { %v7409_v59 = vld [vmem:[%s8500_s20 + $0x1c] sm:$0xf0] }
  0xaf   : > { %v6818_v62 = vld [vmem:[%s8361_s26 + $0xb80] sm:$0xf]  ;;  %v8506_v63 = vor.u32 %v7409_v59, %v5282_v58  ;;  %3585 = vmatpush.bf16.msrb.mxu2 %v7075_v12 }
  0xb0   : > { %v7793_v8 = vld [vmem:[%s8361_s26 + $0xb9c] sm:$0xf0] }
  0xb1   : > { %v6562_v13 = vld [vmem:[%s8361_s26 + $0x980] sm:$0xf]  ;;  %3478 = vmatmul.bf16.vlgmr.msra.gmra.mxu0 %v8506_v63  ;;  %v6819_v16 = vor.u32 %v7793_v8, %v6818_v62  ;;  %v8570_v8 = vor.u32 %v7414_v53, %v5324_v54  ;;  %v7669_v53 = vld [vmem:[%s8361_s26 + $0x7c4] sm:$0xf] }
  0xb2   : > { %v7729_v14 = vld [vmem:[%s8361_s26 + $0x99c] sm:$0xf0] }
  0xb3   : > { %v7330_v15 = vld [vmem:[%s8361_s26 + $0xf80] sm:$0xf]  ;;  %v6563_v22 = vor.u32 %v7729_v14, %v6562_v13  ;;  %3566 = vmatpush.bf16.msrb.mxu1 %v6819_v16 }
  0xb4   : > { %v7921_v17 = vld [vmem:[%s8361_s26 + $0xf9c] sm:$0xf0]  ;;  %3502 = vmatmul.bf16.gmra.mxu1 %v8564_v2 }
  0xb5   : > { %v7042_v18 = vld [vmem:[%s8361_s26 + $0xd40] sm:$0xf]  ;;  %v7331_v23 = vor.u32 %v7921_v17, %v7330_v15  ;;  %3547 = vmatpush.bf16.msrb.mxu0 %v6563_v22 }
  0xb6   : > { %v7849_v19 = vld [vmem:[%s8361_s26 + $0xd5c] sm:$0xf0]  ;;  %3521 = vmatmul.bf16.gmra.mxu2 %v8566_v3 }
  0xb7   : > { %v6786_v20 = vld [vmem:[%s8361_s26 + $0xb40] sm:$0xf]  ;;  %v7043_v24 = vor.u32 %v7849_v19, %v7042_v18  ;;  %3604 = vmatpush.bf16.msrb.mxu3 %v7331_v23 }
  0xb8   : > { %v7785_v21 = vld [vmem:[%s8361_s26 + $0xb5c] sm:$0xf0]  ;;  %3540 = vmatmul.bf16.gmra.mxu3 %v8570_v8 }
  0xb9   : > { %v6530_v25 = vld [vmem:[%s8361_s26 + $0x940] sm:$0xf]  ;;  %v6787_v28 = vor.u32 %v7785_v21, %v6786_v20  ;;  %3586 = vmatpush.bf16.msrb.mxu2 %v7043_v24 }
  0xba   : > { %v7721_v26 = vld [vmem:[%s8361_s26 + $0x95c] sm:$0xf0] }
  0xbb   : > { %v7298_v27 = vld [vmem:[%s8361_s26 + $0xf40] sm:$0xf]  ;;  %v6531_v34 = vor.u32 %v7721_v26, %v6530_v25  ;;  %3567 = vmatpush.bf16.msrb.mxu1 %v6787_v28 }
  0xbc   : > { %v7913_v29 = vld [vmem:[%s8361_s26 + $0xf5c] sm:$0xf0] }
  0xbd   : > { %v7010_v30 = vld [vmem:[%s8361_s26 + $0xd00] sm:$0xf]  ;;  %v7299_v38 = vor.u32 %v7913_v29, %v7298_v27  ;;  %3548 = vmatpush.bf16.msrb.mxu0 %v6531_v34  ;;  %v7605_v34 = vld [vmem:[%s8361_s26 + $0x5c4] sm:$0xf] }
  0xbe   : > { %v7841_v31 = vld [vmem:[%s8361_s26 + $0xd1c] sm:$0xf0] }
  0xbf   : > { %v6754_v32 = vld [vmem:[%s8361_s26 + $0xb00] sm:$0xf]  ;;  %v7011_v39 = vor.u32 %v7841_v31, %v7010_v30  ;;  %3605 = vmatpush.bf16.msrb.mxu3 %v7299_v38  ;;  %v7541_v38 = vld [vmem:[%s8361_s26 + $0x3c4] sm:$0xf] }
  0xc0   : > { %v7777_v33 = vld [vmem:[%s8361_s26 + $0xb1c] sm:$0xf0] }
  0xc1   : > { %v6498_v35 = vld [vmem:[%s8361_s26 + $0x900] sm:$0xf]  ;;  %v6755_v43 = vor.u32 %v7777_v33, %v6754_v32  ;;  %3587 = vmatpush.bf16.msrb.mxu2 %v7011_v39  ;;  %v5828_v39 = vld [vmem:[%s8361_s26 + $0x3e0] sm:$0xf0] }
  0xc2   : > { %v7713_v36 = vld [vmem:[%s8361_s26 + $0x91c] sm:$0xf0]  ;;  %v5831_v54 = vor.u32 %v7541_v38, %v5828_v39  ;;  %v5476_v38 = vld [vmem:[%s8361_s26 + $0x120] sm:$0xf0] }
  0xc3   : > { %v7266_v37 = vld [vmem:[%s8361_s26 + $0xf00] sm:$0xf]  ;;  %v6499_v51 = vor.u32 %v7713_v36, %v6498_v35  ;;  %3568 = vmatpush.bf16.msrb.mxu1 %v6755_v43  ;;  %v6084_v35 = vld [vmem:[%s8361_s26 + $0x5e0] sm:$0xf0] }
  0xc4   : > { %v7905_v40 = vld [vmem:[%s8361_s26 + $0xf1c] sm:$0xf0] }
  0xc5   : > { %v5314_v41 = vld [vmem:[%s8500_s20 + $0x40] sm:$0xf]  ;;  %v7267_v55 = vor.u32 %v7905_v40, %v7266_v37  ;;  %3549 = vmatpush.bf16.msrb.mxu0 %v6499_v51  ;;  %v7477_v51 = vld [vmem:[%s8361_s26 + $0x1c4] sm:$0xf] }
  0xc6   : > { %v7417_v42 = vld [vmem:[%s8500_s20 + $0x5c] sm:$0xf0] }
  0xc7   : > { %v6978_v46 = vld [vmem:[%s8361_s26 + $0xcc0] sm:$0xf]  ;;  %v8559_v60 = vor.u32 %v7417_v42, %v5314_v41  ;;  %3606 = vmatpush.bf16.msrb.mxu3 %v7267_v55  ;;  %v6340_v55 = vld [vmem:[%s8361_s26 + $0x7e0] sm:$0xf0] }
  0xc8   : > { %v7833_v47 = vld [vmem:[%s8361_s26 + $0xcdc] sm:$0xf0] }
  0xc9   : > { %v6722_v49 = vld [vmem:[%s8361_s26 + $0xac0] sm:$0xf]  ;;  %v6979_v56 = vor.u32 %v7833_v47, %v6978_v46  ;;  %3483 = vmatmul.bf16.gmra.mxu0 %v8559_v60  ;;  %v5298_v46 = vld [vmem:[%s8500_s20 + $0x10] sm:$0xf] }
  0xca   : > { %v7769_v50 = vld [vmem:[%s8361_s26 + $0xadc] sm:$0xf0]  ;;  %v7411_v47 = vld [vmem:[%s8500_s20 + $0x2c] sm:$0xf0] }
  0xcb   : > { %v6466_v57 = vld [vmem:[%s8361_s26 + $0x8c0] sm:$0xf]  ;;  %v6723_v61 = vor.u32 %v7769_v50, %v6722_v49  ;;  %3588 = vmatpush.bf16.msrb.mxu2 %v6979_v56  ;;  %v5300_v49 = vld [vmem:[%s8500_s20 + $0x30] sm:$0xf0]  ;;  %v6087_v50 = vor.u32 %v7605_v34, %v6084_v35  ;;  %v7597_v56 = vld [vmem:[%s8361_s26 + $0x584] sm:$0xf] }
  0xcc   : > { %v7705_v58 = vld [vmem:[%s8361_s26 + $0x8dc] sm:$0xf0]  ;;  %v5988_v34 = vld [vmem:[%s8361_s26 + $0x520] sm:$0xf0] }
  0xcd   : > { %v7234_v59 = vld [vmem:[%s8361_s26 + $0xec0] sm:$0xf]  ;;  %v6467_v10 = vor.u32 %v7705_v58, %v6466_v57  ;;  %3569 = vmatpush.bf16.msrb.mxu1 %v6723_v61  ;;  %v6052_v57 = vld [vmem:[%s8361_s26 + $0x5a0] sm:$0xf0]  ;;  %v7412_v61 = vld [vmem:[%s8500_s20 + $0x34] sm:$0xf0] }
  0xce   : > { %v7897_v62 = vld [vmem:[%s8361_s26 + $0xedc] sm:$0xf0] }
  0xcf   : > { %v6946_v0 = vld [vmem:[%s8361_s26 + $0xc80] sm:$0xf]  ;;  %v7235_v11 = vor.u32 %v7897_v62, %v7234_v59  ;;  %3550 = vmatpush.bf16.msrb.mxu0 %v6467_v10  ;;  %v5306_v59 = vld [vmem:[%s8500_s20 + $0x18] sm:$0xf]  ;;  %v7408_v62 = vld [vmem:[%s8500_s20 + $0x1c] sm:$0xf] }
  0xd0   : > { %v7825_v1 = vld [vmem:[%s8361_s26 + $0xc9c] sm:$0xf0]  ;;  %v5540_v10 = vld [vmem:[%s8361_s26 + $0x1a0] sm:$0xf0] }
  0xd1   : > { %v6690_v6 = vld [vmem:[%s8361_s26 + $0xa80] sm:$0xf]  ;;  %v6947_v12 = vor.u32 %v7825_v1, %v6946_v0  ;;  %3607 = vmatpush.bf16.msrb.mxu3 %v7235_v11  ;;  %v5308_v1 = vld [vmem:[%s8500_s20 + $0x38] sm:$0xf0]  ;;  %v6343_v11 = vor.u32 %v7669_v53, %v6340_v55  ;;  %v7419_v53 = vld [vmem:[%s8500_s20 + $0x6c] sm:$0xf0] }
  0xd2   : > { %v7761_v7 = vld [vmem:[%s8361_s26 + $0xa9c] sm:$0xf0]  ;;  %v5332_v55 = vld [vmem:[%s8500_s20 + $0x70] sm:$0xf0] }
  0xd3   : > { %v6434_v13 = vld [vmem:[%s8361_s26 + $0x880] sm:$0xf]  ;;  %v6691_v16 = vor.u32 %v7761_v7, %v6690_v6  ;;  %3589 = vmatpush.bf16.msrb.mxu2 %v6947_v12  ;;  %v5575_v6 = vor.u32 %v7477_v51, %v5572_v52  ;;  %v7469_v7 = vld [vmem:[%s8361_s26 + $0x184] sm:$0xf]  ;;  %v6055_v12 = vor.u32 %v7597_v56, %v6052_v57  ;;  %v5330_v52 = vld [vmem:[%s8500_s20 + $0x50] sm:$0xf] }
  0xd4   : > { %v7697_v14 = vld [vmem:[%s8361_s26 + $0x89c] sm:$0xf0]  ;;  %v7509_v57 = vld [vmem:[%s8361_s26 + $0x2c4] sm:$0xf] }
  0xd5   : > { %v7202_v15 = vld [vmem:[%s8361_s26 + $0xe80] sm:$0xf]  ;;  %v6435_v22 = vor.u32 %v7697_v14, %v6434_v13  ;;  %3570 = vmatpush.bf16.msrb.mxu1 %v6691_v16  ;;  %v7533_v13 = vld [vmem:[%s8361_s26 + $0x384] sm:$0xf]  ;;  %v8619_v16 = vor.u32 %v7411_v47, %v5298_v46 }
  0xd6   : > { %v7889_v17 = vld [vmem:[%s8361_s26 + $0xe9c] sm:$0xf0]  ;;  %v5796_v14 = vld [vmem:[%s8361_s26 + $0x3a0] sm:$0xf0] }
  0xd7   : > { %v6914_v18 = vld [vmem:[%s8361_s26 + $0xc40] sm:$0xf]  ;;  %v7203_v24 = vor.u32 %v7889_v17, %v7202_v15  ;;  %3551 = vmatpush.bf16.msrb.mxu0 %v6435_v22  ;;  %v7661_v15 = vld [vmem:[%s8361_s26 + $0x784] sm:$0xf]  ;;  %v8621_v17 = vor.u32 %v7407_v48, %v5300_v49  ;;  %v8628_v22 = vor.u32 %v7408_v62, %v5308_v1  ;;  %v5338_v1 = vld [vmem:[%s8500_s20 + $0x58] sm:$0xf] }
  0xd8   : > { %v7817_v19 = vld [vmem:[%s8361_s26 + $0xc5c] sm:$0xf0]  ;;  %v5956_v46 = vld [vmem:[%s8361_s26 + $0x4e0] sm:$0xf0] }
  0xd9   : > { %v6658_v20 = vld [vmem:[%s8361_s26 + $0xa40] sm:$0xf]  ;;  %v6915_v25 = vor.u32 %v7817_v19, %v6914_v18  ;;  %3608 = vmatpush.bf16.msrb.mxu3 %v7203_v24  ;;  %v6308_v18 = vld [vmem:[%s8361_s26 + $0x7a0] sm:$0xf0]  ;;  %v5799_v24 = vor.u32 %v7533_v13, %v5796_v14 }
  0xda   : > { %v7753_v21 = vld [vmem:[%s8361_s26 + $0xa5c] sm:$0xf0]  ;;  %v7589_v19 = vld [vmem:[%s8361_s26 + $0x544] sm:$0xf] }
  0xdb   : > { %v6402_v23 = vld [vmem:[%s8361_s26 + $0x840] sm:$0xf]  ;;  %v6659_v29 = vor.u32 %v7753_v21, %v6658_v20  ;;  %3590 = vmatpush.bf16.msrb.mxu2 %v6915_v25  ;;  %v6020_v20 = vld [vmem:[%s8361_s26 + $0x560] sm:$0xf0]  ;;  %v8626_v21 = vor.u32 %v7412_v61, %v5306_v59 }
  0xdc   : > { %v7689_v26 = vld [vmem:[%s8361_s26 + $0x85c] sm:$0xf0]  ;;  %v7461_v25 = vld [vmem:[%s8361_s26 + $0x144] sm:$0xf] }
  0xdd   : > { %v7170_v27 = vld [vmem:[%s8361_s26 + $0xe40] sm:$0xf]  ;;  %v6403_v36 = vor.u32 %v7689_v26, %v6402_v23  ;;  %3571 = vmatpush.bf16.msrb.mxu1 %v6659_v29  ;;  %v5543_v23 = vor.u32 %v7469_v7, %v5540_v10  ;;  %v5508_v26 = vld [vmem:[%s8361_s26 + $0x160] sm:$0xf0]  ;;  %v7416_v7 = vld [vmem:[%s8500_s20 + $0x5c] sm:$0xf] }
  0xde   : > { %v7881_v28 = vld [vmem:[%s8361_s26 + $0xe5c] sm:$0xf0]  ;;  %v7525_v29 = vld [vmem:[%s8361_s26 + $0x344] sm:$0xf]  ;;  %v5511_v35 = vor.u32 %v7461_v25, %v5508_v26  ;;  %v5340_v10 = vld [vmem:[%s8500_s20 + $0x78] sm:$0xf0] }
  0xdf   : > { %v6882_v30 = vld [vmem:[%s8361_s26 + $0xc00] sm:$0xf]  ;;  %v7171_v40 = vor.u32 %v7881_v28, %v7170_v27  ;;  %3552 = vmatpush.bf16.msrb.mxu0 %v6403_v36  ;;  %v6311_v27 = vor.u32 %v7661_v15, %v6308_v18  ;;  %v6023_v28 = vor.u32 %v7589_v19, %v6020_v20  ;;  %v7445_v49 = vld [vmem:[%s8361_s26 + $0xc4] sm:$0xf] }
  0xe0   : > { %v7809_v31 = vld [vmem:[%s8361_s26 + $0xc1c] sm:$0xf0]  ;;  %v7637_v59 = vld [vmem:[%s8361_s26 + $0x6c4] sm:$0xf] }
  0xe1   : > { %v6626_v32 = vld [vmem:[%s8361_s26 + $0xa00] sm:$0xf]  ;;  %v6883_v41 = vor.u32 %v7809_v31, %v6882_v30  ;;  %3609 = vmatpush.bf16.msrb.mxu3 %v7171_v40  ;;  %v5764_v30 = vld [vmem:[%s8361_s26 + $0x360] sm:$0xf0] }
  0xe2   : > { %v7745_v33 = vld [vmem:[%s8361_s26 + $0xa1c] sm:$0xf0]  ;;  %v7653_v31 = vld [vmem:[%s8361_s26 + $0x744] sm:$0xf]  ;;  %v5767_v36 = vor.u32 %v7525_v29, %v5764_v30  ;;  %v8680_v30 = vor.u32 %v7416_v7, %v5340_v10 }
  0xe3   : > { %v6370_v37 = vld [vmem:[%s8361_s26 + $0x800] sm:$0xf]  ;;  %v6627_v45 = vor.u32 %v7745_v33, %v6626_v32  ;;  %3591 = vmatpush.bf16.msrb.mxu2 %v6883_v41  ;;  %v6276_v32 = vld [vmem:[%s8361_s26 + $0x760] sm:$0xf0] }
  0xe4   : > { %v7681_v42 = vld [vmem:[%s8361_s26 + $0x81c] sm:$0xf0]  ;;  %v7581_v33 = vld [vmem:[%s8361_s26 + $0x504] sm:$0xf]  ;;  %v6279_v39 = vor.u32 %v7653_v31, %v6276_v32 }
  0xe5   : > { %v7138_v43 = vld [vmem:[%s8361_s26 + $0xe00] sm:$0xf]  ;;  %v6371_v58 = vor.u32 %v7681_v42, %v6370_v37  ;;  %3572 = vmatpush.bf16.msrb.mxu1 %v6627_v45  ;;  %v7453_v37 = vld [vmem:[%s8361_s26 + $0x104] sm:$0xf]  ;;  %v5991_v40 = vor.u32 %v7581_v33, %v5988_v34 }
  0xe6   : > { %v7873_v44 = vld [vmem:[%s8361_s26 + $0xe1c] sm:$0xf0]  ;;  %3592 = vmatmul.bf16.vlgmr.msrb.gmra.mxu2 %v8626_v21  ;;  %v7517_v41 = vld [vmem:[%s8361_s26 + $0x304] sm:$0xf]  ;;  %v5479_v47 = vor.u32 %v7453_v37, %v5476_v38 }
  0xe7   : > { %v7139_v0 = vor.u32 %v7873_v44, %v7138_v43  ;;  %3660 = vmatpush.bf16.msra.mxu2 %v6087_v50  ;;  %3553 = vmatpush.bf16.msrb.mxu0 %v6371_v58  ;;  %v5732_v42 = vld [vmem:[%s8361_s26 + $0x320] sm:$0xf0] }
  0xe8   : > { %3573 = vmatmul.bf16.vlgmr.msrb.gmra.mxu1 %v8621_v17  ;;  %v7645_v43 = vld [vmem:[%s8361_s26 + $0x704] sm:$0xf]  ;;  %v5735_v48 = vor.u32 %v7517_v41, %v5732_v42 }
  0xe9   : > { %3641 = vmatpush.bf16.msra.mxu1 %v5831_v54  ;;  %3610 = vmatpush.bf16.msrb.mxu3 %v7139_v0  ;;  %v6244_v44 = vld [vmem:[%s8361_s26 + $0x720] sm:$0xf0]  ;;  %v7415_v54 = vld [vmem:[%s8500_s20 + $0x54] sm:$0xf] }
  0xea   : > { %3554 = vmatmul.bf16.vlgmr.msrb.gmra.mxu0 %v8619_v16  ;;  %v7573_v45 = vld [vmem:[%s8361_s26 + $0x4c4] sm:$0xf]  ;;  %v6247_v51 = vor.u32 %v7645_v43, %v6244_v44  ;;  %v8673_v25 = vor.u32 %v7415_v54, %v5332_v55 }
  0xeb   : > { %3622 = vmatpush.bf16.msra.mxu0 %v5575_v6  ;;  %3661 = vmatpush.bf16.msra.mxu2 %v6055_v12  ;;  %v5444_v50 = vld [vmem:[%s8361_s26 + $0xe0] sm:$0xf0]  ;;  %v5959_v56 = vor.u32 %v7573_v45, %v5956_v46  ;;  %v7420_v6 = vld [vmem:[%s8500_s20 + $0x74] sm:$0xf0] }
  0xec   : > { %3611 = vmatmul.bf16.vlgmr.msrb.gmra.mxu3 %v8628_v22  ;;  %v5700_v58 = vld [vmem:[%s8361_s26 + $0x2e0] sm:$0xf0]  ;;  %v8678_v29 = vor.u32 %v7420_v6, %v5338_v1 }
  0xed   : > { %3679 = vmatpush.bf16.msra.mxu3 %v6343_v11  ;;  %3642 = vmatpush.bf16.msra.mxu1 %v5799_v24  ;;  %v6212_v61 = vld [vmem:[%s8361_s26 + $0x6e0] sm:$0xf0]  ;;  %v5447_v11 = vor.u32 %v7445_v49, %v5444_v50  ;;  %v5703_v12 = vor.u32 %v7509_v57, %v5700_v58  ;;  %v8671_v24 = vor.u32 %v7419_v53, %v5330_v52 }
  0xee   : > { %v7565_v62 = vld [vmem:[%s8361_s26 + $0x484] sm:$0xf]  ;;  %v6215_v15 = vor.u32 %v7637_v59, %v6212_v61 }
  0xef   : > { %3623 = vmatpush.bf16.msra.mxu0 %v5543_v23  ;;  %3662 = vmatpush.bf16.msra.mxu2 %v6023_v28  ;;  %v5924_v0 = vld [vmem:[%s8361_s26 + $0x4a0] sm:$0xf0] }
  0xf0   : > { %v7437_v13 = vld [vmem:[%s8361_s26 + $0x84] sm:$0xf]  ;;  %v5927_v18 = vor.u32 %v7565_v62, %v5924_v0 }
  0xf1   : > { %3680 = vmatpush.bf16.msra.mxu3 %v6311_v27  ;;  %3643 = vmatpush.bf16.msra.mxu1 %v5767_v36  ;;  %v5412_v14 = vld [vmem:[%s8361_s26 + $0xa0] sm:$0xf0] }
  0xf2   : > { %v7501_v19 = vld [vmem:[%s8361_s26 + $0x284] sm:$0xf]  ;;  %v5415_v31 = vor.u32 %v7437_v13, %v5412_v14 }
  0xf3   : > { %3624 = vmatpush.bf16.msra.mxu0 %v5511_v35  ;;  %3663 = vmatpush.bf16.msra.mxu2 %v5991_v40  ;;  %v5668_v20 = vld [vmem:[%s8361_s26 + $0x2a0] sm:$0xf0] }
  0xf4   : > { %v7629_v23 = vld [vmem:[%s8361_s26 + $0x684] sm:$0xf]  ;;  %v5671_v32 = vor.u32 %v7501_v19, %v5668_v20 }
  0xf5   : > { %3681 = vmatpush.bf16.msra.mxu3 %v6279_v39  ;;  %3644 = vmatpush.bf16.msra.mxu1 %v5735_v48  ;;  %v6180_v26 = vld [vmem:[%s8361_s26 + $0x6a0] sm:$0xf0] }
  0xf6   : > { %v7557_v27 = vld [vmem:[%s8361_s26 + $0x444] sm:$0xf]  ;;  %v6183_v35 = vor.u32 %v7629_v23, %v6180_v26  ;;  %3597 = vmatmul.bf16.gmra.mxu2 %v8678_v29 }
  0xf7   : > { %3625 = vmatpush.bf16.msra.mxu0 %v5479_v47  ;;  %3664 = vmatpush.bf16.msra.mxu2 %v5959_v56  ;;  %v5892_v28 = vld [vmem:[%s8361_s26 + $0x460] sm:$0xf0] }
  0xf8   : > { %v7429_v33 = vld [vmem:[%s8361_s26 + $0x44] sm:$0xf]  ;;  %v5895_v36 = vor.u32 %v7557_v27, %v5892_v28  ;;  %3578 = vmatmul.bf16.gmra.mxu1 %v8673_v25 }
  0xf9   : > { %3682 = vmatpush.bf16.msra.mxu3 %v6247_v51  ;;  %3645 = vmatpush.bf16.msra.mxu1 %v5703_v12  ;;  %v5380_v34 = vld [vmem:[%s8361_s26 + $0x60] sm:$0xf0] }
  0xfa   : > { %v7493_v37 = vld [vmem:[%s8361_s26 + $0x244] sm:$0xf]  ;;  %3559 = vmatmul.bf16.gmra.mxu0 %v8671_v24  ;;  %v5383_v45 = vor.u32 %v7429_v33, %v5380_v34 }
  0xfb   : > { %3626 = vmatpush.bf16.msra.mxu0 %v5447_v11  ;;  %3665 = vmatpush.bf16.msra.mxu2 %v5927_v18  ;;  %v5636_v38 = vld [vmem:[%s8361_s26 + $0x260] sm:$0xf0] }
  0xfc   : > { %v7621_v39 = vld [vmem:[%s8361_s26 + $0x644] sm:$0xf]  ;;  %3616 = vmatmul.bf16.gmra.mxu3 %v8680_v30  ;;  %v5639_v46 = vor.u32 %v7493_v37, %v5636_v38 }
  0xfd   : > { %3683 = vmatpush.bf16.msra.mxu3 %v6215_v15  ;;  %v6148_v40 = vld [vmem:[%s8361_s26 + $0x660] sm:$0xf0]  ;;  %3646 = vmatpush.bf16.msra.mxu1 %v5671_v32 }
  0xfe   : > { %v7549_v41 = vld [vmem:[%s8361_s26 + $0x404] sm:$0xf]  ;;  %v6151_v50 = vor.u32 %v7621_v39, %v6148_v40 }
  0xff   : > { %v5860_v42 = vld [vmem:[%s8361_s26 + $0x420] sm:$0xf0]  ;;  %3627 = vmatpush.bf16.msra.mxu0 %v5415_v31  ;;  %3666 = vmatpush.bf16.msra.mxu2 %v5895_v36 }
 0x100   : > { %v7861_v43 = vld [vmem:[%s8361_s26 + $0xdc4] sm:$0xf]  ;;  %v5863_v51 = vor.u32 %v7549_v41, %v5860_v42 }
 0x101   : > { %v7108_v44 = vld [vmem:[%s8361_s26 + $0xde0] sm:$0xf0]  ;;  %3684 = vmatpush.bf16.msra.mxu3 %v6183_v35  ;;  %3647 = vmatpush.bf16.msra.mxu1 %v5639_v46 }
 0x102   : > { %v7421_v47 = vld [vmem:[%s8361_s26 + $0x4] sm:$0xf]  ;;  %v7111_v55 = vor.u32 %v7861_v43, %v7108_v44 }
 0x103   : > { %v5348_v48 = vld [vmem:[%s8361_s26 + $0x20] sm:$0xf0]  ;;  %3628 = vmatpush.bf16.msra.mxu0 %v5383_v45  ;;  %3667 = vmatpush.bf16.msra.mxu2 %v5863_v51 }
 0x104   : > { %v7485_v49 = vld [vmem:[%s8361_s26 + $0x204] sm:$0xf]  ;;  %v5351_v0 = vor.u32 %v7421_v47, %v5348_v48 }
 0x105   : > { %v5604_v52 = vld [vmem:[%s8361_s26 + $0x220] sm:$0xf0]  ;;  %3685 = vmatpush.bf16.msra.mxu3 %v6151_v50 }
 0x106   : > { %v7613_v53 = vld [vmem:[%s8361_s26 + $0x604] sm:$0xf]  ;;  %v5607_v1 = vor.u32 %v7485_v49, %v5604_v52  ;;  %3668 = vmatmul.bf16.vlgmr.msra.gmra.mxu2 %v8513_v5 }
 0x107   : > { %v6116_v54 = vld [vmem:[%s8361_s26 + $0x620] sm:$0xf0]  ;;  %3736 = vmatpush.bf16.msrb.mxu2 %v7111_v55  ;;  %3629 = vmatpush.bf16.msra.mxu0 %v5351_v0 }
 0x108   : > { %v7733_v56 = vld [vmem:[%s8361_s26 + $0x9c4] sm:$0xf]  ;;  %v6119_v10 = vor.u32 %v7613_v53, %v6116_v54  ;;  %3648 = vmatpush.bf16.msra.mxu1 %v5607_v1 }
 0x109   : > { %v6596_v57 = vld [vmem:[%s8361_s26 + $0x9e0] sm:$0xf0] }
 0x10a   : > { %v7797_v58 = vld [vmem:[%s8361_s26 + $0xbc4] sm:$0xf]  ;;  %v6599_v11 = vor.u32 %v7733_v56, %v6596_v57  ;;  %3686 = vmatpush.bf16.msra.mxu3 %v6119_v10  ;;  %3630 = vmatmul.bf16.vlgmr.msra.gmra.mxu0 %v8506_v63 }
 0x10b   : > { %v6852_v59 = vld [vmem:[%s8361_s26 + $0xbe0] sm:$0xf0]  ;;  %3649 = vmatmul.bf16.vlgmr.msra.gmra.mxu1 %v8511_v4 }
 0x10c   : > { %v7925_v61 = vld [vmem:[%s8361_s26 + $0xfc4] sm:$0xf]  ;;  %v6855_v12 = vor.u32 %v7797_v58, %v6852_v59  ;;  %3698 = vmatpush.bf16.msrb.mxu0 %v6599_v11 }
 0x10d   : > { %v7364_v62 = vld [vmem:[%s8361_s26 + $0xfe0] sm:$0xf0]  ;;  %3687 = vmatmul.bf16.vlgmr.msra.gmra.mxu3 %v8518_v9 }
 0x10e   : > { %v7853_v6 = vld [vmem:[%s8361_s26 + $0xd84] sm:$0xf]  ;;  %v7367_v13 = vor.u32 %v7925_v61, %v7364_v62  ;;  %3717 = vmatpush.bf16.msrb.mxu1 %v6855_v12 }
 0x10f   : > { %v7076_v7 = vld [vmem:[%s8361_s26 + $0xda0] sm:$0xf0] }
 0x110   : > { %v7725_v14 = vld [vmem:[%s8361_s26 + $0x984] sm:$0xf]  ;;  %v7079_v18 = vor.u32 %v7853_v6, %v7076_v7  ;;  %3755 = vmatpush.bf16.msrb.mxu3 %v7367_v13 }
 0x111   : > { %v6564_v15 = vld [vmem:[%s8361_s26 + $0x9a0] sm:$0xf0] }
 0x112   : > { %v7789_v19 = vld [vmem:[%s8361_s26 + $0xb84] sm:$0xf]  ;;  %v6567_v23 = vor.u32 %v7725_v14, %v6564_v15  ;;  %3737 = vmatpush.bf16.msrb.mxu2 %v7079_v18 }
 0x113   : > { %v6820_v20 = vld [vmem:[%s8361_s26 + $0xba0] sm:$0xf0] }
 0x114   : > { %v7917_v26 = vld [vmem:[%s8361_s26 + $0xf84] sm:$0xf]  ;;  %v6823_v34 = vor.u32 %v7789_v19, %v6820_v20  ;;  %3699 = vmatpush.bf16.msrb.mxu0 %v6567_v23 }
 0x115   : > { %v7332_v27 = vld [vmem:[%s8361_s26 + $0xfa0] sm:$0xf0] }
 0x116   : > { %v7845_v28 = vld [vmem:[%s8361_s26 + $0xd44] sm:$0xf]  ;;  %v7335_v35 = vor.u32 %v7917_v26, %v7332_v27  ;;  %3718 = vmatpush.bf16.msrb.mxu1 %v6823_v34  ;;  %3673 = vmatmul.bf16.gmra.mxu2 %v8566_v3 }
 0x117   : > { %v7044_v31 = vld [vmem:[%s8361_s26 + $0xd60] sm:$0xf0] }
 0x118   : > { %v7717_v32 = vld [vmem:[%s8361_s26 + $0x944] sm:$0xf]  ;;  %v7047_v38 = vor.u32 %v7845_v28, %v7044_v31  ;;  %3756 = vmatpush.bf16.msrb.mxu3 %v7335_v35 }
 0x119   : > { %v6532_v33 = vld [vmem:[%s8361_s26 + $0x960] sm:$0xf0] }
 0x11a   : > { %v7781_v36 = vld [vmem:[%s8361_s26 + $0xb44] sm:$0xf]  ;;  %v6535_v39 = vor.u32 %v7717_v32, %v6532_v33  ;;  %3738 = vmatpush.bf16.msrb.mxu2 %v7047_v38  ;;  %3635 = vmatmul.bf16.gmra.mxu0 %v8559_v60 }
 0x11b   : > { %v6788_v37 = vld [vmem:[%s8361_s26 + $0xb60] sm:$0xf0]  ;;  %3654 = vmatmul.bf16.gmra.mxu1 %v8564_v2 }
 0x11c   : > { %v7909_v40 = vld [vmem:[%s8361_s26 + $0xf44] sm:$0xf]  ;;  %v6791_v46 = vor.u32 %v7781_v36, %v6788_v37  ;;  %3700 = vmatpush.bf16.msrb.mxu0 %v6535_v39 }
 0x11d   : > { %v7300_v41 = vld [vmem:[%s8361_s26 + $0xf60] sm:$0xf0]  ;;  %3692 = vmatmul.bf16.gmra.mxu3 %v8570_v8 }
 0x11e   : > { %v7837_v42 = vld [vmem:[%s8361_s26 + $0xd04] sm:$0xf]  ;;  %v7303_v47 = vor.u32 %v7909_v40, %v7300_v41  ;;  %3719 = vmatpush.bf16.msrb.mxu1 %v6791_v46  ;;  %v6090_v46 = vld [vmem:[%s8361_s26 + $0x5c8] sm:$0xf] }
 0x11f   : > { %v7012_v43 = vld [vmem:[%s8361_s26 + $0xd20] sm:$0xf0] }
 0x120   : > { %v7709_v44 = vld [vmem:[%s8361_s26 + $0x904] sm:$0xf]  ;;  %v7015_v50 = vor.u32 %v7837_v42, %v7012_v43  ;;  %3757 = vmatpush.bf16.msrb.mxu3 %v7303_v47  ;;  %v7610_v47 = vld [vmem:[%s8361_s26 + $0x5e4] sm:$0xf0] }
 0x121   : > { %v6500_v45 = vld [vmem:[%s8361_s26 + $0x920] sm:$0xf0] }
 0x122   : > { %v7773_v48 = vld [vmem:[%s8361_s26 + $0xb04] sm:$0xf]  ;;  %v6503_v51 = vor.u32 %v7709_v44, %v6500_v45  ;;  %3739 = vmatpush.bf16.msrb.mxu2 %v7015_v50 }
 0x123   : > { %v6756_v49 = vld [vmem:[%s8361_s26 + $0xb20] sm:$0xf0] }
 0x124   : > { %v7901_v52 = vld [vmem:[%s8361_s26 + $0xf04] sm:$0xf]  ;;  %v6759_v58 = vor.u32 %v7773_v48, %v6756_v49  ;;  %3701 = vmatpush.bf16.msrb.mxu0 %v6503_v51  ;;  %v5578_v48 = vld [vmem:[%s8361_s26 + $0x1c8] sm:$0xf] }
 0x125   : > { %v7268_v53 = vld [vmem:[%s8361_s26 + $0xf20] sm:$0xf0]  ;;  %v7482_v49 = vld [vmem:[%s8361_s26 + $0x1e4] sm:$0xf0] }
 0x126   : > { %v7829_v54 = vld [vmem:[%s8361_s26 + $0xcc4] sm:$0xf]  ;;  %v7271_v59 = vor.u32 %v7901_v52, %v7268_v53  ;;  %3720 = vmatpush.bf16.msrb.mxu1 %v6759_v58  ;;  %v5834_v58 = vld [vmem:[%s8361_s26 + $0x3c8] sm:$0xf] }
 0x127   : > { %v6980_v55 = vld [vmem:[%s8361_s26 + $0xce0] sm:$0xf0] }
 0x128   : > { %v7701_v56 = vld [vmem:[%s8361_s26 + $0x8c4] sm:$0xf]  ;;  %v6983_v0 = vor.u32 %v7829_v54, %v6980_v55  ;;  %3758 = vmatpush.bf16.msrb.mxu3 %v7271_v59  ;;  %v7546_v59 = vld [vmem:[%s8361_s26 + $0x3e4] sm:$0xf0] }
 0x129   : > { %v6468_v57 = vld [vmem:[%s8361_s26 + $0x8e0] sm:$0xf0] }
 0x12a   : > { %v7765_v61 = vld [vmem:[%s8361_s26 + $0xac4] sm:$0xf]  ;;  %v6471_v1 = vor.u32 %v7701_v56, %v6468_v57  ;;  %3740 = vmatpush.bf16.msrb.mxu2 %v6983_v0  ;;  %v6346_v0 = vld [vmem:[%s8361_s26 + $0x7c8] sm:$0xf] }
 0x12b   : > { %v6724_v62 = vld [vmem:[%s8361_s26 + $0xae0] sm:$0xf0] }
 0x12c   : > { %v7893_v6 = vld [vmem:[%s8361_s26 + $0xec4] sm:$0xf]  ;;  %v6727_v14 = vor.u32 %v7765_v61, %v6724_v62  ;;  %3702 = vmatpush.bf16.msrb.mxu0 %v6471_v1  ;;  %v6091_v61 = vor.u32 %v7610_v47, %v6090_v46  ;;  %v5579_v62 = vor.u32 %v7482_v49, %v5578_v48  ;;  %v7674_v1 = vld [vmem:[%s8361_s26 + $0x7e4] sm:$0xf0] }
 0x12d   : > { %v7236_v7 = vld [vmem:[%s8361_s26 + $0xee0] sm:$0xf0]  ;;  %v5482_v46 = vld [vmem:[%s8361_s26 + $0x108] sm:$0xf] }
 0x12e   : > { %v7821_v10 = vld [vmem:[%s8361_s26 + $0xc84] sm:$0xf]  ;;  %v7239_v15 = vor.u32 %v7893_v6, %v7236_v7  ;;  %3721 = vmatpush.bf16.msrb.mxu1 %v6727_v14  ;;  %v6058_v6 = vld [vmem:[%s8361_s26 + $0x588] sm:$0xf]  ;;  %v5835_v14 = vor.u32 %v7546_v59, %v5834_v58 }
 0x12f   : > { %v6948_v11 = vld [vmem:[%s8361_s26 + $0xca0] sm:$0xf0]  ;;  %v7602_v7 = vld [vmem:[%s8361_s26 + $0x5a4] sm:$0xf0] }
 0x130   : > { %v7693_v12 = vld [vmem:[%s8361_s26 + $0x884] sm:$0xf]  ;;  %v6951_v20 = vor.u32 %v7821_v10, %v6948_v11  ;;  %3759 = vmatpush.bf16.msrb.mxu3 %v7239_v15  ;;  %v5546_v10 = vld [vmem:[%s8361_s26 + $0x188] sm:$0xf]  ;;  %v6347_v15 = vor.u32 %v7674_v1, %v6346_v0 }
 0x131   : > { %v6436_v13 = vld [vmem:[%s8361_s26 + $0x8a0] sm:$0xf0]  ;;  %v7474_v11 = vld [vmem:[%s8361_s26 + $0x1a4] sm:$0xf0] }
 0x132   : > { %v7757_v18 = vld [vmem:[%s8361_s26 + $0xa84] sm:$0xf]  ;;  %v6439_v23 = vor.u32 %v7693_v12, %v6436_v13  ;;  %3741 = vmatpush.bf16.msrb.mxu2 %v6951_v20  ;;  %v5547_v20 = vor.u32 %v7474_v11, %v5546_v10  ;;  %v7458_v47 = vld [vmem:[%s8361_s26 + $0x124] sm:$0xf0] }
 0x133   : > { %v6692_v19 = vld [vmem:[%s8361_s26 + $0xaa0] sm:$0xf0]  ;;  %v5738_v48 = vld [vmem:[%s8361_s26 + $0x308] sm:$0xf] }
 0x134   : > { %v7885_v26 = vld [vmem:[%s8361_s26 + $0xe84] sm:$0xf]  ;;  %v6695_v34 = vor.u32 %v7757_v18, %v6692_v19  ;;  %3703 = vmatpush.bf16.msrb.mxu0 %v6439_v23  ;;  %v5802_v18 = vld [vmem:[%s8361_s26 + $0x388] sm:$0xf]  ;;  %v6059_v19 = vor.u32 %v7602_v7, %v6058_v6 }
 0x135   : > { %v7204_v27 = vld [vmem:[%s8361_s26 + $0xea0] sm:$0xf0]  ;;  %v7538_v23 = vld [vmem:[%s8361_s26 + $0x3a4] sm:$0xf0] }
 0x136   : > { %v7813_v28 = vld [vmem:[%s8361_s26 + $0xc44] sm:$0xf]  ;;  %v7207_v35 = vor.u32 %v7885_v26, %v7204_v27  ;;  %3722 = vmatpush.bf16.msrb.mxu1 %v6695_v34  ;;  %v6314_v26 = vld [vmem:[%s8361_s26 + $0x788] sm:$0xf] }
 0x137   : > { %v6916_v31 = vld [vmem:[%s8361_s26 + $0xc60] sm:$0xf0]  ;;  %v7666_v27 = vld [vmem:[%s8361_s26 + $0x7a4] sm:$0xf0] }
 0x138   : > { %v7685_v32 = vld [vmem:[%s8361_s26 + $0x844] sm:$0xf]  ;;  %v6919_v39 = vor.u32 %v7813_v28, %v6916_v31  ;;  %3760 = vmatpush.bf16.msrb.mxu3 %v7207_v35  ;;  %v6026_v28 = vld [vmem:[%s8361_s26 + $0x548] sm:$0xf] }
 0x139   : > { %v6404_v33 = vld [vmem:[%s8361_s26 + $0x860] sm:$0xf0]  ;;  %v7594_v31 = vld [vmem:[%s8361_s26 + $0x564] sm:$0xf0] }
 0x13a   : > { %v7749_v36 = vld [vmem:[%s8361_s26 + $0xa44] sm:$0xf]  ;;  %v6407_v40 = vor.u32 %v7685_v32, %v6404_v33  ;;  %3742 = vmatpush.bf16.msrb.mxu2 %v6919_v39  ;;  %v5803_v32 = vor.u32 %v7538_v23, %v5802_v18  ;;  %v6315_v33 = vor.u32 %v7666_v27, %v6314_v26  ;;  %v5514_v34 = vld [vmem:[%s8361_s26 + $0x148] sm:$0xf] }
 0x13b   : > { %v6660_v37 = vld [vmem:[%s8361_s26 + $0xa60] sm:$0xf0]  ;;  %v7466_v35 = vld [vmem:[%s8361_s26 + $0x164] sm:$0xf0] }
 0x13c   : > { %v7877_v38 = vld [vmem:[%s8361_s26 + $0xe44] sm:$0xf]  ;;  %v6663_v50 = vor.u32 %v7749_v36, %v6660_v37  ;;  %3704 = vmatpush.bf16.msrb.mxu0 %v6407_v40  ;;  %v5770_v36 = vld [vmem:[%s8361_s26 + $0x348] sm:$0xf]  ;;  %v6027_v40 = vor.u32 %v7594_v31, %v6026_v28 }
 0x13d   : > { %v7172_v41 = vld [vmem:[%s8361_s26 + $0xe60] sm:$0xf0]  ;;  %v7530_v37 = vld [vmem:[%s8361_s26 + $0x364] sm:$0xf0] }
 0x13e   : > { %v7805_v42 = vld [vmem:[%s8361_s26 + $0xc04] sm:$0xf]  ;;  %v7175_v51 = vor.u32 %v7877_v38, %v7172_v41  ;;  %3723 = vmatpush.bf16.msrb.mxu1 %v6663_v50  ;;  %v6282_v38 = vld [vmem:[%s8361_s26 + $0x748] sm:$0xf]  ;;  %v5515_v41 = vor.u32 %v7466_v35, %v5514_v34 }
 0x13f   : > { %v6884_v43 = vld [vmem:[%s8361_s26 + $0xc20] sm:$0xf0]  ;;  %v7658_v39 = vld [vmem:[%s8361_s26 + $0x764] sm:$0xf0] }
 0x140   : > { %v7677_v44 = vld [vmem:[%s8361_s26 + $0x804] sm:$0xf]  ;;  %v6887_v55 = vor.u32 %v7805_v42, %v6884_v43  ;;  %3761 = vmatpush.bf16.msrb.mxu3 %v7175_v51  ;;  %v5994_v42 = vld [vmem:[%s8361_s26 + $0x508] sm:$0xf] }
 0x141   : > { %v6372_v45 = vld [vmem:[%s8361_s26 + $0x820] sm:$0xf0]  ;;  %v7586_v43 = vld [vmem:[%s8361_s26 + $0x524] sm:$0xf0] }
 0x142   : > { %v7741_v52 = vld [vmem:[%s8361_s26 + $0xa04] sm:$0xf]  ;;  %v6375_v56 = vor.u32 %v7677_v44, %v6372_v45  ;;  %3743 = vmatpush.bf16.msrb.mxu2 %v6887_v55  ;;  %v5771_v44 = vor.u32 %v7530_v37, %v5770_v36  ;;  %v6283_v45 = vor.u32 %v7658_v39, %v6282_v38  ;;  %v7522_v49 = vld [vmem:[%s8361_s26 + $0x324] sm:$0xf0] }
 0x143   : > { %v6628_v53 = vld [vmem:[%s8361_s26 + $0xa20] sm:$0xf0]  ;;  %v6250_v50 = vld [vmem:[%s8361_s26 + $0x708] sm:$0xf] }
 0x144   : > { %v7869_v54 = vld [vmem:[%s8361_s26 + $0xe04] sm:$0xf]  ;;  %v6631_v12 = vor.u32 %v7741_v52, %v6628_v53  ;;  %3705 = vmatpush.bf16.msrb.mxu0 %v6375_v56  ;;  %v7650_v51 = vld [vmem:[%s8361_s26 + $0x724] sm:$0xf0]  ;;  %v5995_v52 = vor.u32 %v7586_v43, %v5994_v42  ;;  %v5483_v53 = vor.u32 %v7458_v47, %v5482_v46  ;;  %v5739_v56 = vor.u32 %v7522_v49, %v5738_v48 }
 0x145   : > { %v7140_v57 = vld [vmem:[%s8361_s26 + $0xe20] sm:$0xf0]  ;;  %3744 = vmatmul.bf16.vlgmr.msrb.gmra.mxu2 %v8626_v21  ;;  %v7578_v55 = vld [vmem:[%s8361_s26 + $0x4e4] sm:$0xf0] }
 0x146   : > { %v7143_v13 = vor.u32 %v7869_v54, %v7140_v57  ;;  %3812 = vmatpush.bf16.msra.mxu2 %v6091_v61  ;;  %3724 = vmatpush.bf16.msrb.mxu1 %v6631_v12  ;;  %v5962_v54 = vld [vmem:[%s8361_s26 + $0x4c8] sm:$0xf]  ;;  %v6251_v57 = vor.u32 %v7650_v51, %v6250_v50 }
 0x147   : > { %3706 = vmatmul.bf16.vlgmr.msrb.gmra.mxu0 %v8619_v16  ;;  %v5450_v58 = vld [vmem:[%s8361_s26 + $0xc8] sm:$0xf]  ;;  %v5963_v6 = vor.u32 %v7578_v55, %v5962_v54 }
 0x148   : > { %3774 = vmatpush.bf16.msra.mxu0 %v5579_v62  ;;  %3762 = vmatpush.bf16.msrb.mxu3 %v7143_v13  ;;  %v7450_v59 = vld [vmem:[%s8361_s26 + $0xe4] sm:$0xf0] }
 0x149   : > { %3725 = vmatmul.bf16.vlgmr.msrb.gmra.mxu1 %v8621_v17  ;;  %v5706_v61 = vld [vmem:[%s8361_s26 + $0x2c8] sm:$0xf]  ;;  %v5451_v7 = vor.u32 %v7450_v59, %v5450_v58 }
 0x14a   : > { %3793 = vmatpush.bf16.msra.mxu1 %v5835_v14  ;;  %3813 = vmatpush.bf16.msra.mxu2 %v6059_v19  ;;  %v7514_v62 = vld [vmem:[%s8361_s26 + $0x2e4] sm:$0xf0] }
 0x14b   : > { %3763 = vmatmul.bf16.vlgmr.msrb.gmra.mxu3 %v8628_v22  ;;  %v6218_v0 = vld [vmem:[%s8361_s26 + $0x6c8] sm:$0xf]  ;;  %v5707_v12 = vor.u32 %v7514_v62, %v5706_v61 }
 0x14c   : > { %3831 = vmatpush.bf16.msra.mxu3 %v6347_v15  ;;  %3775 = vmatpush.bf16.msra.mxu0 %v5547_v20  ;;  %v7642_v1 = vld [vmem:[%s8361_s26 + $0x6e4] sm:$0xf0] }
 0x14d   : > { %v5930_v10 = vld [vmem:[%s8361_s26 + $0x488] sm:$0xf]  ;;  %v6219_v13 = vor.u32 %v7642_v1, %v6218_v0 }
 0x14e   : > { %3794 = vmatpush.bf16.msra.mxu1 %v5803_v32  ;;  %3814 = vmatpush.bf16.msra.mxu2 %v6027_v40  ;;  %v7570_v11 = vld [vmem:[%s8361_s26 + $0x4a4] sm:$0xf0] }
 0x14f   : > { %v5418_v14 = vld [vmem:[%s8361_s26 + $0x88] sm:$0xf]  ;;  %v5931_v26 = vor.u32 %v7570_v11, %v5930_v10 }
 0x150   : > { %3832 = vmatpush.bf16.msra.mxu3 %v6315_v33  ;;  %3776 = vmatpush.bf16.msra.mxu0 %v5515_v41  ;;  %v7442_v15 = vld [vmem:[%s8361_s26 + $0xa4] sm:$0xf0] }
 0x151   : > { %v5674_v18 = vld [vmem:[%s8361_s26 + $0x288] sm:$0xf]  ;;  %v5419_v27 = vor.u32 %v7442_v15, %v5418_v14 }
 0x152   : > { %3795 = vmatpush.bf16.msra.mxu1 %v5771_v44  ;;  %3815 = vmatpush.bf16.msra.mxu2 %v5995_v52  ;;  %v7506_v19 = vld [vmem:[%s8361_s26 + $0x2a4] sm:$0xf0] }
 0x153   : > { %v6186_v20 = vld [vmem:[%s8361_s26 + $0x688] sm:$0xf]  ;;  %v5675_v32 = vor.u32 %v7506_v19, %v5674_v18 }
 0x154   : > { %3833 = vmatpush.bf16.msra.mxu3 %v6283_v45  ;;  %3777 = vmatpush.bf16.msra.mxu0 %v5483_v53  ;;  %v7634_v23 = vld [vmem:[%s8361_s26 + $0x6a4] sm:$0xf0] }
 0x155   : > { %v5898_v28 = vld [vmem:[%s8361_s26 + $0x448] sm:$0xf]  ;;  %v6187_v33 = vor.u32 %v7634_v23, %v6186_v20  ;;  %3749 = vmatmul.bf16.gmra.mxu2 %v8678_v29 }
 0x156   : > { %3796 = vmatpush.bf16.msra.mxu1 %v5739_v56  ;;  %3816 = vmatpush.bf16.msra.mxu2 %v5963_v6  ;;  %v7562_v31 = vld [vmem:[%s8361_s26 + $0x464] sm:$0xf0] }
 0x157   : > { %v5386_v34 = vld [vmem:[%s8361_s26 + $0x48] sm:$0xf]  ;;  %v5899_v41 = vor.u32 %v7562_v31, %v5898_v28  ;;  %3711 = vmatmul.bf16.gmra.mxu0 %v8671_v24 }
 0x158   : > { %3834 = vmatpush.bf16.msra.mxu3 %v6251_v57  ;;  %3778 = vmatpush.bf16.msra.mxu0 %v5451_v7  ;;  %v7434_v35 = vld [vmem:[%s8361_s26 + $0x64] sm:$0xf0] }
 0x159   : > { %v5642_v36 = vld [vmem:[%s8361_s26 + $0x248] sm:$0xf]  ;;  %v5387_v42 = vor.u32 %v7434_v35, %v5386_v34  ;;  %3730 = vmatmul.bf16.gmra.mxu1 %v8673_v25 }
 0x15a   : > { %3797 = vmatpush.bf16.msra.mxu1 %v5707_v12  ;;  %v7498_v37 = vld [vmem:[%s8361_s26 + $0x264] sm:$0xf0]  ;;  %3817 = vmatpush.bf16.msra.mxu2 %v5931_v26 }
 0x15b   : > { %v6154_v38 = vld [vmem:[%s8361_s26 + $0x648] sm:$0xf]  ;;  %v5643_v46 = vor.u32 %v7498_v37, %v5642_v36  ;;  %3768 = vmatmul.bf16.gmra.mxu3 %v8680_v30  ;;  %v3479_v37 = vpop.f32.mrf.mxu0 }
 0x15c   : > { %3835 = vmatpush.bf16.msra.mxu3 %v6219_v13  ;;  %v7626_v39 = vld [vmem:[%s8361_s26 + $0x664] sm:$0xf0]  ;;  %3779 = vmatpush.bf16.msra.mxu0 %v5419_v27 }
 0x15d   : > { %v5866_v40 = vld [vmem:[%s8361_s26 + $0x408] sm:$0xf]  ;;  %v6155_v47 = vor.u32 %v7626_v39, %v6154_v38 }
 0x15e   : > { %v7554_v43 = vld [vmem:[%s8361_s26 + $0x424] sm:$0xf0]  ;;  %3798 = vmatpush.bf16.msra.mxu1 %v5675_v32  ;;  %3818 = vmatpush.bf16.msra.mxu2 %v5899_v41  ;;  %v3498_v41 = vpop.f32.mrf.mxu1 }
 0x15f   : > { %v5354_v44 = vld [vmem:[%s8361_s26 + $0x8] sm:$0xf]  ;;  %v5867_v57 = vor.u32 %v7554_v43, %v5866_v40 }
 0x160   : > { %v7426_v45 = vld [vmem:[%s8361_s26 + $0x24] sm:$0xf0]  ;;  %3836 = vmatpush.bf16.msra.mxu3 %v6187_v33  ;;  %3780 = vmatpush.bf16.msra.mxu0 %v5387_v42  ;;  %v3499_v42 = vadd.f32 %v3498_v41, %v3479_v37 }
 0x161   : > { %v5610_v48 = vld [vmem:[%s8361_s26 + $0x208] sm:$0xf]  ;;  %v5355_v58 = vor.u32 %v7426_v45, %v5354_v44 }
 0x162   : > { %v7490_v49 = vld [vmem:[%s8361_s26 + $0x224] sm:$0xf0]  ;;  %3799 = vmatpush.bf16.msra.mxu1 %v5643_v46  ;;  %3819 = vmatpush.bf16.msra.mxu2 %v5867_v57 }
 0x163   : > { %v6122_v50 = vld [vmem:[%s8361_s26 + $0x608] sm:$0xf]  ;;  %v5611_v0 = vor.u32 %v7490_v49, %v5610_v48 }
 0x164   : > { %v7618_v51 = vld [vmem:[%s8361_s26 + $0x624] sm:$0xf0]  ;;  %3837 = vmatpush.bf16.msra.mxu3 %v6155_v47  ;;  %3781 = vmatpush.bf16.msra.mxu0 %v5355_v58 }
 0x165   : > { %v7114_v52 = vld [vmem:[%s8361_s26 + $0xdc8] sm:$0xf]  ;;  %v6123_v1 = vor.u32 %v7618_v51, %v6122_v50  ;;  %3820 = vmatmul.bf16.vlgmr.msra.gmra.mxu2 %v8513_v5 }
 0x166   : > { %v7866_v53 = vld [vmem:[%s8361_s26 + $0xde4] sm:$0xf0]  ;;  %3800 = vmatpush.bf16.msra.mxu1 %v5611_v0 }
 0x167   : > { %v6602_v54 = vld [vmem:[%s8361_s26 + $0x9c8] sm:$0xf]  ;;  %v7115_v6 = vor.u32 %v7866_v53, %v7114_v52  ;;  %3782 = vmatmul.bf16.vlgmr.msra.gmra.mxu0 %v8506_v63 }
 0x168   : > { %v7738_v55 = vld [vmem:[%s8361_s26 + $0x9e4] sm:$0xf0]  ;;  %3838 = vmatpush.bf16.msra.mxu3 %v6123_v1 }
 0x169   : > { %v6858_v56 = vld [vmem:[%s8361_s26 + $0xbc8] sm:$0xf]  ;;  %v6603_v7 = vor.u32 %v7738_v55, %v6602_v54  ;;  %3888 = vmatpush.bf16.msrb.mxu2 %v7115_v6  ;;  %3801 = vmatmul.bf16.vlgmr.msra.gmra.mxu1 %v8511_v4 }
 0x16a   : > { %v7802_v59 = vld [vmem:[%s8361_s26 + $0xbe4] sm:$0xf0] }
 0x16b   : > { %v7370_v61 = vld [vmem:[%s8361_s26 + $0xfc8] sm:$0xf]  ;;  %v6859_v12 = vor.u32 %v7802_v59, %v6858_v56  ;;  %3850 = vmatpush.bf16.msrb.mxu0 %v6603_v7  ;;  %3839 = vmatmul.bf16.vlgmr.msra.gmra.mxu3 %v8518_v9  ;;  %v3517_v59 = vpop.f32.mrf.mxu2 }
 0x16c   : > { %v7930_v62 = vld [vmem:[%s8361_s26 + $0xfe4] sm:$0xf0]  ;;  %v3518_v7 = vadd.f32 %v3517_v59, %v3499_v42 }
 0x16d   : > { %v7082_v10 = vld [vmem:[%s8361_s26 + $0xd88] sm:$0xf]  ;;  %v7371_v13 = vor.u32 %v7930_v62, %v7370_v61  ;;  %3869 = vmatpush.bf16.msrb.mxu1 %v6859_v12 }
 0x16e   : > { %v7858_v11 = vld [vmem:[%s8361_s26 + $0xda4] sm:$0xf0] }
 0x16f   : > { %v6570_v14 = vld [vmem:[%s8361_s26 + $0x988] sm:$0xf]  ;;  %v7083_v26 = vor.u32 %v7858_v11, %v7082_v10  ;;  %3907 = vmatpush.bf16.msrb.mxu3 %v7371_v13  ;;  %v3536_v10 = vpop.f32.mrf.mxu3  ;;  %v3481_v11 = vpop.f32.mrf.mxu0 }
 0x170   : > { %v7730_v15 = vld [vmem:[%s8361_s26 + $0x9a4] sm:$0xf0] }
 0x171   : > { %v6826_v18 = vld [vmem:[%s8361_s26 + $0xb88] sm:$0xf]  ;;  %v6571_v27 = vor.u32 %v7730_v15, %v6570_v14  ;;  %3889 = vmatpush.bf16.msrb.mxu2 %v7083_v26  ;;  %v3500_v15 = vpop.f32.mrf.mxu1 }
 0x172   : > { %v7794_v19 = vld [vmem:[%s8361_s26 + $0xba4] sm:$0xf0] }
 0x173   : > { %v7338_v20 = vld [vmem:[%s8361_s26 + $0xf88] sm:$0xf]  ;;  %v6827_v28 = vor.u32 %v7794_v19, %v6826_v18  ;;  %3851 = vmatpush.bf16.msrb.mxu0 %v6571_v27  ;;  %v8888_v19 = vadd.f32 %v3536_v10, %v3518_v7  ;;  %v3519_v42 = vpop.f32.mrf.mxu2 }
 0x174   : > { %v7922_v23 = vld [vmem:[%s8361_s26 + $0xfa4] sm:$0xf0] }
 0x175   : > { %v7339_v31 = vor.u32 %v7922_v23, %v7338_v20  ;;  %v7050_v32 = vld [vmem:[%s8361_s26 + $0xd48] sm:$0xf]  ;;  %3870 = vmatpush.bf16.msrb.mxu1 %v6827_v28  ;;  %v3501_v20 = vadd.f32 %v3500_v15, %v3481_v11  ;;  %3825 = vmatmul.bf16.gmra.mxu2 %v8566_v3  ;;  %v7478_v15 = vld [vmem:[%s8361_s26 + $0x1cc] sm:$0xf] }
 0x176   : > { %v7850_v33 = vld [vmem:[%s8361_s26 + $0xd64] sm:$0xf0] }
 0x177   : > { %v6538_v34 = vld [vmem:[%s8361_s26 + $0x948] sm:$0xf]  ;;  %3908 = vmatpush.bf16.msrb.mxu3 %v7339_v31  ;;  %v7051_v43 = vor.u32 %v7850_v33, %v7050_v32  ;;  %3787 = vmatmul.bf16.gmra.mxu0 %v8559_v60 }
 0x178   : > { %v7722_v35 = vld [vmem:[%s8361_s26 + $0x964] sm:$0xf0] }
 0x179   : > { %v6794_v36 = vld [vmem:[%s8361_s26 + $0xb48] sm:$0xf]  ;;  %v6539_v44 = vor.u32 %v7722_v35, %v6538_v34  ;;  %3890 = vmatpush.bf16.msrb.mxu2 %v7051_v43  ;;  %3806 = vmatmul.bf16.gmra.mxu1 %v8564_v2 }
 0x17a   : > { %v7786_v38 = vld [vmem:[%s8361_s26 + $0xb64] sm:$0xf0] }
 0x17b   : > { %v7306_v39 = vld [vmem:[%s8361_s26 + $0xf48] sm:$0xf]  ;;  %v6795_v47 = vor.u32 %v7786_v38, %v6794_v36  ;;  %3852 = vmatpush.bf16.msrb.mxu0 %v6539_v44  ;;  %3844 = vmatmul.bf16.gmra.mxu3 %v8570_v8 }
 0x17c   : > { %v7914_v40 = vld [vmem:[%s8361_s26 + $0xf64] sm:$0xf0] }
 0x17d   : > { %v7018_v45 = vld [vmem:[%s8361_s26 + $0xd08] sm:$0xf]  ;;  %v7307_v48 = vor.u32 %v7914_v40, %v7306_v39  ;;  %3871 = vmatpush.bf16.msrb.mxu1 %v6795_v47 }
 0x17e   : > { %v7842_v46 = vld [vmem:[%s8361_s26 + $0xd24] sm:$0xf0] }
 0x17f   : > { %v6506_v49 = vld [vmem:[%s8361_s26 + $0x908] sm:$0xf]  ;;  %v7019_v55 = vor.u32 %v7842_v46, %v7018_v45  ;;  %3909 = vmatpush.bf16.msrb.mxu3 %v7307_v48  ;;  %v3520_v48 = vadd.f32 %v3519_v42, %v3501_v20  ;;  %v7542_v20 = vld [vmem:[%s8361_s26 + $0x3cc] sm:$0xf] }
 0x180   : > { %v7714_v50 = vld [vmem:[%s8361_s26 + $0x924] sm:$0xf0] }
 0x181   : > { %v6762_v51 = vld [vmem:[%s8361_s26 + $0xb08] sm:$0xf]  ;;  %v6507_v56 = vor.u32 %v7714_v50, %v6506_v49  ;;  %3891 = vmatpush.bf16.msrb.mxu2 %v7019_v55  ;;  %v3538_v49 = vpop.f32.mrf.mxu3  ;;  %v3484_v50 = vpop.f32.mrf.mxu0 }
 0x182   : > { %v7778_v52 = vld [vmem:[%s8361_s26 + $0xb24] sm:$0xf0] }
 0x183   : > { %v7274_v53 = vld [vmem:[%s8361_s26 + $0xf08] sm:$0xf]  ;;  %v6763_v61 = vor.u32 %v7778_v52, %v6762_v51  ;;  %3853 = vmatpush.bf16.msrb.mxu0 %v6507_v56 }
 0x184   : > { %v7906_v54 = vld [vmem:[%s8361_s26 + $0xf24] sm:$0xf0] }
 0x185   : > { %v6986_v57 = vld [vmem:[%s8361_s26 + $0xcc8] sm:$0xf]  ;;  %v7275_v62 = vor.u32 %v7906_v54, %v7274_v53  ;;  %3872 = vmatpush.bf16.msrb.mxu1 %v6763_v61  ;;  %v3503_v54 = vpop.f32.mrf.mxu1 }
 0x186   : > { %v7834_v58 = vld [vmem:[%s8361_s26 + $0xce4] sm:$0xf0] }
 0x187   : > { %v6474_v0 = vld [vmem:[%s8361_s26 + $0x8c8] sm:$0xf]  ;;  %v6987_v18 = vor.u32 %v7834_v58, %v6986_v57  ;;  %3910 = vmatpush.bf16.msrb.mxu3 %v7275_v62  ;;  %v8907_v57 = vadd.f32 %v3538_v49, %v3520_v48  ;;  %v3504_v58 = vadd.f32 %v3503_v54, %v3484_v50  ;;  %v5804_v50 = vld [vmem:[%s8361_s26 + $0x3a8] sm:$0xf0] }
 0x188   : > { %v7706_v1 = vld [vmem:[%s8361_s26 + $0x8e4] sm:$0xf0] }
 0x189   : > { %v6730_v6 = vld [vmem:[%s8361_s26 + $0xac8] sm:$0xf]  ;;  %v6475_v23 = vor.u32 %v7706_v1, %v6474_v0  ;;  %3892 = vmatpush.bf16.msrb.mxu2 %v6987_v18  ;;  %v5580_v18 = vld [vmem:[%s8361_s26 + $0x1e8] sm:$0xf0] }
 0x18a   : > { %v7770_v12 = vld [vmem:[%s8361_s26 + $0xae4] sm:$0xf0] }
 0x18b   : > { %v7242_v13 = vld [vmem:[%s8361_s26 + $0xec8] sm:$0xf]  ;;  %v6731_v28 = vor.u32 %v7770_v12, %v6730_v6  ;;  %3854 = vmatpush.bf16.msrb.mxu0 %v6475_v23 }
 0x18c   : > { %v7898_v14 = vld [vmem:[%s8361_s26 + $0xee4] sm:$0xf0] }
 0x18d   : > { %v6954_v26 = vld [vmem:[%s8361_s26 + $0xc88] sm:$0xf]  ;;  %v7243_v31 = vor.u32 %v7898_v14, %v7242_v13  ;;  %3873 = vmatpush.bf16.msrb.mxu1 %v6731_v28  ;;  %v7606_v13 = vld [vmem:[%s8361_s26 + $0x5cc] sm:$0xf]  ;;  %v3505_v42 = vpop.f32.mrf.mxu1 }
 0x18e   : > { %v7826_v27 = vld [vmem:[%s8361_s26 + $0xca4] sm:$0xf0]  ;;  %v6092_v14 = vld [vmem:[%s8361_s26 + $0x5e8] sm:$0xf0] }
 0x18f   : > { %v6442_v32 = vld [vmem:[%s8361_s26 + $0x888] sm:$0xf]  ;;  %v6955_v38 = vor.u32 %v7826_v27, %v6954_v26  ;;  %3911 = vmatpush.bf16.msrb.mxu3 %v7243_v31  ;;  %v5836_v27 = vld [vmem:[%s8361_s26 + $0x3e8] sm:$0xf0] }
 0x190   : > { %v7698_v33 = vld [vmem:[%s8361_s26 + $0x8a4] sm:$0xf0]  ;;  %v7670_v28 = vld [vmem:[%s8361_s26 + $0x7cc] sm:$0xf] }
 0x191   : > { %v6698_v34 = vld [vmem:[%s8361_s26 + $0xa88] sm:$0xf]  ;;  %v6443_v39 = vor.u32 %v7698_v33, %v6442_v32  ;;  %3893 = vmatpush.bf16.msrb.mxu2 %v6955_v38  ;;  %v6348_v31 = vld [vmem:[%s8361_s26 + $0x7e8] sm:$0xf0]  ;;  %v3522_v32 = vpop.f32.mrf.mxu2  ;;  %v6095_v38 = vor.u32 %v7606_v13, %v6092_v14 }
 0x192   : > { %v7762_v35 = vld [vmem:[%s8361_s26 + $0xaa4] sm:$0xf0] }
 0x193   : > { %v7210_v36 = vld [vmem:[%s8361_s26 + $0xe88] sm:$0xf]  ;;  %v6699_v43 = vor.u32 %v7762_v35, %v6698_v34  ;;  %3855 = vmatpush.bf16.msrb.mxu0 %v6443_v39  ;;  %v3523_v35 = vadd.f32 %v3522_v32, %v3504_v58  ;;  %v5583_v39 = vor.u32 %v7478_v15, %v5580_v18  ;;  %v7590_v58 = vld [vmem:[%s8361_s26 + $0x54c] sm:$0xf] }
 0x194   : > { %v7890_v37 = vld [vmem:[%s8361_s26 + $0xea4] sm:$0xf0]  ;;  %v7454_v32 = vld [vmem:[%s8361_s26 + $0x10c] sm:$0xf] }
 0x195   : > { %v6922_v40 = vld [vmem:[%s8361_s26 + $0xc48] sm:$0xf]  ;;  %v7211_v44 = vor.u32 %v7890_v37, %v7210_v36  ;;  %3874 = vmatpush.bf16.msrb.mxu1 %v6699_v43  ;;  %v3541_v36 = vpop.f32.mrf.mxu3  ;;  %v3486_v37 = vpop.f32.mrf.mxu0  ;;  %v5839_v43 = vor.u32 %v7542_v20, %v5836_v27  ;;  %v5996_v27 = vld [vmem:[%s8361_s26 + $0x528] sm:$0xf0] }
 0x196   : > { %v7818_v41 = vld [vmem:[%s8361_s26 + $0xc64] sm:$0xf0]  ;;  %v8933_v48 = vadd.f32 %v3541_v36, %v3523_v35  ;;  %v3506_v49 = vadd.f32 %v3505_v42, %v3486_v37  ;;  %v3574_v14 = vpop.f32.mrf.mxu1  ;;  %v5740_v36 = vld [vmem:[%s8361_s26 + $0x328] sm:$0xf0] }
 0x197   : > { %v6410_v45 = vld [vmem:[%s8361_s26 + $0x848] sm:$0xf]  ;;  %v6923_v55 = vor.u32 %v7818_v41, %v6922_v40  ;;  %3912 = vmatpush.bf16.msrb.mxu3 %v7211_v44  ;;  %v7598_v40 = vld [vmem:[%s8361_s26 + $0x58c] sm:$0xf]  ;;  %v6351_v44 = vor.u32 %v7670_v28, %v6348_v31 }
 0x198   : > { %v7690_v46 = vld [vmem:[%s8361_s26 + $0x864] sm:$0xf0]  ;;  %v6060_v41 = vld [vmem:[%s8361_s26 + $0x5a8] sm:$0xf0] }
 0x199   : > { %v6666_v47 = vld [vmem:[%s8361_s26 + $0xa48] sm:$0xf]  ;;  %v6411_v59 = vor.u32 %v7690_v46, %v6410_v45  ;;  %3894 = vmatpush.bf16.msrb.mxu2 %v6923_v55  ;;  %v7470_v45 = vld [vmem:[%s8361_s26 + $0x18c] sm:$0xf] }
 0x19a   : > { %v7754_v51 = vld [vmem:[%s8361_s26 + $0xa64] sm:$0xf0]  ;;  %v5548_v46 = vld [vmem:[%s8361_s26 + $0x1a8] sm:$0xf0] }
 0x19b   : > { %v7178_v52 = vld [vmem:[%s8361_s26 + $0xe48] sm:$0xf]  ;;  %v6667_v1 = vor.u32 %v7754_v51, %v6666_v47  ;;  %3856 = vmatpush.bf16.msrb.mxu0 %v6411_v59  ;;  %v7534_v47 = vld [vmem:[%s8361_s26 + $0x38c] sm:$0xf]  ;;  %v5551_v54 = vor.u32 %v7470_v45, %v5548_v46 }
 0x19c   : > { %v7882_v53 = vld [vmem:[%s8361_s26 + $0xe64] sm:$0xf0]  ;;  %v7662_v51 = vld [vmem:[%s8361_s26 + $0x78c] sm:$0xf]  ;;  %v5807_v55 = vor.u32 %v7534_v47, %v5804_v50 }
 0x19d   : > { %v6890_v56 = vld [vmem:[%s8361_s26 + $0xc08] sm:$0xf]  ;;  %v7179_v6 = vor.u32 %v7882_v53, %v7178_v52  ;;  %3875 = vmatpush.bf16.msrb.mxu1 %v6667_v1  ;;  %v6316_v52 = vld [vmem:[%s8361_s26 + $0x7a8] sm:$0xf0]  ;;  %v6063_v53 = vor.u32 %v7598_v40, %v6060_v41  ;;  %v3555_v13 = vpop.f32.mrf.mxu0 }
 0x19e   : > { %v7810_v61 = vld [vmem:[%s8361_s26 + $0xc24] sm:$0xf0]  ;;  %v6028_v59 = vld [vmem:[%s8361_s26 + $0x568] sm:$0xf0]  ;;  %v3556_v18 = vadd.f32 %v3555_v13, %v8888_v19 }
 0x19f   : > { %v6378_v62 = vld [vmem:[%s8361_s26 + $0x808] sm:$0xf]  ;;  %v6891_v23 = vor.u32 %v7810_v61, %v6890_v56  ;;  %3913 = vmatpush.bf16.msrb.mxu3 %v7179_v6  ;;  %v6319_v56 = vor.u32 %v7662_v51, %v6316_v52  ;;  %v3524_v61 = vpop.f32.mrf.mxu2  ;;  %v7526_v1 = vld [vmem:[%s8361_s26 + $0x34c] sm:$0xf]  ;;  %v6031_v20 = vor.u32 %v7590_v58, %v6028_v59 }
 0x1a0   : > { %v7682_v0 = vld [vmem:[%s8361_s26 + $0x824] sm:$0xf0]  ;;  %v3525_v6 = vadd.f32 %v3524_v61, %v3506_v49  ;;  %v3575_v35 = vadd.f32 %v3574_v14, %v3556_v18  ;;  %v7646_v19 = vld [vmem:[%s8361_s26 + $0x70c] sm:$0xf] }
 0x1a1   : > { %v6634_v7 = vld [vmem:[%s8361_s26 + $0xa08] sm:$0xf]  ;;  %v6379_v26 = vor.u32 %v7682_v0, %v6378_v62  ;;  %3895 = vmatpush.bf16.msrb.mxu2 %v6891_v23  ;;  %v7462_v62 = vld [vmem:[%s8361_s26 + $0x14c] sm:$0xf] }
 0x1a2   : > { %v7746_v10 = vld [vmem:[%s8361_s26 + $0xa24] sm:$0xf0]  ;;  %v5516_v0 = vld [vmem:[%s8361_s26 + $0x168] sm:$0xf0] }
 0x1a3   : > { %v7146_v11 = vld [vmem:[%s8361_s26 + $0xe08] sm:$0xf]  ;;  %v6635_v33 = vor.u32 %v7746_v10, %v6634_v7  ;;  %3857 = vmatpush.bf16.msrb.mxu0 %v6379_v26  ;;  %v3543_v7 = vpop.f32.mrf.mxu3  ;;  %v5772_v10 = vld [vmem:[%s8361_s26 + $0x368] sm:$0xf0]  ;;  %v5519_v23 = vor.u32 %v7462_v62, %v5516_v0 }
 0x1a4   : > { %v7874_v12 = vld [vmem:[%s8361_s26 + $0xe24] sm:$0xf0]  ;;  %v8946_v15 = vadd.f32 %v3543_v7, %v3525_v6  ;;  %v7582_v26 = vld [vmem:[%s8361_s26 + $0x50c] sm:$0xf]  ;;  %v5775_v28 = vor.u32 %v7526_v1, %v5772_v10  ;;  %3896 = vmatmul.bf16.vlgmr.msrb.gmra.mxu2 %v8626_v21 }
 0x1a5   : > { %v7147_v34 = vor.u32 %v7874_v12, %v7146_v11  ;;  %3876 = vmatpush.bf16.msrb.mxu1 %v6635_v33  ;;  %3964 = vmatpush.bf16.msra.mxu2 %v6095_v38  ;;  %v7654_v11 = vld [vmem:[%s8361_s26 + $0x74c] sm:$0xf]  ;;  %v5999_v38 = vor.u32 %v7582_v26, %v5996_v27 }
 0x1a6   : > { %v6284_v12 = vld [vmem:[%s8361_s26 + $0x768] sm:$0xf0]  ;;  %3858 = vmatmul.bf16.vlgmr.msrb.gmra.mxu0 %v8619_v16 }
 0x1a7   : > { %3914 = vmatpush.bf16.msrb.mxu3 %v7147_v34  ;;  %3926 = vmatpush.bf16.msra.mxu0 %v5583_v39  ;;  %v6287_v31 = vor.u32 %v7654_v11, %v6284_v12  ;;  %v5484_v33 = vld [vmem:[%s8361_s26 + $0x128] sm:$0xf0]  ;;  %v3593_v47 = vpop.f32.mrf.mxu2 }
 0x1a8   : > { %v7518_v34 = vld [vmem:[%s8361_s26 + $0x30c] sm:$0xf]  ;;  %3877 = vmatmul.bf16.vlgmr.msrb.gmra.mxu1 %v8621_v17  ;;  %v5487_v39 = vor.u32 %v7454_v32, %v5484_v33 }
 0x1a9   : > { %3945 = vmatpush.bf16.msra.mxu1 %v5839_v43  ;;  %3965 = vmatpush.bf16.msra.mxu2 %v6063_v53  ;;  %v6252_v37 = vld [vmem:[%s8361_s26 + $0x728] sm:$0xf0]  ;;  %v5743_v42 = vor.u32 %v7518_v34, %v5740_v36  ;;  %v3594_v53 = vadd.f32 %v3593_v47, %v3575_v35 }
 0x1aa   : > { %3915 = vmatmul.bf16.vlgmr.msrb.gmra.mxu3 %v8628_v22  ;;  %v7574_v40 = vld [vmem:[%s8361_s26 + $0x4cc] sm:$0xf]  ;;  %v6255_v43 = vor.u32 %v7646_v19, %v6252_v37 }
 0x1ab   : > { %3983 = vmatpush.bf16.msra.mxu3 %v6351_v44  ;;  %3927 = vmatpush.bf16.msra.mxu0 %v5551_v54  ;;  %v5964_v41 = vld [vmem:[%s8361_s26 + $0x4e8] sm:$0xf0]  ;;  %v3612_v49 = vpop.f32.mrf.mxu3  ;;  %v3557_v54 = vpop.f32.mrf.mxu0 }
 0x1ac   : > { %v7446_v44 = vld [vmem:[%s8361_s26 + $0xcc] sm:$0xf]  ;;  %v5967_v58 = vor.u32 %v7574_v40, %v5964_v41  ;;  %v8972_v0 = vadd.f32 %v3612_v49, %v3594_v53 }
 0x1ad   : > { %3946 = vmatpush.bf16.msra.mxu1 %v5807_v55  ;;  %3966 = vmatpush.bf16.msra.mxu2 %v6031_v20  ;;  %v5452_v45 = vld [vmem:[%s8361_s26 + $0xe8] sm:$0xf0]  ;;  %v3576_v55 = vpop.f32.mrf.mxu1 }
 0x1ae   : > { %v7510_v46 = vld [vmem:[%s8361_s26 + $0x2cc] sm:$0xf]  ;;  %v5455_v59 = vor.u32 %v7446_v44, %v5452_v45 }
 0x1af   : > { %3984 = vmatpush.bf16.msra.mxu3 %v6319_v56  ;;  %3928 = vmatpush.bf16.msra.mxu0 %v5519_v23  ;;  %v5708_v50 = vld [vmem:[%s8361_s26 + $0x2e8] sm:$0xf0]  ;;  %v3558_v56 = vadd.f32 %v3557_v54, %v8907_v57  ;;  %v3595_v34 = vpop.f32.mrf.mxu2 }
 0x1b0   : > { %v7638_v51 = vld [vmem:[%s8361_s26 + $0x6cc] sm:$0xf]  ;;  %v5711_v1 = vor.u32 %v7510_v46, %v5708_v50 }
 0x1b1   : > { %3947 = vmatpush.bf16.msra.mxu1 %v5775_v28  ;;  %v6220_v52 = vld [vmem:[%s8361_s26 + $0x6e8] sm:$0xf0]  ;;  %3967 = vmatpush.bf16.msra.mxu2 %v5999_v38  ;;  %v3577_v11 = vadd.f32 %v3576_v55, %v3558_v56 }
 0x1b2   : > { %v7566_v61 = vld [vmem:[%s8361_s26 + $0x48c] sm:$0xf]  ;;  %v6223_v6 = vor.u32 %v7638_v51, %v6220_v52 }
 0x1b3   : > { %3985 = vmatpush.bf16.msra.mxu3 %v6287_v31  ;;  %3929 = vmatpush.bf16.msra.mxu0 %v5487_v39  ;;  %v5932_v62 = vld [vmem:[%s8361_s26 + $0x4a8] sm:$0xf0]  ;;  %v3614_v35 = vpop.f32.mrf.mxu3  ;;  %v3596_v38 = vadd.f32 %v3595_v34, %v3577_v11  ;;  %v3560_v39 = vpop.f32.mrf.mxu0 }
 0x1b4   : > { %v7438_v7 = vld [vmem:[%s8361_s26 + $0x8c] sm:$0xf]  ;;  %v5935_v18 = vor.u32 %v7566_v61, %v5932_v62  ;;  %3901 = vmatmul.bf16.gmra.mxu2 %v8678_v29 }
 0x1b5   : > { %3948 = vmatpush.bf16.msra.mxu1 %v5743_v42  ;;  %v5420_v10 = vld [vmem:[%s8361_s26 + $0xa8] sm:$0xf0]  ;;  %3968 = vmatpush.bf16.msra.mxu2 %v5967_v58  ;;  %v3579_v40 = vpop.f32.mrf.mxu1  ;;  %v3561_v42 = vadd.f32 %v3560_v39, %v8933_v48  ;;  %v8993_v49 = vadd.f32 %v3614_v35, %v3596_v38 }
 0x1b6   : > { %v7502_v57 = vld [vmem:[%s8361_s26 + $0x28c] sm:$0xf]  ;;  %v5423_v20 = vor.u32 %v7438_v7, %v5420_v10  ;;  %3863 = vmatmul.bf16.gmra.mxu0 %v8671_v24 }
 0x1b7   : > { %3986 = vmatpush.bf16.msra.mxu3 %v6255_v43  ;;  %v5676_v12 = vld [vmem:[%s8361_s26 + $0x2a8] sm:$0xf0]  ;;  %3930 = vmatpush.bf16.msra.mxu0 %v5455_v59  ;;  %v3580_v54 = vadd.f32 %v3579_v40, %v3561_v42 }
 0x1b8   : > { %v7630_v13 = vld [vmem:[%s8361_s26 + $0x68c] sm:$0xf]  ;;  %v5679_v27 = vor.u32 %v7502_v57, %v5676_v12  ;;  %3882 = vmatmul.bf16.gmra.mxu1 %v8673_v25 }
 0x1b9   : > { %v6188_v14 = vld [vmem:[%s8361_s26 + $0x6a8] sm:$0xf0]  ;;  %3949 = vmatpush.bf16.msra.mxu1 %v5711_v1  ;;  %3969 = vmatpush.bf16.msra.mxu2 %v5935_v18 }
 0x1ba   : > { %v7558_v23 = vld [vmem:[%s8361_s26 + $0x44c] sm:$0xf]  ;;  %v6191_v28 = vor.u32 %v7630_v13, %v6188_v14  ;;  %3920 = vmatmul.bf16.gmra.mxu3 %v8680_v30  ;;  %v3598_v13 = vpop.f32.mrf.mxu2 }
 0x1bb   : > { %v5900_v26 = vld [vmem:[%s8361_s26 + $0x468] sm:$0xf0]  ;;  %3987 = vmatpush.bf16.msra.mxu3 %v6223_v6  ;;  %3931 = vmatpush.bf16.msra.mxu0 %v5423_v20  ;;  %v3617_v14 = vpop.f32.mrf.mxu3 }
 0x1bc   : > { %v7430_v31 = vld [vmem:[%s8361_s26 + $0x4c] sm:$0xf]  ;;  %v5903_v43 = vor.u32 %v7558_v23, %v5900_v26 }
 0x1bd   : > { %v5388_v32 = vld [vmem:[%s8361_s26 + $0x68] sm:$0xf0]  ;;  %3950 = vmatpush.bf16.msra.mxu1 %v5679_v27  ;;  %v3599_v27 = vadd.f32 %v3598_v13, %v3580_v54 }
 0x1be   : > { %v7494_v33 = vld [vmem:[%s8361_s26 + $0x24c] sm:$0xf]  ;;  %v5391_v44 = vor.u32 %v7430_v31, %v5388_v32  ;;  %3970 = vmatpush.bf16.msra.mxu2 %v5903_v43  ;;  %v3581_v31 = vpop.f32.mrf.mxu1 }
 0x1bf   : > { %v5644_v36 = vld [vmem:[%s8361_s26 + $0x268] sm:$0xf0]  ;;  %3988 = vmatpush.bf16.msra.mxu3 %v6191_v28  ;;  %v3562_v28 = vpop.f32.mrf.mxu0  ;;  %v9020_v40 = vadd.f32 %v3617_v14, %v3599_v27 }
 0x1c0   : > { %v7622_v19 = vld [vmem:[%s8361_s26 + $0x64c] sm:$0xf]  ;;  %v5647_v50 = vor.u32 %v7494_v33, %v5644_v36  ;;  %3932 = vmatpush.bf16.msra.mxu0 %v5391_v44 }
 0x1c1   : > { %v6156_v37 = vld [vmem:[%s8361_s26 + $0x668] sm:$0xf0] }
 0x1c2   : > { %v7550_v41 = vld [vmem:[%s8361_s26 + $0x40c] sm:$0xf]  ;;  %v6159_v51 = vor.u32 %v7622_v19, %v6156_v37  ;;  %3951 = vmatpush.bf16.msra.mxu1 %v5647_v50  ;;  %v3563_v19 = vadd.f32 %v3562_v28, %v8946_v15 }
 0x1c3   : > { %v5868_v45 = vld [vmem:[%s8361_s26 + $0x428] sm:$0xf0] }
 0x1c4   : > { %v7422_v46 = vld [vmem:[%s8361_s26 + $0xc] sm:$0xf]  ;;  %v5871_v1 = vor.u32 %v7550_v41, %v5868_v45  ;;  %3989 = vmatpush.bf16.msra.mxu3 %v6159_v51  ;;  %v3582_v41 = vadd.f32 %v3581_v31, %v3563_v19 }
 0x1c5   : > { %v5356_v47 = vld [vmem:[%s8361_s26 + $0x28] sm:$0xf0] }
 0x1c6   : > { %v7486_v48 = vld [vmem:[%s8361_s26 + $0x20c] sm:$0xf]  ;;  %v5359_v6 = vor.u32 %v7422_v46, %v5356_v47  ;;  %3971 = vmatpush.bf16.msra.mxu2 %v5871_v1 }
 0x1c7   : > { %v5612_v52 = vld [vmem:[%s8361_s26 + $0x228] sm:$0xf0] }
 0x1c8   : > { %v7614_v53 = vld [vmem:[%s8361_s26 + $0x60c] sm:$0xf]  ;;  %v5615_v11 = vor.u32 %v7486_v48, %v5612_v52  ;;  %3933 = vmatpush.bf16.msra.mxu0 %v5359_v6  ;;  %v3600_v48 = vpop.f32.mrf.mxu2  ;;  %v3619_v52 = vpop.f32.mrf.mxu3 }
 0x1c9   : > { %v6124_v55 = vld [vmem:[%s8361_s26 + $0x628] sm:$0xf0]  ;;  %3972 = vmatmul.bf16.vlgmr.msra.gmra.mxu2 %v8513_v5 }
 0x1ca   : > { %v7862_v56 = vld [vmem:[%s8361_s26 + $0xdcc] sm:$0xf]  ;;  %v6127_v12 = vor.u32 %v7614_v53, %v6124_v55  ;;  %3952 = vmatpush.bf16.msra.mxu1 %v5615_v11 }
 0x1cb   : > { %v7116_v58 = vld [vmem:[%s8361_s26 + $0xde8] sm:$0xf0]  ;;  %3934 = vmatmul.bf16.vlgmr.msra.gmra.mxu0 %v8506_v63 }
 0x1cc   : > { %v7734_v59 = vld [vmem:[%s8361_s26 + $0x9cc] sm:$0xf]  ;;  %v7119_v18 = vor.u32 %v7862_v56, %v7116_v58  ;;  %3990 = vmatpush.bf16.msra.mxu3 %v6127_v12  ;;  %v3601_v56 = vadd.f32 %v3600_v48, %v3582_v41  ;;  %v3631_v58 = vpop.f32.mrf.mxu0 }
 0x1cd   : > { %v6604_v61 = vld [vmem:[%s8361_s26 + $0x9e8] sm:$0xf0]  ;;  %3953 = vmatmul.bf16.vlgmr.msra.gmra.mxu1 %v8511_v4 }
 0x1ce   : > { %v7798_v62 = vld [vmem:[%s8361_s26 + $0xbcc] sm:$0xf]  ;;  %v6607_v20 = vor.u32 %v7734_v59, %v6604_v61  ;;  %4040 = vmatpush.bf16.msrb.mxu2 %v7119_v18  ;;  %v3650_v59 = vpop.f32.mrf.mxu1 }
 0x1cf   : > { %v6860_v7 = vld [vmem:[%s8361_s26 + $0xbe8] sm:$0xf0]  ;;  %v3651_v61 = vadd.f32 %v3650_v59, %v3631_v58  ;;  %3991 = vmatmul.bf16.vlgmr.msra.gmra.mxu3 %v8518_v9 }
 0x1d0   : > { %v7926_v10 = vld [vmem:[%s8361_s26 + $0xfcc] sm:$0xf]  ;;  %v6863_v32 = vor.u32 %v7798_v62, %v6860_v7  ;;  %4002 = vmatpush.bf16.msrb.mxu0 %v6607_v20  ;;  %v3669_v19 = vpop.f32.mrf.mxu2 }
 0x1d1   : > { %v7372_v57 = vld [vmem:[%s8361_s26 + $0xfe8] sm:$0xf0] }
 0x1d2   : > { %v7854_v23 = vld [vmem:[%s8361_s26 + $0xd8c] sm:$0xf]  ;;  %v7375_v33 = vor.u32 %v7926_v10, %v7372_v57  ;;  %4021 = vmatpush.bf16.msrb.mxu1 %v6863_v32  ;;  %v9032_v10 = vadd.f32 %v3619_v52, %v3601_v56 }
 0x1d3   : > { %v7084_v26 = vld [vmem:[%s8361_s26 + $0xda8] sm:$0xf0] }
 0x1d4   : > { %v7726_v34 = vld [vmem:[%s8361_s26 + $0x98c] sm:$0xf]  ;;  %v7087_v42 = vor.u32 %v7854_v23, %v7084_v26  ;;  %4059 = vmatpush.bf16.msrb.mxu3 %v7375_v33 }
 0x1d5   : > { %v6572_v35 = vld [vmem:[%s8361_s26 + $0x9a8] sm:$0xf0] }
 0x1d6   : > { %v7790_v36 = vld [vmem:[%s8361_s26 + $0xb8c] sm:$0xf]  ;;  %v6575_v15 = vor.u32 %v7726_v34, %v6572_v35  ;;  %4041 = vmatpush.bf16.msrb.mxu2 %v7087_v42  ;;  %v3670_v42 = vadd.f32 %v3669_v19, %v3651_v61 }
 0x1d7   : > { %v6828_v37 = vld [vmem:[%s8361_s26 + $0xba8] sm:$0xf0] }
 0x1d8   : > { %v7918_v38 = vld [vmem:[%s8361_s26 + $0xf8c] sm:$0xf]  ;;  %v6831_v43 = vor.u32 %v7790_v36, %v6828_v37  ;;  %4003 = vmatpush.bf16.msrb.mxu0 %v6575_v15  ;;  %v3688_v37 = vpop.f32.mrf.mxu3  ;;  %v3633_v15 = vpop.f32.mrf.mxu0 }
 0x1d9   : > { %v7340_v39 = vld [vmem:[%s8361_s26 + $0xfa8] sm:$0xf0]  ;;  %3977 = vmatmul.bf16.gmra.mxu2 %v8566_v3 }
 0x1da   : > { %v7343_v44 = vor.u32 %v7918_v38, %v7340_v39  ;;  %v7846_v45 = vld [vmem:[%s8361_s26 + $0xd4c] sm:$0xf]  ;;  %4022 = vmatpush.bf16.msrb.mxu1 %v6831_v43  ;;  %v3652_v43 = vpop.f32.mrf.mxu1 }
 0x1db   : > { %v7052_v46 = vld [vmem:[%s8361_s26 + $0xd68] sm:$0xf0]  ;;  %3939 = vmatmul.bf16.gmra.mxu0 %v8559_v60 }
 0x1dc   : > { %v7718_v47 = vld [vmem:[%s8361_s26 + $0x94c] sm:$0xf]  ;;  %4060 = vmatpush.bf16.msrb.mxu3 %v7343_v44  ;;  %v7055_v62 = vor.u32 %v7846_v45, %v7052_v46  ;;  %v3653_v44 = vadd.f32 %v3652_v43, %v3633_v15 }
 0x1dd   : > { %v6540_v50 = vld [vmem:[%s8361_s26 + $0x968] sm:$0xf0]  ;;  %3958 = vmatmul.bf16.gmra.mxu1 %v8564_v2 }
 0x1de   : > { %v7782_v51 = vld [vmem:[%s8361_s26 + $0xb4c] sm:$0xf]  ;;  %v6543_v1 = vor.u32 %v7718_v47, %v6540_v50  ;;  %4042 = vmatpush.bf16.msrb.mxu2 %v7055_v62 }
 0x1df   : > { %v6796_v53 = vld [vmem:[%s8361_s26 + $0xb68] sm:$0xf0]  ;;  %3996 = vmatmul.bf16.gmra.mxu3 %v8570_v8 }
 0x1e0   : > { %v7910_v54 = vld [vmem:[%s8361_s26 + $0xf4c] sm:$0xf]  ;;  %v6799_v57 = vor.u32 %v7782_v51, %v6796_v53  ;;  %4004 = vmatpush.bf16.msrb.mxu0 %v6543_v1  ;;  %v9054_v51 = vadd.f32 %v3688_v37, %v3670_v42 }
 0x1e1   : > { %v7308_v55 = vld [vmem:[%s8361_s26 + $0xf68] sm:$0xf0] }
 0x1e2   : > { %v7838_v6 = vld [vmem:[%s8361_s26 + $0xd0c] sm:$0xf]  ;;  %v7311_v11 = vor.u32 %v7910_v54, %v7308_v55  ;;  %4023 = vmatpush.bf16.msrb.mxu1 %v6799_v57 }
 0x1e3   : > { %v7020_v7 = vld [vmem:[%s8361_s26 + $0xd28] sm:$0xf0] }
 0x1e4   : > { %v7710_v12 = vld [vmem:[%s8361_s26 + $0x90c] sm:$0xf]  ;;  %v7023_v26 = vor.u32 %v7838_v6, %v7020_v7  ;;  %4061 = vmatpush.bf16.msrb.mxu3 %v7311_v11 }
 0x1e5   : > { %v6508_v13 = vld [vmem:[%s8361_s26 + $0x928] sm:$0xf0] }
 0x1e6   : > { %v7774_v14 = vld [vmem:[%s8361_s26 + $0xb0c] sm:$0xf]  ;;  %v6511_v27 = vor.u32 %v7710_v12, %v6508_v13  ;;  %4043 = vmatpush.bf16.msrb.mxu2 %v7023_v26 }
 0x1e7   : > { %v6764_v18 = vld [vmem:[%s8361_s26 + $0xb28] sm:$0xf0] }
 0x1e8   : > { %v7902_v20 = vld [vmem:[%s8361_s26 + $0xf0c] sm:$0xf]  ;;  %v6767_v32 = vor.u32 %v7774_v14, %v6764_v18  ;;  %4005 = vmatpush.bf16.msrb.mxu0 %v6511_v27  ;;  %v3671_v14 = vpop.f32.mrf.mxu2  ;;  %v3690_v18 = vpop.f32.mrf.mxu3 }
 0x1e9   : > { %v7276_v23 = vld [vmem:[%s8361_s26 + $0xf28] sm:$0xf0]  ;;  %v3672_v27 = vadd.f32 %v3671_v14, %v3653_v44 }
 0x1ea   : > { %v7830_v28 = vld [vmem:[%s8361_s26 + $0xccc] sm:$0xf]  ;;  %v7279_v33 = vor.u32 %v7902_v20, %v7276_v23  ;;  %4024 = vmatpush.bf16.msrb.mxu1 %v6767_v32 }
 0x1eb   : > { %v6988_v31 = vld [vmem:[%s8361_s26 + $0xce8] sm:$0xf0] }
 0x1ec   : > { %v7702_v34 = vld [vmem:[%s8361_s26 + $0x8cc] sm:$0xf]  ;;  %v6991_v45 = vor.u32 %v7830_v28, %v6988_v31  ;;  %4062 = vmatpush.bf16.msrb.mxu3 %v7279_v33  ;;  %v3636_v28 = vpop.f32.mrf.mxu0  ;;  %v3655_v31 = vpop.f32.mrf.mxu1 }
 0x1ed   : > { %v6476_v35 = vld [vmem:[%s8361_s26 + $0x8e8] sm:$0xf0]  ;;  %v3656_v33 = vadd.f32 %v3655_v31, %v3636_v28  ;;  %v7539_v28 = vld [vmem:[%s8361_s26 + $0x3ac] sm:$0xf0] }
 0x1ee   : > { %v7766_v36 = vld [vmem:[%s8361_s26 + $0xacc] sm:$0xf]  ;;  %v6479_v46 = vor.u32 %v7702_v34, %v6476_v35  ;;  %4044 = vmatpush.bf16.msrb.mxu2 %v6991_v45  ;;  %v6098_v45 = vld [vmem:[%s8361_s26 + $0x5d0] sm:$0xf] }
 0x1ef   : > { %v6732_v38 = vld [vmem:[%s8361_s26 + $0xae8] sm:$0xf0]  ;;  %v6322_v31 = vld [vmem:[%s8361_s26 + $0x790] sm:$0xf] }
 0x1f0   : > { %v7894_v39 = vld [vmem:[%s8361_s26 + $0xecc] sm:$0xf]  ;;  %v6735_v48 = vor.u32 %v7766_v36, %v6732_v38  ;;  %4006 = vmatpush.bf16.msrb.mxu0 %v6479_v46  ;;  %v9074_v38 = vadd.f32 %v3690_v18, %v3672_v27  ;;  %v7611_v46 = vld [vmem:[%s8361_s26 + $0x5ec] sm:$0xf0] }
 0x1f1   : > { %v7244_v41 = vld [vmem:[%s8361_s26 + $0xee8] sm:$0xf0] }
 0x1f2   : > { %v7822_v47 = vld [vmem:[%s8361_s26 + $0xc8c] sm:$0xf]  ;;  %v7247_v52 = vor.u32 %v7894_v39, %v7244_v41  ;;  %4025 = vmatpush.bf16.msrb.mxu1 %v6735_v48  ;;  %v5842_v48 = vld [vmem:[%s8361_s26 + $0x3d0] sm:$0xf] }
 0x1f3   : > { %v6956_v50 = vld [vmem:[%s8361_s26 + $0xca8] sm:$0xf0] }
 0x1f4   : > { %v7694_v53 = vld [vmem:[%s8361_s26 + $0x88c] sm:$0xf]  ;;  %v6959_v61 = vor.u32 %v7822_v47, %v6956_v50  ;;  %4063 = vmatpush.bf16.msrb.mxu3 %v7247_v52  ;;  %v5586_v47 = vld [vmem:[%s8361_s26 + $0x1d0] sm:$0xf] }
 0x1f5   : > { %v6444_v54 = vld [vmem:[%s8361_s26 + $0x8a8] sm:$0xf0]  ;;  %v7483_v50 = vld [vmem:[%s8361_s26 + $0x1ec] sm:$0xf0] }
 0x1f6   : > { %v7758_v55 = vld [vmem:[%s8361_s26 + $0xa8c] sm:$0xf]  ;;  %v6447_v62 = vor.u32 %v7694_v53, %v6444_v54  ;;  %4045 = vmatpush.bf16.msrb.mxu2 %v6959_v61  ;;  %v7547_v54 = vld [vmem:[%s8361_s26 + $0x3ec] sm:$0xf0]  ;;  %v3674_v61 = vpop.f32.mrf.mxu2 }
 0x1f7   : > { %v6700_v56 = vld [vmem:[%s8361_s26 + $0xaa8] sm:$0xf0]  ;;  %v5843_v14 = vor.u32 %v7547_v54, %v5842_v48 }
 0x1f8   : > { %v7886_v58 = vld [vmem:[%s8361_s26 + $0xe8c] sm:$0xf]  ;;  %v6703_v7 = vor.u32 %v7758_v55, %v6700_v56  ;;  %4007 = vmatpush.bf16.msrb.mxu0 %v6447_v62  ;;  %v6354_v55 = vld [vmem:[%s8361_s26 + $0x7d0] sm:$0xf]  ;;  %v3693_v62 = vpop.f32.mrf.mxu3 }
 0x1f9   : > { %v7212_v59 = vld [vmem:[%s8361_s26 + $0xea8] sm:$0xf0]  ;;  %v7675_v56 = vld [vmem:[%s8361_s26 + $0x7ec] sm:$0xf0] }
 0x1fa   : > { %v7814_v1 = vld [vmem:[%s8361_s26 + $0xc4c] sm:$0xf]  ;;  %v7215_v57 = vor.u32 %v7886_v58, %v7212_v59  ;;  %4026 = vmatpush.bf16.msrb.mxu1 %v6703_v7  ;;  %v6066_v7 = vld [vmem:[%s8361_s26 + $0x590] sm:$0xf]  ;;  %v6355_v18 = vor.u32 %v7675_v56, %v6354_v55 }
 0x1fb   : > { %v6924_v6 = vld [vmem:[%s8361_s26 + $0xc68] sm:$0xf0]  ;;  %v6002_v56 = vld [vmem:[%s8361_s26 + $0x510] sm:$0xf] }
 0x1fc   : > { %v7686_v11 = vld [vmem:[%s8361_s26 + $0x84c] sm:$0xf]  ;;  %v6927_v34 = vor.u32 %v7814_v1, %v6924_v6  ;;  %4064 = vmatpush.bf16.msrb.mxu3 %v7215_v57  ;;  %v6099_v1 = vor.u32 %v7611_v46, %v6098_v45  ;;  %v5587_v6 = vor.u32 %v7483_v50, %v5586_v47  ;;  %v7603_v57 = vld [vmem:[%s8361_s26 + $0x5ac] sm:$0xf0] }
 0x1fd   : > { %v6412_v12 = vld [vmem:[%s8361_s26 + $0x868] sm:$0xf0]  ;;  %v7531_v45 = vld [vmem:[%s8361_s26 + $0x36c] sm:$0xf0] }
 0x1fe   : > { %v7750_v13 = vld [vmem:[%s8361_s26 + $0xa4c] sm:$0xf]  ;;  %v6415_v35 = vor.u32 %v7686_v11, %v6412_v12  ;;  %4046 = vmatpush.bf16.msrb.mxu2 %v6927_v34  ;;  %v3675_v11 = vadd.f32 %v3674_v61, %v3656_v33  ;;  %v3638_v12 = vpop.f32.mrf.mxu0  ;;  %v6067_v33 = vor.u32 %v7603_v57, %v6066_v7  ;;  %v6290_v46 = vld [vmem:[%s8361_s26 + $0x750] sm:$0xf] }
 0x1ff   : > { %v6668_v20 = vld [vmem:[%s8361_s26 + $0xa68] sm:$0xf0]  ;;  %v7659_v47 = vld [vmem:[%s8361_s26 + $0x76c] sm:$0xf0] }
 0x200   : > { %v7878_v23 = vld [vmem:[%s8361_s26 + $0xe4c] sm:$0xf]  ;;  %v6671_v39 = vor.u32 %v7750_v13, %v6668_v20  ;;  %4008 = vmatpush.bf16.msrb.mxu0 %v6415_v35  ;;  %v3657_v13 = vpop.f32.mrf.mxu1  ;;  %v5554_v20 = vld [vmem:[%s8361_s26 + $0x190] sm:$0xf]  ;;  %v9100_v34 = vadd.f32 %v3693_v62, %v3675_v11  ;;  %v6291_v62 = vor.u32 %v7659_v47, %v6290_v46 }
 0x201   : > { %v7180_v26 = vld [vmem:[%s8361_s26 + $0xe68] sm:$0xf0]  ;;  %v3658_v27 = vadd.f32 %v3657_v13, %v3638_v12  ;;  %v5746_v7 = vld [vmem:[%s8361_s26 + $0x310] sm:$0xf] }
 0x202   : > { %v7806_v32 = vld [vmem:[%s8361_s26 + $0xc0c] sm:$0xf]  ;;  %v7183_v41 = vor.u32 %v7878_v23, %v7180_v26  ;;  %4027 = vmatpush.bf16.msrb.mxu1 %v6671_v39  ;;  %v7475_v23 = vld [vmem:[%s8361_s26 + $0x1ac] sm:$0xf0] }
 0x203   : > { %v6892_v36 = vld [vmem:[%s8361_s26 + $0xc28] sm:$0xf0]  ;;  %v5810_v26 = vld [vmem:[%s8361_s26 + $0x390] sm:$0xf]  ;;  %v5555_v35 = vor.u32 %v7475_v23, %v5554_v20 }
 0x204   : > { %v7678_v19 = vld [vmem:[%s8361_s26 + $0x80c] sm:$0xf]  ;;  %v6895_v52 = vor.u32 %v7806_v32, %v6892_v36  ;;  %4065 = vmatpush.bf16.msrb.mxu3 %v7183_v41  ;;  %v7667_v32 = vld [vmem:[%s8361_s26 + $0x7ac] sm:$0xf0]  ;;  %v5811_v36 = vor.u32 %v7539_v28, %v5810_v26 }
 0x205   : > { %v6380_v37 = vld [vmem:[%s8361_s26 + $0x828] sm:$0xf0]  ;;  %v7595_v39 = vld [vmem:[%s8361_s26 + $0x56c] sm:$0xf0] }
 0x206   : > { %v7742_v42 = vld [vmem:[%s8361_s26 + $0xa0c] sm:$0xf]  ;;  %v6383_v53 = vor.u32 %v7678_v19, %v6380_v37  ;;  %4047 = vmatpush.bf16.msrb.mxu2 %v6895_v52  ;;  %v6323_v19 = vor.u32 %v7667_v32, %v6322_v31  ;;  %v6034_v37 = vld [vmem:[%s8361_s26 + $0x550] sm:$0xf]  ;;  %v3707_v48 = vpop.f32.mrf.mxu0 }
 0x207   : > { %v6636_v15 = vld [vmem:[%s8361_s26 + $0xa28] sm:$0xf0]  ;;  %v5522_v41 = vld [vmem:[%s8361_s26 + $0x150] sm:$0xf]  ;;  %v6035_v54 = vor.u32 %v7595_v39, %v6034_v37 }
 0x208   : > { %v7870_v43 = vld [vmem:[%s8361_s26 + $0xe0c] sm:$0xf]  ;;  %v6639_v58 = vor.u32 %v7742_v42, %v6636_v15  ;;  %4009 = vmatpush.bf16.msrb.mxu0 %v6383_v53  ;;  %v7467_v42 = vld [vmem:[%s8361_s26 + $0x16c] sm:$0xf0]  ;;  %v3726_v52 = vpop.f32.mrf.mxu1  ;;  %v3708_v53 = vadd.f32 %v3707_v48, %v9054_v51 }
 0x209   : > { %v7148_v44 = vld [vmem:[%s8361_s26 + $0xe28] sm:$0xf0]  ;;  %v5778_v15 = vld [vmem:[%s8361_s26 + $0x350] sm:$0xf]  ;;  %v5523_v55 = vor.u32 %v7467_v42, %v5522_v41  ;;  %4048 = vmatmul.bf16.vlgmr.msrb.gmra.mxu2 %v8626_v21 }
 0x20a   : > { %v7151_v59 = vor.u32 %v7870_v43, %v7148_v44  ;;  %4028 = vmatpush.bf16.msrb.mxu1 %v6639_v58  ;;  %4116 = vmatpush.bf16.msra.mxu2 %v6099_v1  ;;  %v3676_v43 = vpop.f32.mrf.mxu2  ;;  %v3695_v44 = vpop.f32.mrf.mxu3  ;;  %v7587_v58 = vld [vmem:[%s8361_s26 + $0x52c] sm:$0xf0]  ;;  %v5779_v61 = vor.u32 %v7531_v45, %v5778_v15  ;;  %v3727_v57 = vadd.f32 %v3726_v52, %v3708_v53 }
 0x20b   : > { %v3677_v50 = vadd.f32 %v3676_v43, %v3658_v27  ;;  %v5490_v1 = vld [vmem:[%s8361_s26 + $0x110] sm:$0xf]  ;;  %4010 = vmatmul.bf16.vlgmr.msrb.gmra.mxu0 %v8619_v16  ;;  %v6003_v13 = vor.u32 %v7587_v58, %v6002_v56 }
 0x20c   : > { %4066 = vmatpush.bf16.msrb.mxu3 %v7151_v59  ;;  %4078 = vmatpush.bf16.msra.mxu0 %v5587_v6  ;;  %v7459_v6 = vld [vmem:[%s8361_s26 + $0x12c] sm:$0xf0] }
 0x20d   : > { %v9113_v59 = vadd.f32 %v3695_v44, %v3677_v50  ;;  %4029 = vmatmul.bf16.vlgmr.msrb.gmra.mxu1 %v8621_v17  ;;  %v7523_v51 = vld [vmem:[%s8361_s26 + $0x32c] sm:$0xf0] }
 0x20e   : > { %4097 = vmatpush.bf16.msra.mxu1 %v5843_v14  ;;  %4117 = vmatpush.bf16.msra.mxu2 %v6067_v33  ;;  %v6258_v11 = vld [vmem:[%s8361_s26 + $0x710] sm:$0xf]  ;;  %v5491_v14 = vor.u32 %v7459_v6, %v5490_v1  ;;  %v5747_v23 = vor.u32 %v7523_v51, %v5746_v7  ;;  %v3709_v39 = vpop.f32.mrf.mxu0 }
 0x20f   : > { %v7651_v12 = vld [vmem:[%s8361_s26 + $0x72c] sm:$0xf0]  ;;  %4067 = vmatmul.bf16.vlgmr.msrb.gmra.mxu3 %v8628_v22  ;;  %v3710_v42 = vadd.f32 %v3709_v39, %v9074_v38 }
 0x210   : > { %4135 = vmatpush.bf16.msra.mxu3 %v6355_v18  ;;  %4079 = vmatpush.bf16.msra.mxu0 %v5555_v35  ;;  %v5970_v18 = vld [vmem:[%s8361_s26 + $0x4d0] sm:$0xf]  ;;  %v6259_v26 = vor.u32 %v7651_v12, %v6258_v11  ;;  %v3728_v41 = vpop.f32.mrf.mxu1 }
 0x211   : > { %v7579_v20 = vld [vmem:[%s8361_s26 + $0x4ec] sm:$0xf0]  ;;  %v3729_v53 = vadd.f32 %v3728_v41, %v3710_v42 }
 0x212   : > { %4098 = vmatpush.bf16.msra.mxu1 %v5811_v36  ;;  %4118 = vmatpush.bf16.msra.mxu2 %v6035_v54  ;;  %v5458_v27 = vld [vmem:[%s8361_s26 + $0xd0] sm:$0xf]  ;;  %v3745_v32 = vpop.f32.mrf.mxu2  ;;  %v3764_v33 = vpop.f32.mrf.mxu3  ;;  %v5971_v15 = vor.u32 %v7579_v20, %v5970_v18 }
 0x213   : > { %v7451_v28 = vld [vmem:[%s8361_s26 + $0xec] sm:$0xf0]  ;;  %v3746_v37 = vadd.f32 %v3745_v32, %v3727_v57 }
 0x214   : > { %4136 = vmatpush.bf16.msra.mxu3 %v6323_v19  ;;  %4080 = vmatpush.bf16.msra.mxu0 %v5523_v55  ;;  %v5714_v31 = vld [vmem:[%s8361_s26 + $0x2d0] sm:$0xf]  ;;  %v5459_v43 = vor.u32 %v7451_v28, %v5458_v27 }
 0x215   : > { %v7515_v35 = vld [vmem:[%s8361_s26 + $0x2ec] sm:$0xf0]  ;;  %v9136_v46 = vadd.f32 %v3764_v33, %v3746_v37 }
 0x216   : > { %4099 = vmatpush.bf16.msra.mxu1 %v5779_v61  ;;  %v6226_v36 = vld [vmem:[%s8361_s26 + $0x6d0] sm:$0xf]  ;;  %4119 = vmatpush.bf16.msra.mxu2 %v6003_v13  ;;  %v5715_v47 = vor.u32 %v7515_v35, %v5714_v31 }
 0x217   : > { %v7643_v19 = vld [vmem:[%s8361_s26 + $0x6ec] sm:$0xf0] }
 0x218   : > { %4137 = vmatpush.bf16.msra.mxu3 %v6291_v62  ;;  %4081 = vmatpush.bf16.msra.mxu0 %v5491_v14  ;;  %v5938_v44 = vld [vmem:[%s8361_s26 + $0x490] sm:$0xf]  ;;  %v6227_v50 = vor.u32 %v7643_v19, %v6226_v36  ;;  %v3731_v27 = vpop.f32.mrf.mxu1 }
 0x219   : > { %v7571_v45 = vld [vmem:[%s8361_s26 + $0x4ac] sm:$0xf0]  ;;  %4053 = vmatmul.bf16.gmra.mxu2 %v8678_v29 }
 0x21a   : > { %4100 = vmatpush.bf16.msra.mxu1 %v5747_v23  ;;  %v5426_v48 = vld [vmem:[%s8361_s26 + $0x90] sm:$0xf]  ;;  %4120 = vmatpush.bf16.msra.mxu2 %v5971_v15  ;;  %v5939_v58 = vor.u32 %v7571_v45, %v5938_v44  ;;  %v3747_v12 = vpop.f32.mrf.mxu2  ;;  %v3766_v13 = vpop.f32.mrf.mxu3 }
 0x21b   : > { %v7443_v52 = vld [vmem:[%s8361_s26 + $0xac] sm:$0xf0]  ;;  %v3748_v23 = vadd.f32 %v3747_v12, %v3729_v53  ;;  %4015 = vmatmul.bf16.gmra.mxu0 %v8671_v24 }
 0x21c   : > { %4138 = vmatpush.bf16.msra.mxu3 %v6259_v26  ;;  %v5682_v38 = vld [vmem:[%s8361_s26 + $0x290] sm:$0xf]  ;;  %4082 = vmatpush.bf16.msra.mxu0 %v5459_v43  ;;  %v5427_v61 = vor.u32 %v7443_v52, %v5426_v48  ;;  %v3712_v26 = vpop.f32.mrf.mxu0 }
 0x21d   : > { %v7507_v54 = vld [vmem:[%s8361_s26 + $0x2ac] sm:$0xf0]  ;;  %v3713_v31 = vadd.f32 %v3712_v26, %v9100_v34  ;;  %v9157_v37 = vadd.f32 %v3766_v13, %v3748_v23  ;;  %4034 = vmatmul.bf16.gmra.mxu1 %v8673_v25 }
 0x21e   : > { %v6194_v55 = vld [vmem:[%s8361_s26 + $0x690] sm:$0xf]  ;;  %4101 = vmatpush.bf16.msra.mxu1 %v5715_v47  ;;  %v5683_v6 = vor.u32 %v7507_v54, %v5682_v38  ;;  %4121 = vmatpush.bf16.msra.mxu2 %v5939_v58 }
 0x21f   : > { %v7635_v56 = vld [vmem:[%s8361_s26 + $0x6ac] sm:$0xf0]  ;;  %v3732_v43 = vadd.f32 %v3731_v27, %v3713_v31  ;;  %4072 = vmatmul.bf16.gmra.mxu3 %v8680_v30 }
 0x220   : > { %v5906_v62 = vld [vmem:[%s8361_s26 + $0x450] sm:$0xf]  ;;  %4139 = vmatpush.bf16.msra.mxu3 %v6227_v50  ;;  %v6195_v7 = vor.u32 %v7635_v56, %v6194_v55  ;;  %4083 = vmatpush.bf16.msra.mxu0 %v5427_v61  ;;  %v3733_v13 = vpop.f32.mrf.mxu1 }
 0x221   : > { %v7563_v1 = vld [vmem:[%s8361_s26 + $0x46c] sm:$0xf0] }
 0x222   : > { %v5394_v57 = vld [vmem:[%s8361_s26 + $0x50] sm:$0xf]  ;;  %v5907_v32 = vor.u32 %v7563_v1, %v5906_v62  ;;  %4102 = vmatpush.bf16.msra.mxu1 %v5683_v6  ;;  %v3750_v62 = vpop.f32.mrf.mxu2  ;;  %v3769_v1 = vpop.f32.mrf.mxu3 }
 0x223   : > { %v7435_v51 = vld [vmem:[%s8361_s26 + $0x6c] sm:$0xf0] }
 0x224   : > { %v5650_v11 = vld [vmem:[%s8361_s26 + $0x250] sm:$0xf]  ;;  %v5395_v33 = vor.u32 %v7435_v51, %v5394_v57  ;;  %4140 = vmatpush.bf16.msra.mxu3 %v6195_v7  ;;  %4122 = vmatpush.bf16.msra.mxu2 %v5907_v32  ;;  %v3714_v12 = vpop.f32.mrf.mxu0 }
 0x225   : > { %v7499_v14 = vld [vmem:[%s8361_s26 + $0x26c] sm:$0xf0]  ;;  %v3715_v27 = vadd.f32 %v3714_v12, %v9113_v59 }
 0x226   : > { %v6162_v18 = vld [vmem:[%s8361_s26 + $0x650] sm:$0xf]  ;;  %v5651_v39 = vor.u32 %v7499_v14, %v5650_v11  ;;  %4084 = vmatpush.bf16.msra.mxu0 %v5395_v33  ;;  %v3751_v11 = vadd.f32 %v3750_v62, %v3732_v43 }
 0x227   : > { %v7627_v20 = vld [vmem:[%s8361_s26 + $0x66c] sm:$0xf0] }
 0x228   : > { %v5874_v28 = vld [vmem:[%s8361_s26 + $0x410] sm:$0xf]  ;;  %v6163_v41 = vor.u32 %v7627_v20, %v6162_v18  ;;  %4103 = vmatpush.bf16.msra.mxu1 %v5651_v39  ;;  %v9184_v33 = vadd.f32 %v3769_v1, %v3751_v11 }
 0x229   : > { %v7555_v35 = vld [vmem:[%s8361_s26 + $0x42c] sm:$0xf0] }
 0x22a   : > { %v5362_v36 = vld [vmem:[%s8361_s26 + $0x10] sm:$0xf]  ;;  %v5875_v38 = vor.u32 %v7555_v35, %v5874_v28  ;;  %4141 = vmatpush.bf16.msra.mxu3 %v6163_v41  ;;  %v3734_v35 = vadd.f32 %v3733_v13, %v3715_v27 }
 0x22b   : > { %v7427_v19 = vld [vmem:[%s8361_s26 + $0x2c] sm:$0xf0] }
 0x22c   : > { %v5618_v34 = vld [vmem:[%s8361_s26 + $0x210] sm:$0xf]  ;;  %v5363_v53 = vor.u32 %v7427_v19, %v5362_v36  ;;  %4123 = vmatpush.bf16.msra.mxu2 %v5875_v38  ;;  %v3783_v38 = vpop.f32.mrf.mxu0 }
 0x22d   : > { %v7491_v42 = vld [vmem:[%s8361_s26 + $0x22c] sm:$0xf0] }
 0x22e   : > { %v6130_v15 = vld [vmem:[%s8361_s26 + $0x610] sm:$0xf]  ;;  %v5619_v58 = vor.u32 %v7491_v42, %v5618_v34  ;;  %4085 = vmatpush.bf16.msra.mxu0 %v5363_v53  ;;  %v3802_v53 = vpop.f32.mrf.mxu1 }
 0x22f   : > { %v7619_v44 = vld [vmem:[%s8361_s26 + $0x62c] sm:$0xf0]  ;;  %4124 = vmatmul.bf16.vlgmr.msra.gmra.mxu2 %v8513_v5 }
 0x230   : > { %v7122_v45 = vld [vmem:[%s8361_s26 + $0xdd0] sm:$0xf]  ;;  %v6131_v61 = vor.u32 %v7619_v44, %v6130_v15  ;;  %4104 = vmatpush.bf16.msra.mxu1 %v5619_v58  ;;  %v3752_v44 = vpop.f32.mrf.mxu2 }
 0x231   : > { %v7867_v47 = vld [vmem:[%s8361_s26 + $0xdec] sm:$0xf0]  ;;  %4086 = vmatmul.bf16.vlgmr.msra.gmra.mxu0 %v8506_v63 }
 0x232   : > { %v6610_v50 = vld [vmem:[%s8361_s26 + $0x9d0] sm:$0xf]  ;;  %v7123_v6 = vor.u32 %v7867_v47, %v7122_v45  ;;  %4142 = vmatpush.bf16.msra.mxu3 %v6131_v61  ;;  %v3771_v45 = vpop.f32.mrf.mxu3 }
 0x233   : > { %v7739_v48 = vld [vmem:[%s8361_s26 + $0x9ec] sm:$0xf0]  ;;  %4105 = vmatmul.bf16.vlgmr.msra.gmra.mxu1 %v8511_v4 }
 0x234   : > { %v6866_v52 = vld [vmem:[%s8361_s26 + $0xbd0] sm:$0xf]  ;;  %v6611_v7 = vor.u32 %v7739_v48, %v6610_v50  ;;  %4192 = vmatpush.bf16.msrb.mxu2 %v7123_v6 }
 0x235   : > { %v7803_v54 = vld [vmem:[%s8361_s26 + $0xbec] sm:$0xf0]  ;;  %4143 = vmatmul.bf16.vlgmr.msra.gmra.mxu3 %v8518_v9 }
 0x236   : > { %v7378_v55 = vld [vmem:[%s8361_s26 + $0xfd0] sm:$0xf]  ;;  %v6867_v14 = vor.u32 %v7803_v54, %v6866_v52  ;;  %4154 = vmatpush.bf16.msrb.mxu0 %v6611_v7  ;;  %v3753_v52 = vadd.f32 %v3752_v44, %v3734_v35  ;;  %v3803_v54 = vadd.f32 %v3802_v53, %v3783_v38 }
 0x237   : > { %v7931_v56 = vld [vmem:[%s8361_s26 + $0xfec] sm:$0xf0] }
 0x238   : > { %v7090_v57 = vld [vmem:[%s8361_s26 + $0xd90] sm:$0xf]  ;;  %v7379_v18 = vor.u32 %v7931_v56, %v7378_v55  ;;  %4173 = vmatpush.bf16.msrb.mxu1 %v6867_v14  ;;  %v9196_v62 = vadd.f32 %v3771_v45, %v3753_v52  ;;  %v3821_v35 = vpop.f32.mrf.mxu2 }
 0x239   : > { %v7859_v51 = vld [vmem:[%s8361_s26 + $0xdac] sm:$0xf0] }
 0x23a   : > { %v6578_v20 = vld [vmem:[%s8361_s26 + $0x990] sm:$0xf]  ;;  %v7091_v36 = vor.u32 %v7859_v51, %v7090_v57  ;;  %4211 = vmatpush.bf16.msrb.mxu3 %v7379_v18 }
 0x23b   : > { %v7731_v23 = vld [vmem:[%s8361_s26 + $0x9ac] sm:$0xf0] }
 0x23c   : > { %v6834_v26 = vld [vmem:[%s8361_s26 + $0xb90] sm:$0xf]  ;;  %v6579_v59 = vor.u32 %v7731_v23, %v6578_v20  ;;  %4193 = vmatpush.bf16.msrb.mxu2 %v7091_v36  ;;  %v3840_v36 = vpop.f32.mrf.mxu3 }
 0x23d   : > { %v7795_v28 = vld [vmem:[%s8361_s26 + $0xbac] sm:$0xf0] }
 0x23e   : > { %v7346_v31 = vld [vmem:[%s8361_s26 + $0xf90] sm:$0xf]  ;;  %v6835_v19 = vor.u32 %v7795_v28, %v6834_v26  ;;  %4155 = vmatpush.bf16.msrb.mxu0 %v6579_v59 }
 0x23f   : > { %v7923_v32 = vld [vmem:[%s8361_s26 + $0xfac] sm:$0xf0]  ;;  %4129 = vmatmul.bf16.gmra.mxu2 %v8566_v3 }
 0x240   : > { %v7347_v39 = vor.u32 %v7923_v32, %v7346_v31  ;;  %v7058_v41 = vld [vmem:[%s8361_s26 + $0xd50] sm:$0xf]  ;;  %4174 = vmatpush.bf16.msrb.mxu1 %v6835_v19 }
 0x241   : > { %v7851_v34 = vld [vmem:[%s8361_s26 + $0xd6c] sm:$0xf0]  ;;  %4091 = vmatmul.bf16.gmra.mxu0 %v8559_v60 }
 0x242   : > { %v6546_v42 = vld [vmem:[%s8361_s26 + $0x950] sm:$0xf]  ;;  %4212 = vmatpush.bf16.msrb.mxu3 %v7347_v39  ;;  %v7059_v55 = vor.u32 %v7851_v34, %v7058_v41  ;;  %v3822_v41 = vadd.f32 %v3821_v35, %v3803_v54  ;;  %v3785_v34 = vpop.f32.mrf.mxu0 }
 0x243   : > { %v7723_v15 = vld [vmem:[%s8361_s26 + $0x96c] sm:$0xf0]  ;;  %4110 = vmatmul.bf16.gmra.mxu1 %v8564_v2 }
 0x244   : > { %v6802_v43 = vld [vmem:[%s8361_s26 + $0xb50] sm:$0xf]  ;;  %v6547_v56 = vor.u32 %v7723_v15, %v6546_v42  ;;  %4194 = vmatpush.bf16.msrb.mxu2 %v7059_v55  ;;  %v3804_v42 = vpop.f32.mrf.mxu1 }
 0x245   : > { %v7787_v47 = vld [vmem:[%s8361_s26 + $0xb6c] sm:$0xf0]  ;;  %v3805_v15 = vadd.f32 %v3804_v42, %v3785_v34  ;;  %4148 = vmatmul.bf16.gmra.mxu3 %v8570_v8 }
 0x246   : > { %v7314_v50 = vld [vmem:[%s8361_s26 + $0xf50] sm:$0xf]  ;;  %v6803_v1 = vor.u32 %v7787_v47, %v6802_v43  ;;  %4156 = vmatpush.bf16.msrb.mxu0 %v6547_v56 }
 0x247   : > { %v7915_v48 = vld [vmem:[%s8361_s26 + $0xf6c] sm:$0xf0] }
 0x248   : > { %v7026_v58 = vld [vmem:[%s8361_s26 + $0xd10] sm:$0xf]  ;;  %v7315_v6 = vor.u32 %v7915_v48, %v7314_v50  ;;  %4175 = vmatpush.bf16.msrb.mxu1 %v6803_v1  ;;  %v9218_v50 = vadd.f32 %v3840_v36, %v3822_v41 }
 0x249   : > { %v7843_v61 = vld [vmem:[%s8361_s26 + $0xd2c] sm:$0xf0] }
 0x24a   : > { %v6514_v7 = vld [vmem:[%s8361_s26 + $0x910] sm:$0xf]  ;;  %v7027_v14 = vor.u32 %v7843_v61, %v7026_v58  ;;  %4213 = vmatpush.bf16.msrb.mxu3 %v7315_v6 }
 0x24b   : > { %v7715_v57 = vld [vmem:[%s8361_s26 + $0x92c] sm:$0xf0] }
 0x24c   : > { %v6770_v51 = vld [vmem:[%s8361_s26 + $0xb10] sm:$0xf]  ;;  %v6515_v18 = vor.u32 %v7715_v57, %v6514_v7  ;;  %4195 = vmatpush.bf16.msrb.mxu2 %v7027_v14  ;;  %v3823_v14 = vpop.f32.mrf.mxu2 }
 0x24d   : > { %v7779_v11 = vld [vmem:[%s8361_s26 + $0xb2c] sm:$0xf0] }
 0x24e   : > { %v7282_v12 = vld [vmem:[%s8361_s26 + $0xf10] sm:$0xf]  ;;  %v6771_v26 = vor.u32 %v7779_v11, %v6770_v51  ;;  %4157 = vmatpush.bf16.msrb.mxu0 %v6515_v18  ;;  %v3842_v18 = vpop.f32.mrf.mxu3 }
 0x24f   : > { %v7907_v13 = vld [vmem:[%s8361_s26 + $0xf2c] sm:$0xf0] }
 0x250   : > { %v6994_v20 = vld [vmem:[%s8361_s26 + $0xcd0] sm:$0xf]  ;;  %v7283_v27 = vor.u32 %v7907_v13, %v7282_v12  ;;  %4176 = vmatpush.bf16.msrb.mxu1 %v6771_v26 }
 0x251   : > { %v7835_v23 = vld [vmem:[%s8361_s26 + $0xcec] sm:$0xf0] }
 0x252   : > { %v6482_v28 = vld [vmem:[%s8361_s26 + $0x8d0] sm:$0xf]  ;;  %v6995_v43 = vor.u32 %v7835_v23, %v6994_v20  ;;  %4214 = vmatpush.bf16.msrb.mxu3 %v7283_v27  ;;  %v3824_v27 = vadd.f32 %v3823_v14, %v3805_v15  ;;  %v6068_v14 = vld [vmem:[%s8361_s26 + $0x5b0] sm:$0xf0] }
 0x253   : > { %v7707_v31 = vld [vmem:[%s8361_s26 + $0x8ec] sm:$0xf0] }
 0x254   : > { %v6738_v32 = vld [vmem:[%s8361_s26 + $0xad0] sm:$0xf]  ;;  %v6483_v44 = vor.u32 %v7707_v31, %v6482_v28  ;;  %4196 = vmatpush.bf16.msrb.mxu2 %v6995_v43  ;;  %v3788_v28 = vpop.f32.mrf.mxu0  ;;  %v3807_v31 = vpop.f32.mrf.mxu1  ;;  %v9238_v34 = vadd.f32 %v3842_v18, %v3824_v27 }
 0x255   : > { %v7771_v59 = vld [vmem:[%s8361_s26 + $0xaec] sm:$0xf0]  ;;  %v3808_v35 = vadd.f32 %v3807_v31, %v3788_v28  ;;  %v7471_v28 = vld [vmem:[%s8361_s26 + $0x194] sm:$0xf] }
 0x256   : > { %v7250_v19 = vld [vmem:[%s8361_s26 + $0xed0] sm:$0xf]  ;;  %v6739_v48 = vor.u32 %v7771_v59, %v6738_v32  ;;  %4158 = vmatpush.bf16.msrb.mxu0 %v6483_v44  ;;  %v5556_v31 = vld [vmem:[%s8361_s26 + $0x1b0] sm:$0xf0] }
 0x257   : > { %v7899_v39 = vld [vmem:[%s8361_s26 + $0xeec] sm:$0xf0] }
 0x258   : > { %v6962_v45 = vld [vmem:[%s8361_s26 + $0xc90] sm:$0xf]  ;;  %v7251_v52 = vor.u32 %v7899_v39, %v7250_v19  ;;  %4177 = vmatpush.bf16.msrb.mxu1 %v6739_v48  ;;  %v7607_v48 = vld [vmem:[%s8361_s26 + $0x5d4] sm:$0xf] }
 0x259   : > { %v7827_v47 = vld [vmem:[%s8361_s26 + $0xcac] sm:$0xf0] }
 0x25a   : > { %v6450_v38 = vld [vmem:[%s8361_s26 + $0x890] sm:$0xf]  ;;  %v6963_v61 = vor.u32 %v7827_v47, %v6962_v45  ;;  %4215 = vmatpush.bf16.msrb.mxu3 %v7251_v52  ;;  %v6100_v52 = vld [vmem:[%s8361_s26 + $0x5f0] sm:$0xf0] }
 0x25b   : > { %v7699_v53 = vld [vmem:[%s8361_s26 + $0x8ac] sm:$0xf0] }
 0x25c   : > { %v6706_v54 = vld [vmem:[%s8361_s26 + $0xa90] sm:$0xf]  ;;  %v6451_v1 = vor.u32 %v7699_v53, %v6450_v38  ;;  %4197 = vmatpush.bf16.msrb.mxu2 %v6963_v61  ;;  %v7479_v38 = vld [vmem:[%s8361_s26 + $0x1d4] sm:$0xf] }
 0x25d   : > { %v7763_v55 = vld [vmem:[%s8361_s26 + $0xaac] sm:$0xf0]  ;;  %v5588_v53 = vld [vmem:[%s8361_s26 + $0x1f0] sm:$0xf0] }
 0x25e   : > { %v7218_v56 = vld [vmem:[%s8361_s26 + $0xe90] sm:$0xf]  ;;  %v6707_v57 = vor.u32 %v7763_v55, %v6706_v54  ;;  %4159 = vmatpush.bf16.msrb.mxu0 %v6451_v1  ;;  %v7543_v54 = vld [vmem:[%s8361_s26 + $0x3d4] sm:$0xf] }
 0x25f   : > { %v7891_v58 = vld [vmem:[%s8361_s26 + $0xeac] sm:$0xf0]  ;;  %v7671_v61 = vld [vmem:[%s8361_s26 + $0x7d4] sm:$0xf] }
 0x260   : > { %v6930_v6 = vld [vmem:[%s8361_s26 + $0xc50] sm:$0xf]  ;;  %v7219_v51 = vor.u32 %v7891_v58, %v7218_v56  ;;  %4178 = vmatpush.bf16.msrb.mxu1 %v6707_v57  ;;  %v5844_v58 = vld [vmem:[%s8361_s26 + $0x3f0] sm:$0xf0]  ;;  %v3826_v57 = vpop.f32.mrf.mxu2 }
 0x261   : > { %v7819_v7 = vld [vmem:[%s8361_s26 + $0xc6c] sm:$0xf0]  ;;  %v6356_v1 = vld [vmem:[%s8361_s26 + $0x7f0] sm:$0xf0]  ;;  %v3827_v18 = vadd.f32 %v3826_v57, %v3808_v35 }
 0x262   : > { %v6418_v11 = vld [vmem:[%s8361_s26 + $0x850] sm:$0xf]  ;;  %v6931_v36 = vor.u32 %v7819_v7, %v6930_v6  ;;  %4216 = vmatpush.bf16.msrb.mxu3 %v7219_v51  ;;  %v3845_v51 = vpop.f32.mrf.mxu3  ;;  %v6359_v27 = vor.u32 %v7671_v61, %v6356_v1 }
 0x263   : > { %v7691_v12 = vld [vmem:[%s8361_s26 + $0x86c] sm:$0xf0] }
 0x264   : > { %v6674_v13 = vld [vmem:[%s8361_s26 + $0xa50] sm:$0xf]  ;;  %v6419_v59 = vor.u32 %v7691_v12, %v6418_v11  ;;  %4198 = vmatpush.bf16.msrb.mxu2 %v6931_v36  ;;  %v6103_v11 = vor.u32 %v7607_v48, %v6100_v52  ;;  %v5591_v12 = vor.u32 %v7479_v38, %v5588_v53  ;;  %v5524_v48 = vld [vmem:[%s8361_s26 + $0x170] sm:$0xf0] }
 0x265   : > { %v7755_v20 = vld [vmem:[%s8361_s26 + $0xa6c] sm:$0xf0]  ;;  %v7527_v52 = vld [vmem:[%s8361_s26 + $0x354] sm:$0xf] }
 0x266   : > { %v7186_v23 = vld [vmem:[%s8361_s26 + $0xe50] sm:$0xf]  ;;  %v6675_v42 = vor.u32 %v7755_v20, %v6674_v13  ;;  %4160 = vmatpush.bf16.msrb.mxu0 %v6419_v59  ;;  %v7599_v13 = vld [vmem:[%s8361_s26 + $0x594] sm:$0xf]  ;;  %v3790_v20 = vpop.f32.mrf.mxu0 }
 0x267   : > { %v7883_v26 = vld [vmem:[%s8361_s26 + $0xe6c] sm:$0xf0]  ;;  %v5812_v59 = vld [vmem:[%s8361_s26 + $0x3b0] sm:$0xf0]  ;;  %v6071_v35 = vor.u32 %v7599_v13, %v6068_v14 }
 0x268   : > { %v6898_v32 = vld [vmem:[%s8361_s26 + $0xc10] sm:$0xf]  ;;  %v7187_v15 = vor.u32 %v7883_v26, %v7186_v23  ;;  %4179 = vmatpush.bf16.msrb.mxu1 %v6675_v42  ;;  %v3809_v23 = vpop.f32.mrf.mxu1  ;;  %v5847_v26 = vor.u32 %v7543_v54, %v5844_v58  ;;  %v5559_v42 = vor.u32 %v7471_v28, %v5556_v31  ;;  %v3828_v38 = vpop.f32.mrf.mxu2  ;;  %v5780_v54 = vld [vmem:[%s8361_s26 + $0x370] sm:$0xf0] }
 0x269   : > { %v7811_v19 = vld [vmem:[%s8361_s26 + $0xc2c] sm:$0xf0]  ;;  %v3810_v36 = vadd.f32 %v3809_v23, %v3790_v20  ;;  %v5783_v13 = vor.u32 %v7527_v52, %v5780_v54  ;;  %v5492_v20 = vld [vmem:[%s8361_s26 + $0x130] sm:$0xf0] }
 0x26a   : > { %v6386_v39 = vld [vmem:[%s8361_s26 + $0x810] sm:$0xf]  ;;  %v6899_v55 = vor.u32 %v7811_v19, %v6898_v32  ;;  %4217 = vmatpush.bf16.msrb.mxu3 %v7187_v15  ;;  %v7535_v32 = vld [vmem:[%s8361_s26 + $0x394] sm:$0xf]  ;;  %v3847_v53 = vpop.f32.mrf.mxu3 }
 0x26b   : > { %v7683_v41 = vld [vmem:[%s8361_s26 + $0x82c] sm:$0xf0]  ;;  %v7663_v19 = vld [vmem:[%s8361_s26 + $0x794] sm:$0xf]  ;;  %v5815_v15 = vor.u32 %v7535_v32, %v5812_v59  ;;  %v3829_v58 = vadd.f32 %v3828_v38, %v3810_v36 }
 0x26c   : > { %v6642_v43 = vld [vmem:[%s8361_s26 + $0xa10] sm:$0xf]  ;;  %v6387_v56 = vor.u32 %v7683_v41, %v6386_v39  ;;  %4199 = vmatpush.bf16.msrb.mxu2 %v6899_v55  ;;  %v6324_v39 = vld [vmem:[%s8361_s26 + $0x7b0] sm:$0xf0]  ;;  %v9264_v41 = vadd.f32 %v3845_v51, %v3827_v18 }
 0x26d   : > { %v7747_v44 = vld [vmem:[%s8361_s26 + $0xa2c] sm:$0xf0]  ;;  %v7655_v55 = vld [vmem:[%s8361_s26 + $0x754] sm:$0xf] }
 0x26e   : > { %v7154_v45 = vld [vmem:[%s8361_s26 + $0xe10] sm:$0xf]  ;;  %v6643_v6 = vor.u32 %v7747_v44, %v6642_v43  ;;  %4161 = vmatpush.bf16.msrb.mxu0 %v6387_v56  ;;  %v6327_v43 = vor.u32 %v7663_v19, %v6324_v39  ;;  %v7591_v44 = vld [vmem:[%s8361_s26 + $0x554] sm:$0xf]  ;;  %v3859_v61 = vpop.f32.mrf.mxu0 }
 0x26f   : > { %v7875_v47 = vld [vmem:[%s8361_s26 + $0xe2c] sm:$0xf0]  ;;  %v6292_v56 = vld [vmem:[%s8361_s26 + $0x770] sm:$0xf0]  ;;  %4200 = vmatmul.bf16.vlgmr.msrb.gmra.mxu2 %v8626_v21 }
 0x270   : > { %v7155_v7 = vor.u32 %v7875_v47, %v7154_v45  ;;  %4180 = vmatpush.bf16.msrb.mxu1 %v6643_v6  ;;  %4268 = vmatpush.bf16.msra.mxu2 %v6103_v11  ;;  %v6036_v45 = vld [vmem:[%s8361_s26 + $0x570] sm:$0xf0]  ;;  %v3878_v1 = vpop.f32.mrf.mxu1  ;;  %v3860_v6 = vadd.f32 %v3859_v61, %v9218_v50  ;;  %v6295_v14 = vor.u32 %v7655_v55, %v6292_v56 }
 0x271   : > { %v7463_v47 = vld [vmem:[%s8361_s26 + $0x154] sm:$0xf]  ;;  %4162 = vmatmul.bf16.vlgmr.msrb.gmra.mxu0 %v8619_v16 }
 0x272   : > { %4218 = vmatpush.bf16.msrb.mxu3 %v7155_v7  ;;  %4230 = vmatpush.bf16.msra.mxu0 %v5591_v12  ;;  %v6039_v7 = vor.u32 %v7591_v44, %v6036_v45  ;;  %v5527_v57 = vor.u32 %v7463_v47, %v5524_v48  ;;  %v7583_v51 = vld [vmem:[%s8361_s26 + $0x514] sm:$0xf]  ;;  %v9277_v12 = vadd.f32 %v3847_v53, %v3829_v58  ;;  %v3916_v44 = vpop.f32.mrf.mxu3 }
 0x273   : > { %v6004_v11 = vld [vmem:[%s8361_s26 + $0x530] sm:$0xf0]  ;;  %4181 = vmatmul.bf16.vlgmr.msrb.gmra.mxu1 %v8621_v17 }
 0x274   : > { %4249 = vmatpush.bf16.msra.mxu1 %v5847_v26  ;;  %4269 = vmatpush.bf16.msra.mxu2 %v6071_v35  ;;  %v7455_v18 = vld [vmem:[%s8361_s26 + $0x114] sm:$0xf]  ;;  %v3879_v26 = vadd.f32 %v3878_v1, %v3860_v6  ;;  %v6007_v31 = vor.u32 %v7583_v51, %v6004_v11 }
 0x275   : > { %v7519_v23 = vld [vmem:[%s8361_s26 + $0x314] sm:$0xf]  ;;  %4219 = vmatmul.bf16.vlgmr.msrb.gmra.mxu3 %v8628_v22  ;;  %v5495_v32 = vor.u32 %v7455_v18, %v5492_v20 }
 0x276   : > { %4287 = vmatpush.bf16.msra.mxu3 %v6359_v27  ;;  %4231 = vmatpush.bf16.msra.mxu0 %v5559_v42  ;;  %v5748_v50 = vld [vmem:[%s8361_s26 + $0x330] sm:$0xf0]  ;;  %v3861_v38 = vpop.f32.mrf.mxu0 }
 0x277   : > { %v7647_v27 = vld [vmem:[%s8361_s26 + $0x714] sm:$0xf]  ;;  %v5751_v19 = vor.u32 %v7519_v23, %v5748_v50  ;;  %v3862_v54 = vadd.f32 %v3861_v38, %v9238_v34 }
 0x278   : > { %4250 = vmatpush.bf16.msra.mxu1 %v5815_v15  ;;  %v6260_v28 = vld [vmem:[%s8361_s26 + $0x730] sm:$0xf0]  ;;  %4270 = vmatpush.bf16.msra.mxu2 %v6039_v7  ;;  %v3880_v53 = vpop.f32.mrf.mxu1 }
 0x279   : > { %v7575_v36 = vld [vmem:[%s8361_s26 + $0x4d4] sm:$0xf]  ;;  %v6263_v39 = vor.u32 %v7647_v27, %v6260_v28  ;;  %v3881_v11 = vadd.f32 %v3880_v53, %v3862_v54 }
 0x27a   : > { %4288 = vmatpush.bf16.msra.mxu3 %v6327_v43  ;;  %4232 = vmatpush.bf16.msra.mxu0 %v5527_v57  ;;  %v5972_v59 = vld [vmem:[%s8361_s26 + $0x4f0] sm:$0xf0]  ;;  %v3897_v43 = vpop.f32.mrf.mxu2 }
 0x27b   : > { %v7447_v35 = vld [vmem:[%s8361_s26 + $0xd4] sm:$0xf]  ;;  %v3898_v52 = vadd.f32 %v3897_v43, %v3879_v26  ;;  %v5975_v55 = vor.u32 %v7575_v36, %v5972_v59 }
 0x27c   : > { %4251 = vmatpush.bf16.msra.mxu1 %v5783_v13  ;;  %v5460_v42 = vld [vmem:[%s8361_s26 + $0xf0] sm:$0xf0]  ;;  %4271 = vmatpush.bf16.msra.mxu2 %v6007_v31 }
 0x27d   : > { %v7511_v15 = vld [vmem:[%s8361_s26 + $0x2d4] sm:$0xf]  ;;  %v5463_v56 = vor.u32 %v7447_v35, %v5460_v42  ;;  %v9300_v1 = vadd.f32 %v3916_v44, %v3898_v52 }
 0x27e   : > { %4289 = vmatpush.bf16.msra.mxu3 %v6295_v14  ;;  %v5716_v45 = vld [vmem:[%s8361_s26 + $0x2f0] sm:$0xf0]  ;;  %4233 = vmatpush.bf16.msra.mxu0 %v5495_v32  ;;  %v3864_v43 = vpop.f32.mrf.mxu0 }
 0x27f   : > { %v7639_v47 = vld [vmem:[%s8361_s26 + $0x6d4] sm:$0xf]  ;;  %v5719_v6 = vor.u32 %v7511_v15, %v5716_v45  ;;  %4205 = vmatmul.bf16.gmra.mxu2 %v8678_v29 }
 0x280   : > { %v6228_v48 = vld [vmem:[%s8361_s26 + $0x6f0] sm:$0xf0]  ;;  %4252 = vmatpush.bf16.msra.mxu1 %v5751_v19  ;;  %4272 = vmatpush.bf16.msra.mxu2 %v5975_v55  ;;  %v3918_v19 = vpop.f32.mrf.mxu3  ;;  %v3883_v44 = vpop.f32.mrf.mxu1 }
 0x281   : > { %v7567_v58 = vld [vmem:[%s8361_s26 + $0x494] sm:$0xf]  ;;  %v6231_v7 = vor.u32 %v7639_v47, %v6228_v48  ;;  %v3865_v47 = vadd.f32 %v3864_v43, %v9264_v41  ;;  %4167 = vmatmul.bf16.gmra.mxu0 %v8671_v24 }
 0x282   : > { %v5940_v61 = vld [vmem:[%s8361_s26 + $0x4b0] sm:$0xf0]  ;;  %4290 = vmatpush.bf16.msra.mxu3 %v6263_v39  ;;  %4234 = vmatpush.bf16.msra.mxu0 %v5463_v56  ;;  %v3899_v59 = vpop.f32.mrf.mxu2 }
 0x283   : > { %v7439_v57 = vld [vmem:[%s8361_s26 + $0x94] sm:$0xf]  ;;  %v5943_v20 = vor.u32 %v7567_v58, %v5940_v61  ;;  %v3900_v15 = vadd.f32 %v3899_v59, %v3881_v11  ;;  %4186 = vmatmul.bf16.gmra.mxu1 %v8673_v25 }
 0x284   : > { %v5428_v51 = vld [vmem:[%s8361_s26 + $0xb0] sm:$0xf0]  ;;  %4253 = vmatpush.bf16.msra.mxu1 %v5719_v6 }
 0x285   : > { %v7503_v34 = vld [vmem:[%s8361_s26 + $0x294] sm:$0xf]  ;;  %v5431_v23 = vor.u32 %v7439_v57, %v5428_v51  ;;  %4273 = vmatpush.bf16.msra.mxu2 %v5943_v20  ;;  %v9321_v55 = vadd.f32 %v3918_v19, %v3900_v15  ;;  %4224 = vmatmul.bf16.gmra.mxu3 %v8680_v30 }
 0x286   : > { %v5684_v13 = vld [vmem:[%s8361_s26 + $0x2b0] sm:$0xf0]  ;;  %4291 = vmatpush.bf16.msra.mxu3 %v6231_v7  ;;  %v3884_v7 = vadd.f32 %v3883_v44, %v3865_v47 }
 0x287   : > { %v7631_v14 = vld [vmem:[%s8361_s26 + $0x694] sm:$0xf]  ;;  %v5687_v27 = vor.u32 %v7503_v34, %v5684_v13  ;;  %4235 = vmatpush.bf16.msra.mxu0 %v5431_v23 }
 0x288   : > { %v6196_v18 = vld [vmem:[%s8361_s26 + $0x6b0] sm:$0xf0]  ;;  %v3885_v15 = vpop.f32.mrf.mxu1 }
 0x289   : > { %v7559_v26 = vld [vmem:[%s8361_s26 + $0x454] sm:$0xf]  ;;  %v6199_v28 = vor.u32 %v7631_v14, %v6196_v18  ;;  %4254 = vmatpush.bf16.msra.mxu1 %v5687_v27 }
 0x28a   : > { %v5908_v50 = vld [vmem:[%s8361_s26 + $0x470] sm:$0xf0] }
 0x28b   : > { %v7431_v31 = vld [vmem:[%s8361_s26 + $0x54] sm:$0xf]  ;;  %v5911_v48 = vor.u32 %v7559_v26, %v5908_v50  ;;  %4292 = vmatpush.bf16.msra.mxu3 %v6199_v28 }
 0x28c   : > { %v5396_v32 = vld [vmem:[%s8361_s26 + $0x70] sm:$0xf0] }
 0x28d   : > { %v7495_v36 = vld [vmem:[%s8361_s26 + $0x254] sm:$0xf]  ;;  %v5399_v52 = vor.u32 %v7431_v31, %v5396_v32  ;;  %4274 = vmatpush.bf16.msra.mxu2 %v5911_v48  ;;  %v3902_v31 = vpop.f32.mrf.mxu2  ;;  %v3921_v32 = vpop.f32.mrf.mxu3 }
 0x28e   : > { %v5652_v39 = vld [vmem:[%s8361_s26 + $0x270] sm:$0xf0] }
 0x28f   : > { %v7623_v35 = vld [vmem:[%s8361_s26 + $0x654] sm:$0xf]  ;;  %v5655_v56 = vor.u32 %v7495_v36, %v5652_v39  ;;  %4236 = vmatpush.bf16.msra.mxu0 %v5399_v52 }
 0x290   : > { %v6164_v42 = vld [vmem:[%s8361_s26 + $0x670] sm:$0xf0] }
 0x291   : > { %v7551_v45 = vld [vmem:[%s8361_s26 + $0x414] sm:$0xf]  ;;  %v6167_v58 = vor.u32 %v7623_v35, %v6164_v42  ;;  %4255 = vmatpush.bf16.msra.mxu1 %v5655_v56  ;;  %v3903_v35 = vadd.f32 %v3902_v31, %v3884_v7  ;;  %v3866_v42 = vpop.f32.mrf.mxu0 }
 0x292   : > { %v5876_v38 = vld [vmem:[%s8361_s26 + $0x430] sm:$0xf0]  ;;  %v3867_v52 = vadd.f32 %v3866_v42, %v9277_v12 }
 0x293   : > { %v7423_v53 = vld [vmem:[%s8361_s26 + $0x14] sm:$0xf]  ;;  %v5879_v18 = vor.u32 %v7551_v45, %v5876_v38  ;;  %4293 = vmatpush.bf16.msra.mxu3 %v6167_v58  ;;  %v9348_v56 = vadd.f32 %v3921_v32, %v3903_v35 }
 0x294   : > { %v5364_v54 = vld [vmem:[%s8361_s26 + $0x30] sm:$0xf0]  ;;  %v3886_v58 = vadd.f32 %v3885_v15, %v3867_v52 }
 0x295   : > { %v7487_v41 = vld [vmem:[%s8361_s26 + $0x214] sm:$0xf]  ;;  %v5367_v20 = vor.u32 %v7423_v53, %v5364_v54  ;;  %4275 = vmatpush.bf16.msra.mxu2 %v5879_v18 }
 0x296   : > { %v5620_v61 = vld [vmem:[%s8361_s26 + $0x230] sm:$0xf0] }
 0x297   : > { %v7615_v6 = vld [vmem:[%s8361_s26 + $0x614] sm:$0xf]  ;;  %v5623_v27 = vor.u32 %v7487_v41, %v5620_v61  ;;  %4237 = vmatpush.bf16.msra.mxu0 %v5367_v20 }
 0x298   : > { %v6132_v57 = vld [vmem:[%s8361_s26 + $0x630] sm:$0xf0]  ;;  %4276 = vmatmul.bf16.vlgmr.msra.gmra.mxu2 %v8513_v5 }
 0x299   : > { %v7863_v51 = vld [vmem:[%s8361_s26 + $0xdd4] sm:$0xf]  ;;  %v6135_v28 = vor.u32 %v7615_v6, %v6132_v57  ;;  %4256 = vmatpush.bf16.msra.mxu1 %v5623_v27  ;;  %v3954_v27 = vpop.f32.mrf.mxu1 }
 0x29a   : > { %v7124_v34 = vld [vmem:[%s8361_s26 + $0xdf0] sm:$0xf0]  ;;  %4238 = vmatmul.bf16.vlgmr.msra.gmra.mxu0 %v8506_v63 }
 0x29b   : > { %v7735_v11 = vld [vmem:[%s8361_s26 + $0x9d4] sm:$0xf]  ;;  %v7127_v36 = vor.u32 %v7863_v51, %v7124_v34  ;;  %4294 = vmatpush.bf16.msra.mxu3 %v6135_v28 }
 0x29c   : > { %v6612_v13 = vld [vmem:[%s8361_s26 + $0x9f0] sm:$0xf0]  ;;  %4257 = vmatmul.bf16.vlgmr.msra.gmra.mxu1 %v8511_v4 }
 0x29d   : > { %v7799_v14 = vld [vmem:[%s8361_s26 + $0xbd4] sm:$0xf]  ;;  %v6615_v59 = vor.u32 %v7735_v11, %v6612_v13  ;;  %4344 = vmatpush.bf16.msrb.mxu2 %v7127_v36  ;;  %v3904_v13 = vpop.f32.mrf.mxu2 }
 0x29e   : > { %v6868_v23 = vld [vmem:[%s8361_s26 + $0xbf0] sm:$0xf0]  ;;  %4295 = vmatmul.bf16.vlgmr.msra.gmra.mxu3 %v8518_v9 }
 0x29f   : > { %v7927_v26 = vld [vmem:[%s8361_s26 + $0xfd4] sm:$0xf]  ;;  %v6871_v43 = vor.u32 %v7799_v14, %v6868_v23  ;;  %4306 = vmatpush.bf16.msrb.mxu0 %v6615_v59  ;;  %v3923_v14 = vpop.f32.mrf.mxu3 }
 0x2a0   : > { %v7380_v50 = vld [vmem:[%s8361_s26 + $0xff0] sm:$0xf0] }
 0x2a1   : > { %v7855_v19 = vld [vmem:[%s8361_s26 + $0xd94] sm:$0xf]  ;;  %v7383_v44 = vor.u32 %v7927_v26, %v7380_v50  ;;  %4325 = vmatpush.bf16.msrb.mxu1 %v6871_v43  ;;  %v3905_v26 = vadd.f32 %v3904_v13, %v3886_v58  ;;  %v3935_v50 = vpop.f32.mrf.mxu0 }
 0x2a2   : > { %v7092_v39 = vld [vmem:[%s8361_s26 + $0xdb0] sm:$0xf0]  ;;  %v3955_v28 = vadd.f32 %v3954_v27, %v3935_v50 }
 0x2a3   : > { %v7727_v45 = vld [vmem:[%s8361_s26 + $0x994] sm:$0xf]  ;;  %v7095_v41 = vor.u32 %v7855_v19, %v7092_v39  ;;  %4363 = vmatpush.bf16.msrb.mxu3 %v7383_v44  ;;  %v9360_v19 = vadd.f32 %v3923_v14, %v3905_v26  ;;  %v3956_v14 = vpop.f32.mrf.mxu1 }
 0x2a4   : > { %v6580_v47 = vld [vmem:[%s8361_s26 + $0x9b0] sm:$0xf0] }
 0x2a5   : > { %v7791_v48 = vld [vmem:[%s8361_s26 + $0xb94] sm:$0xf]  ;;  %v6583_v12 = vor.u32 %v7727_v45, %v6580_v47  ;;  %4345 = vmatpush.bf16.msrb.mxu2 %v7095_v41  ;;  %10239 = vst [vmem:[#allocation19_spill] sm:$0xff] %v9360_v19 }
 0x2a6   : > { %v6836_v38 = vld [vmem:[%s8361_s26 + $0xbb0] sm:$0xf0] }
 0x2a7   : > { %v7919_v53 = vld [vmem:[%s8361_s26 + $0xf94] sm:$0xf]  ;;  %v6839_v61 = vor.u32 %v7791_v48, %v6836_v38  ;;  %4307 = vmatpush.bf16.msrb.mxu0 %v6583_v12 }
 0x2a8   : > { %v7348_v54 = vld [vmem:[%s8361_s26 + $0xfb0] sm:$0xf0]  ;;  %4281 = vmatmul.bf16.gmra.mxu2 %v8566_v3 }
 0x2a9   : > { %v7351_v6 = vor.u32 %v7919_v53, %v7348_v54  ;;  %v7847_v7 = vld [vmem:[%s8361_s26 + $0xd54] sm:$0xf]  ;;  %4326 = vmatpush.bf16.msrb.mxu1 %v6839_v61  ;;  %v3937_v13 = vpop.f32.mrf.mxu0 }
 0x2aa   : > { %v7060_v57 = vld [vmem:[%s8361_s26 + $0xd70] sm:$0xf0]  ;;  %4243 = vmatmul.bf16.gmra.mxu0 %v8559_v60 }
 0x2ab   : > { %v7719_v51 = vld [vmem:[%s8361_s26 + $0x954] sm:$0xf]  ;;  %4364 = vmatpush.bf16.msrb.mxu3 %v7351_v6  ;;  %v7063_v31 = vor.u32 %v7847_v7, %v7060_v57  ;;  %v3973_v6 = vpop.f32.mrf.mxu2  ;;  %v3992_v7 = vpop.f32.mrf.mxu3 }
 0x2ac   : > { %v6548_v34 = vld [vmem:[%s8361_s26 + $0x970] sm:$0xf0]  ;;  %4262 = vmatmul.bf16.gmra.mxu1 %v8564_v2 }
 0x2ad   : > { %v7783_v11 = vld [vmem:[%s8361_s26 + $0xb54] sm:$0xf]  ;;  %v6551_v32 = vor.u32 %v7719_v51, %v6548_v34  ;;  %4346 = vmatpush.bf16.msrb.mxu2 %v7063_v31 }
 0x2ae   : > { %v6804_v18 = vld [vmem:[%s8361_s26 + $0xb70] sm:$0xf0]  ;;  %4300 = vmatmul.bf16.gmra.mxu3 %v8570_v8 }
 0x2af   : > { %v7911_v20 = vld [vmem:[%s8361_s26 + $0xf54] sm:$0xf]  ;;  %v6807_v39 = vor.u32 %v7783_v11, %v6804_v18  ;;  %4308 = vmatpush.bf16.msrb.mxu0 %v6551_v32  ;;  %v3974_v11 = vadd.f32 %v3973_v6, %v3955_v28  ;;  %v3957_v18 = vadd.f32 %v3956_v14, %v3937_v13 }
 0x2b0   : > { %v7316_v23 = vld [vmem:[%s8361_s26 + $0xf70] sm:$0xf0] }
 0x2b1   : > { %v7839_v36 = vld [vmem:[%s8361_s26 + $0xd14] sm:$0xf]  ;;  %v7319_v35 = vor.u32 %v7911_v20, %v7316_v23  ;;  %4327 = vmatpush.bf16.msrb.mxu1 %v6807_v39  ;;  %v9382_v27 = vadd.f32 %v3992_v7, %v3974_v11  ;;  %v3940_v7 = vpop.f32.mrf.mxu0 }
 0x2b2   : > { %v7028_v59 = vld [vmem:[%s8361_s26 + $0xd30] sm:$0xf0] }
 0x2b3   : > { %v7711_v42 = vld [vmem:[%s8361_s26 + $0x914] sm:$0xf]  ;;  %v7031_v48 = vor.u32 %v7839_v36, %v7028_v59  ;;  %4365 = vmatpush.bf16.msrb.mxu3 %v7319_v35 }
 0x2b4   : > { %v6516_v15 = vld [vmem:[%s8361_s26 + $0x930] sm:$0xf0] }
 0x2b5   : > { %v7775_v43 = vld [vmem:[%s8361_s26 + $0xb14] sm:$0xf]  ;;  %v6519_v52 = vor.u32 %v7711_v42, %v6516_v15  ;;  %4347 = vmatpush.bf16.msrb.mxu2 %v7031_v48 }
 0x2b6   : > { %v6772_v44 = vld [vmem:[%s8361_s26 + $0xb30] sm:$0xf0] }
 0x2b7   : > { %v7903_v45 = vld [vmem:[%s8361_s26 + $0xf14] sm:$0xf]  ;;  %v6775_v54 = vor.u32 %v7775_v43, %v6772_v44  ;;  %4309 = vmatpush.bf16.msrb.mxu0 %v6519_v52 }
 0x2b8   : > { %v7284_v47 = vld [vmem:[%s8361_s26 + $0xf30] sm:$0xf0] }
 0x2b9   : > { %v7831_v38 = vld [vmem:[%s8361_s26 + $0xcd4] sm:$0xf]  ;;  %v7287_v58 = vor.u32 %v7903_v45, %v7284_v47  ;;  %4328 = vmatpush.bf16.msrb.mxu1 %v6775_v54  ;;  %v3975_v54 = vpop.f32.mrf.mxu2 }
 0x2ba   : > { %v6996_v53 = vld [vmem:[%s8361_s26 + $0xcf0] sm:$0xf0]  ;;  %v3976_v6 = vadd.f32 %v3975_v54, %v3957_v18 }
 0x2bb   : > { %v7703_v41 = vld [vmem:[%s8361_s26 + $0x8d4] sm:$0xf]  ;;  %v6999_v20 = vor.u32 %v7831_v38, %v6996_v53  ;;  %4366 = vmatpush.bf16.msrb.mxu3 %v7287_v58  ;;  %v3994_v58 = vpop.f32.mrf.mxu3 }
 0x2bc   : > { %v6484_v12 = vld [vmem:[%s8361_s26 + $0x8f0] sm:$0xf0] }
 0x2bd   : > { %v7767_v61 = vld [vmem:[%s8361_s26 + $0xad4] sm:$0xf]  ;;  %v6487_v23 = vor.u32 %v7703_v41, %v6484_v12  ;;  %4348 = vmatpush.bf16.msrb.mxu2 %v6999_v20 }
 0x2be   : > { %v6740_v57 = vld [vmem:[%s8361_s26 + $0xaf0] sm:$0xf0] }
 0x2bf   : > { %v7895_v51 = vld [vmem:[%s8361_s26 + $0xed4] sm:$0xf]  ;;  %v6743_v28 = vor.u32 %v7767_v61, %v6740_v57  ;;  %4310 = vmatpush.bf16.msrb.mxu0 %v6487_v23  ;;  %v3959_v57 = vpop.f32.mrf.mxu1 }
 0x2c0   : > { %v7252_v34 = vld [vmem:[%s8361_s26 + $0xef0] sm:$0xf0] }
 0x2c1   : > { %v7823_v26 = vld [vmem:[%s8361_s26 + $0xc94] sm:$0xf]  ;;  %v7255_v31 = vor.u32 %v7895_v51, %v7252_v34  ;;  %4329 = vmatpush.bf16.msrb.mxu1 %v6743_v28  ;;  %v3960_v34 = vadd.f32 %v3959_v57, %v3940_v7  ;;  %v3942_v7 = vpop.f32.mrf.mxu0 }
 0x2c2   : > { %v6964_v50 = vld [vmem:[%s8361_s26 + $0xcb0] sm:$0xf0] }
 0x2c3   : > { %v7695_v32 = vld [vmem:[%s8361_s26 + $0x894] sm:$0xf]  ;;  %v6967_v15 = vor.u32 %v7823_v26, %v6964_v50  ;;  %4367 = vmatpush.bf16.msrb.mxu3 %v7255_v31  ;;  %v9402_v26 = vadd.f32 %v3994_v58, %v3976_v6  ;;  %v3997_v54 = vpop.f32.mrf.mxu3 }
 0x2c4   : > { %v6452_v36 = vld [vmem:[%s8361_s26 + $0x8b0] sm:$0xf0] }
 0x2c5   : > { %v7759_v59 = vld [vmem:[%s8361_s26 + $0xa94] sm:$0xf]  ;;  %v6455_v43 = vor.u32 %v7695_v32, %v6452_v36  ;;  %4349 = vmatpush.bf16.msrb.mxu2 %v6967_v15  ;;  %v5850_v15 = vld [vmem:[%s8361_s26 + $0x3d8] sm:$0xf] }
 0x2c6   : > { %v6708_v39 = vld [vmem:[%s8361_s26 + $0xab0] sm:$0xf0] }
 0x2c7   : > { %v7887_v35 = vld [vmem:[%s8361_s26 + $0xe94] sm:$0xf]  ;;  %v6711_v47 = vor.u32 %v7759_v59, %v6708_v39  ;;  %4311 = vmatpush.bf16.msrb.mxu0 %v6455_v43  ;;  %v6106_v59 = vld [vmem:[%s8361_s26 + $0x5d8] sm:$0xf]  ;;  %v3961_v57 = vpop.f32.mrf.mxu1 }
 0x2c8   : > { %v7220_v42 = vld [vmem:[%s8361_s26 + $0xeb0] sm:$0xf0]  ;;  %v7612_v39 = vld [vmem:[%s8361_s26 + $0x5f4] sm:$0xf0] }
 0x2c9   : > { %v7815_v44 = vld [vmem:[%s8361_s26 + $0xc54] sm:$0xf]  ;;  %v7223_v48 = vor.u32 %v7887_v35, %v7220_v42  ;;  %4330 = vmatpush.bf16.msrb.mxu1 %v6711_v47  ;;  %v5594_v35 = vld [vmem:[%s8361_s26 + $0x1d8] sm:$0xf]  ;;  %v6107_v58 = vor.u32 %v7612_v39, %v6106_v59 }
 0x2ca   : > { %v6932_v45 = vld [vmem:[%s8361_s26 + $0xc70] sm:$0xf0]  ;;  %v7484_v42 = vld [vmem:[%s8361_s26 + $0x1f4] sm:$0xf0] }
 0x2cb   : > { %v7687_v52 = vld [vmem:[%s8361_s26 + $0x854] sm:$0xf]  ;;  %v6935_v11 = vor.u32 %v7815_v44, %v6932_v45  ;;  %4368 = vmatpush.bf16.msrb.mxu3 %v7223_v48  ;;  %v7548_v45 = vld [vmem:[%s8361_s26 + $0x3f4] sm:$0xf0] }
 0x2cc   : > { %v6420_v38 = vld [vmem:[%s8361_s26 + $0x870] sm:$0xf0]  ;;  %v6362_v47 = vld [vmem:[%s8361_s26 + $0x7d8] sm:$0xf] }
 0x2cd   : > { %v7751_v53 = vld [vmem:[%s8361_s26 + $0xa54] sm:$0xf]  ;;  %v6423_v13 = vor.u32 %v7687_v52, %v6420_v38  ;;  %4350 = vmatpush.bf16.msrb.mxu2 %v6935_v11  ;;  %v7676_v48 = vld [vmem:[%s8361_s26 + $0x7f4] sm:$0xf0] }
 0x2ce   : > { %v6676_v41 = vld [vmem:[%s8361_s26 + $0xa70] sm:$0xf0]  ;;  %v6363_v11 = vor.u32 %v7676_v48, %v6362_v47  ;;  %v6042_v39 = vld [vmem:[%s8361_s26 + $0x558] sm:$0xf] }
 0x2cf   : > { %v7879_v12 = vld [vmem:[%s8361_s26 + $0xe54] sm:$0xf]  ;;  %v6679_v18 = vor.u32 %v7751_v53, %v6676_v41  ;;  %4312 = vmatpush.bf16.msrb.mxu0 %v6423_v13  ;;  %v3978_v53 = vpop.f32.mrf.mxu2  ;;  %v5595_v41 = vor.u32 %v7484_v42, %v5594_v35  ;;  %v5562_v13 = vld [vmem:[%s8361_s26 + $0x198] sm:$0xf] }
 0x2d0   : > { %v7188_v61 = vld [vmem:[%s8361_s26 + $0xe70] sm:$0xf0]  ;;  %v3979_v6 = vadd.f32 %v3978_v53, %v3960_v34  ;;  %v7596_v35 = vld [vmem:[%s8361_s26 + $0x574] sm:$0xf0]  ;;  %v4011_v53 = vpop.f32.mrf.mxu0 }
 0x2d1   : > { %v7807_v51 = vld [vmem:[%s8361_s26 + $0xc14] sm:$0xf]  ;;  %v7191_v50 = vor.u32 %v7879_v12, %v7188_v61  ;;  %4331 = vmatpush.bf16.msrb.mxu1 %v6679_v18  ;;  %v6074_v12 = vld [vmem:[%s8361_s26 + $0x598] sm:$0xf] }
 0x2d2   : > { %v6900_v14 = vld [vmem:[%s8361_s26 + $0xc30] sm:$0xf0]  ;;  %v7604_v61 = vld [vmem:[%s8361_s26 + $0x5b4] sm:$0xf0] }
 0x2d3   : > { %v7679_v20 = vld [vmem:[%s8361_s26 + $0x814] sm:$0xf]  ;;  %v6903_v43 = vor.u32 %v7807_v51, %v6900_v14  ;;  %4369 = vmatpush.bf16.msrb.mxu3 %v7191_v50  ;;  %v5851_v51 = vor.u32 %v7548_v45, %v5850_v15  ;;  %v7476_v14 = vld [vmem:[%s8361_s26 + $0x1b4] sm:$0xf0]  ;;  %v6075_v34 = vor.u32 %v7604_v61, %v6074_v12  ;;  %v3999_v45 = vpop.f32.mrf.mxu3 }
 0x2d4   : > { %v6388_v23 = vld [vmem:[%s8361_s26 + $0x830] sm:$0xf0]  ;;  %v7540_v18 = vld [vmem:[%s8361_s26 + $0x3b4] sm:$0xf0] }
 0x2d5   : > { %v7743_v28 = vld [vmem:[%s8361_s26 + $0xa14] sm:$0xf]  ;;  %v6391_v44 = vor.u32 %v7679_v20, %v6388_v23  ;;  %v5818_v20 = vld [vmem:[%s8361_s26 + $0x398] sm:$0xf]  ;;  %v3962_v23 = vadd.f32 %v3961_v57, %v3942_v7  ;;  %4351 = vmatpush.bf16.msrb.mxu2 %v6903_v43 }
 0x2d6   : > { %v6644_v31 = vld [vmem:[%s8361_s26 + $0xa30] sm:$0xf0]  ;;  %v6330_v50 = vld [vmem:[%s8361_s26 + $0x798] sm:$0xf] }
 0x2d7   : > { %v7871_v32 = vld [vmem:[%s8361_s26 + $0xe14] sm:$0xf]  ;;  %v6647_v52 = vor.u32 %v7743_v28, %v6644_v31  ;;  %4313 = vmatpush.bf16.msrb.mxu0 %v6391_v44  ;;  %v7668_v28 = vld [vmem:[%s8361_s26 + $0x7b4] sm:$0xf0]  ;;  %v9428_v31 = vadd.f32 %v3997_v54, %v3979_v6  ;;  %v3980_v44 = vpop.f32.mrf.mxu2  ;;  %v4030_v54 = vpop.f32.mrf.mxu1 }
 0x2d8   : > { %v7156_v36 = vld [vmem:[%s8361_s26 + $0xe30] sm:$0xf0]  ;;  %v6331_v59 = vor.u32 %v7668_v28, %v6330_v50  ;;  %v5530_v42 = vld [vmem:[%s8361_s26 + $0x158] sm:$0xf]  ;;  %4352 = vmatmul.bf16.vlgmr.msrb.gmra.mxu2 %v8626_v21 }
 0x2d9   : > { %v7159_v38 = vor.u32 %v7871_v32, %v7156_v36  ;;  %4332 = vmatpush.bf16.msrb.mxu1 %v6647_v52  ;;  %4420 = vmatpush.bf16.msra.mxu2 %v6107_v58  ;;  %v5563_v32 = vor.u32 %v7476_v14, %v5562_v13  ;;  %v5819_v36 = vor.u32 %v7540_v18, %v5818_v20  ;;  %v7468_v15 = vld [vmem:[%s8361_s26 + $0x174] sm:$0xf0] }
 0x2da   : > { %v5786_v43 = vld [vmem:[%s8361_s26 + $0x358] sm:$0xf]  ;;  %v4012_v58 = vadd.f32 %v4011_v53, %v9382_v27  ;;  %v5531_v12 = vor.u32 %v7468_v15, %v5530_v42  ;;  %4314 = vmatmul.bf16.vlgmr.msrb.gmra.mxu0 %v8619_v16 }
 0x2db   : > { %4370 = vmatpush.bf16.msrb.mxu3 %v7159_v38  ;;  %4382 = vmatpush.bf16.msra.mxu0 %v5595_v41  ;;  %v7532_v47 = vld [vmem:[%s8361_s26 + $0x374] sm:$0xf0]  ;;  %v3981_v38 = vadd.f32 %v3980_v44, %v3962_v23  ;;  %v6043_v41 = vor.u32 %v7596_v35, %v6042_v39 }
 0x2dc   : > { %v6298_v48 = vld [vmem:[%s8361_s26 + $0x758] sm:$0xf]  ;;  %v5787_v57 = vor.u32 %v7532_v47, %v5786_v43  ;;  %v4031_v20 = vadd.f32 %v4030_v54, %v4012_v58  ;;  %4333 = vmatmul.bf16.vlgmr.msrb.gmra.mxu1 %v8621_v17  ;;  %v4068_v43 = vpop.f32.mrf.mxu3 }
 0x2dd   : > { %4401 = vmatpush.bf16.msra.mxu1 %v5851_v51  ;;  %4421 = vmatpush.bf16.msra.mxu2 %v6075_v34  ;;  %v7660_v52 = vld [vmem:[%s8361_s26 + $0x774] sm:$0xf0]  ;;  %v9441_v7 = vadd.f32 %v3999_v45, %v3981_v38 }
 0x2de   : > { %v6010_v61 = vld [vmem:[%s8361_s26 + $0x518] sm:$0xf]  ;;  %v6299_v51 = vor.u32 %v7660_v52, %v6298_v48  ;;  %4371 = vmatmul.bf16.vlgmr.msrb.gmra.mxu3 %v8628_v22  ;;  %v4013_v52 = vpop.f32.mrf.mxu0 }
 0x2df   : > { %4439 = vmatpush.bf16.msra.mxu3 %v6363_v11  ;;  %4383 = vmatpush.bf16.msra.mxu0 %v5563_v32  ;;  %v7588_v6 = vld [vmem:[%s8361_s26 + $0x534] sm:$0xf0]  ;;  %v4049_v15 = vpop.f32.mrf.mxu2  ;;  %v4032_v38 = vpop.f32.mrf.mxu1  ;;  %v4014_v53 = vadd.f32 %v4013_v52, %v9402_v26 }
 0x2e0   : > { %v5498_v11 = vld [vmem:[%s8361_s26 + $0x118] sm:$0xf]  ;;  %v6011_v50 = vor.u32 %v7588_v6, %v6010_v61  ;;  %v4050_v48 = vadd.f32 %v4049_v15, %v4031_v20 }
 0x2e1   : > { %4402 = vmatpush.bf16.msra.mxu1 %v5819_v36  ;;  %v7460_v13 = vld [vmem:[%s8361_s26 + $0x134] sm:$0xf0]  ;;  %4422 = vmatpush.bf16.msra.mxu2 %v6043_v41 }
 0x2e2   : > { %v5754_v14 = vld [vmem:[%s8361_s26 + $0x318] sm:$0xf]  ;;  %v5499_v28 = vor.u32 %v7460_v13, %v5498_v11  ;;  %v9464_v61 = vadd.f32 %v4068_v43, %v4050_v48  ;;  %v4033_v13 = vadd.f32 %v4032_v38, %v4014_v53 }
 0x2e3   : > { %4440 = vmatpush.bf16.msra.mxu3 %v6331_v59  ;;  %v7524_v27 = vld [vmem:[%s8361_s26 + $0x334] sm:$0xf0]  ;;  %4384 = vmatpush.bf16.msra.mxu0 %v5531_v12 }
 0x2e4   : > { %v6266_v23 = vld [vmem:[%s8361_s26 + $0x718] sm:$0xf]  ;;  %v5755_v36 = vor.u32 %v7524_v27, %v5754_v14 }
 0x2e5   : > { %v7652_v18 = vld [vmem:[%s8361_s26 + $0x734] sm:$0xf0]  ;;  %4403 = vmatpush.bf16.msra.mxu1 %v5787_v57  ;;  %4423 = vmatpush.bf16.msra.mxu2 %v6011_v50 }
 0x2e6   : > { %v5978_v34 = vld [vmem:[%s8361_s26 + $0x4d8] sm:$0xf]  ;;  %v6267_v59 = vor.u32 %v7652_v18, %v6266_v23 }
 0x2e7   : > { %v7580_v32 = vld [vmem:[%s8361_s26 + $0x4f4] sm:$0xf0]  ;;  %4441 = vmatpush.bf16.msra.mxu3 %v6299_v51  ;;  %4385 = vmatpush.bf16.msra.mxu0 %v5499_v28  ;;  %v4035_v48 = vpop.f32.mrf.mxu1 }
 0x2e8   : > { %v5466_v39 = vld [vmem:[%s8361_s26 + $0xd8] sm:$0xf]  ;;  %v5979_v54 = vor.u32 %v7580_v32, %v5978_v34  ;;  %4357 = vmatmul.bf16.gmra.mxu2 %v8678_v29 }
 0x2e9   : > { %v7452_v35 = vld [vmem:[%s8361_s26 + $0xf4] sm:$0xf0]  ;;  %4404 = vmatpush.bf16.msra.mxu1 %v5755_v36 }
 0x2ea   : > { %v5722_v42 = vld [vmem:[%s8361_s26 + $0x2d8] sm:$0xf]  ;;  %v5467_v58 = vor.u32 %v7452_v35, %v5466_v39  ;;  %4424 = vmatpush.bf16.msra.mxu2 %v5979_v54  ;;  %v4051_v35 = vpop.f32.mrf.mxu2  ;;  %4319 = vmatmul.bf16.gmra.mxu0 %v8671_v24 }
 0x2eb   : > { %v7516_v44 = vld [vmem:[%s8361_s26 + $0x2f4] sm:$0xf0]  ;;  %4442 = vmatpush.bf16.msra.mxu3 %v6267_v59 }
 0x2ec   : > { %v6234_v45 = vld [vmem:[%s8361_s26 + $0x6d8] sm:$0xf]  ;;  %v5723_v6 = vor.u32 %v7516_v44, %v5722_v42  ;;  %4386 = vmatpush.bf16.msra.mxu0 %v5467_v58  ;;  %v4070_v42 = vpop.f32.mrf.mxu3  ;;  %4338 = vmatmul.bf16.gmra.mxu1 %v8673_v25 }
 0x2ed   : > { %v7644_v47 = vld [vmem:[%s8361_s26 + $0x6f4] sm:$0xf0] }
 0x2ee   : > { %v5946_v41 = vld [vmem:[%s8361_s26 + $0x498] sm:$0xf]  ;;  %v6235_v57 = vor.u32 %v7644_v47, %v6234_v45  ;;  %4405 = vmatpush.bf16.msra.mxu1 %v5723_v6  ;;  %v4052_v45 = vadd.f32 %v4051_v35, %v4033_v13  ;;  %v4016_v47 = vpop.f32.mrf.mxu0  ;;  %4376 = vmatmul.bf16.gmra.mxu3 %v8680_v30 }
 0x2ef   : > { %v7572_v12 = vld [vmem:[%s8361_s26 + $0x4b4] sm:$0xf0]  ;;  %v4017_v38 = vadd.f32 %v4016_v47, %v9428_v31 }
 0x2f0   : > { %v5434_v51 = vld [vmem:[%s8361_s26 + $0x98] sm:$0xf]  ;;  %v5947_v23 = vor.u32 %v7572_v12, %v5946_v41  ;;  %4443 = vmatpush.bf16.msra.mxu3 %v6235_v57  ;;  %v9485_v6 = vadd.f32 %v4070_v42, %v4052_v45 }
 0x2f1   : > { %v7444_v11 = vld [vmem:[%s8361_s26 + $0xb4] sm:$0xf0]  ;;  %v4036_v13 = vadd.f32 %v4035_v48, %v4017_v38  ;;  %v4037_v38 = vpop.f32.mrf.mxu1 }
 0x2f2   : > { %v5690_v26 = vld [vmem:[%s8361_s26 + $0x298] sm:$0xf]  ;;  %v5435_v18 = vor.u32 %v7444_v11, %v5434_v51  ;;  %4425 = vmatpush.bf16.msra.mxu2 %v5947_v23  ;;  %v4054_v42 = vpop.f32.mrf.mxu2 }
 0x2f3   : > { %v7508_v14 = vld [vmem:[%s8361_s26 + $0x2b4] sm:$0xf0]  ;;  %v4055_v48 = vadd.f32 %v4054_v42, %v4036_v13 }
 0x2f4   : > { %v6202_v20 = vld [vmem:[%s8361_s26 + $0x698] sm:$0xf]  ;;  %v5691_v34 = vor.u32 %v7508_v14, %v5690_v26  ;;  %4387 = vmatpush.bf16.msra.mxu0 %v5435_v18 }
 0x2f5   : > { %v7636_v27 = vld [vmem:[%s8361_s26 + $0x6b4] sm:$0xf0] }
 0x2f6   : > { %v5914_v50 = vld [vmem:[%s8361_s26 + $0x458] sm:$0xf]  ;;  %v6203_v32 = vor.u32 %v7636_v27, %v6202_v20  ;;  %4406 = vmatpush.bf16.msra.mxu1 %v5691_v34 }
 0x2f7   : > { %v7564_v28 = vld [vmem:[%s8361_s26 + $0x474] sm:$0xf0] }
 0x2f8   : > { %v5402_v36 = vld [vmem:[%s8361_s26 + $0x58] sm:$0xf]  ;;  %v5915_v53 = vor.u32 %v7564_v28, %v5914_v50  ;;  %4444 = vmatpush.bf16.msra.mxu3 %v6203_v32 }
 0x2f9   : > { %v7436_v59 = vld [vmem:[%s8361_s26 + $0x74] sm:$0xf0] }
 0x2fa   : > { %v5658_v39 = vld [vmem:[%s8361_s26 + $0x258] sm:$0xf]  ;;  %v5403_v54 = vor.u32 %v7436_v59, %v5402_v36  ;;  %4426 = vmatpush.bf16.msra.mxu2 %v5915_v53 }
 0x2fb   : > { %v7500_v15 = vld [vmem:[%s8361_s26 + $0x274] sm:$0xf0] }
 0x2fc   : > { %v6170_v43 = vld [vmem:[%s8361_s26 + $0x658] sm:$0xf]  ;;  %v5659_v57 = vor.u32 %v7500_v15, %v5658_v39  ;;  %4388 = vmatpush.bf16.msra.mxu0 %v5403_v54  ;;  %v4073_v15 = vpop.f32.mrf.mxu3 }
 0x2fd   : > { %v7628_v44 = vld [vmem:[%s8361_s26 + $0x674] sm:$0xf0] }
 0x2fe   : > { %v5882_v52 = vld [vmem:[%s8361_s26 + $0x418] sm:$0xf]  ;;  %v6171_v51 = vor.u32 %v7628_v44, %v6170_v43  ;;  %4407 = vmatpush.bf16.msra.mxu1 %v5659_v57 }
 0x2ff   : > { %v7556_v58 = vld [vmem:[%s8361_s26 + $0x434] sm:$0xf0] }
 0x300   : > { %v5370_v41 = vld [vmem:[%s8361_s26 + $0x18] sm:$0xf]  ;;  %v5883_v28 = vor.u32 %v7556_v58, %v5882_v52  ;;  %4445 = vmatpush.bf16.msra.mxu3 %v6171_v51  ;;  %v4018_v52 = vpop.f32.mrf.mxu0 }
 0x301   : > { %v7428_v12 = vld [vmem:[%s8361_s26 + $0x34] sm:$0xf0]  ;;  %v4019_v57 = vadd.f32 %v4018_v52, %v9441_v7 }
 0x302   : > { %v5626_v31 = vld [vmem:[%s8361_s26 + $0x218] sm:$0xf]  ;;  %v5371_v34 = vor.u32 %v7428_v12, %v5370_v41  ;;  %4427 = vmatpush.bf16.msra.mxu2 %v5883_v28 }
 0x303   : > { %v7492_v11 = vld [vmem:[%s8361_s26 + $0x234] sm:$0xf0]  ;;  %v4038_v13 = vadd.f32 %v4037_v38, %v4019_v57 }
 0x304   : > { %v6138_v26 = vld [vmem:[%s8361_s26 + $0x618] sm:$0xf]  ;;  %v5627_v39 = vor.u32 %v7492_v11, %v5626_v31  ;;  %4389 = vmatpush.bf16.msra.mxu0 %v5371_v34 }
 0x305   : > { %v7620_v14 = vld [vmem:[%s8361_s26 + $0x634] sm:$0xf0]  ;;  %4428 = vmatmul.bf16.vlgmr.msra.gmra.mxu2 %v8513_v5 }
 0x306   : > { %v7130_v20 = vld [vmem:[%s8361_s26 + $0xdd8] sm:$0xf]  ;;  %v6139_v35 = vor.u32 %v7620_v14, %v6138_v26  ;;  %v9512_v26 = vadd.f32 %v4073_v15, %v4055_v48  ;;  %4408 = vmatpush.bf16.msra.mxu1 %v5627_v39 }
 0x307   : > { %v7868_v27 = vld [vmem:[%s8361_s26 + $0xdf4] sm:$0xf0]  ;;  %4390 = vmatmul.bf16.vlgmr.msra.gmra.mxu0 %v8506_v63 }
 0x308   : > { %v6618_v23 = vld [vmem:[%s8361_s26 + $0x9d8] sm:$0xf]  ;;  %v7131_v43 = vor.u32 %v7868_v27, %v7130_v20  ;;  %4446 = vmatpush.bf16.msra.mxu3 %v6139_v35  ;;  %v4087_v15 = vpop.f32.mrf.mxu0 }
 0x309   : > { %v7740_v18 = vld [vmem:[%s8361_s26 + $0x9f4] sm:$0xf0]  ;;  %4409 = vmatmul.bf16.vlgmr.msra.gmra.mxu1 %v8511_v4 }
 0x30a   : > { %v6874_v50 = vld [vmem:[%s8361_s26 + $0xbd8] sm:$0xf]  ;;  %v6619_v44 = vor.u32 %v7740_v18, %v6618_v23  ;;  %4496 = vmatpush.bf16.msrb.mxu2 %v7131_v43  ;;  %v4106_v43 = vpop.f32.mrf.mxu1 }
 0x30b   : > { %v7804_v32 = vld [vmem:[%s8361_s26 + $0xbf4] sm:$0xf0]  ;;  %4447 = vmatmul.bf16.vlgmr.msra.gmra.mxu3 %v8518_v9 }
 0x30c   : > { %v7386_v36 = vld [vmem:[%s8361_s26 + $0xfd8] sm:$0xf]  ;;  %v6875_v53 = vor.u32 %v7804_v32, %v6874_v50  ;;  %4458 = vmatpush.bf16.msrb.mxu0 %v6619_v44  ;;  %v4056_v32 = vpop.f32.mrf.mxu2  ;;  %v4107_v44 = vadd.f32 %v4106_v43, %v4087_v15 }
 0x30d   : > { %v7932_v59 = vld [vmem:[%s8361_s26 + $0xff4] sm:$0xf0]  ;;  %v4057_v42 = vadd.f32 %v4056_v32, %v4038_v13 }
 0x30e   : > { %v7098_v45 = vld [vmem:[%s8361_s26 + $0xd98] sm:$0xf]  ;;  %v7387_v54 = vor.u32 %v7932_v59, %v7386_v36  ;;  %4477 = vmatpush.bf16.msrb.mxu1 %v6875_v53  ;;  %v4075_v36 = vpop.f32.mrf.mxu3 }
 0x30f   : > { %v7860_v47 = vld [vmem:[%s8361_s26 + $0xdb4] sm:$0xf0]  ;;  %v9524_v38 = vadd.f32 %v4075_v36, %v4057_v42 }
 0x310   : > { %v6586_v58 = vld [vmem:[%s8361_s26 + $0x998] sm:$0xf]  ;;  %v7099_v14 = vor.u32 %v7860_v47, %v7098_v45  ;;  %4515 = vmatpush.bf16.msrb.mxu3 %v7387_v54 }
 0x311   : > { %v7732_v41 = vld [vmem:[%s8361_s26 + $0x9b4] sm:$0xf0]  ;;  %10240 = vst [vmem:[#allocation20_spill] sm:$0xff] %v9524_v38  ;;  %v5564_v38 = vld [vmem:[%s8361_s26 + $0x1b8] sm:$0xf0] }
 0x312   : > { %v6842_v12 = vld [vmem:[%s8361_s26 + $0xb98] sm:$0xf]  ;;  %v6587_v7 = vor.u32 %v7732_v41, %v6586_v58  ;;  %4497 = vmatpush.bf16.msrb.mxu2 %v7099_v14  ;;  %v4108_v42 = vpop.f32.mrf.mxu1 }
 0x313   : > { %v7796_v51 = vld [vmem:[%s8361_s26 + $0xbb4] sm:$0xf0] }
 0x314   : > { %v7354_v31 = vld [vmem:[%s8361_s26 + $0xf98] sm:$0xf]  ;;  %v6843_v20 = vor.u32 %v7796_v51, %v6842_v12  ;;  %4459 = vmatpush.bf16.msrb.mxu0 %v6587_v7 }
 0x315   : > { %v7924_v11 = vld [vmem:[%s8361_s26 + $0xfb4] sm:$0xf0]  ;;  %4433 = vmatmul.bf16.gmra.mxu2 %v8566_v3 }
 0x316   : > { %v7355_v27 = vor.u32 %v7924_v11, %v7354_v31  ;;  %v7066_v23 = vld [vmem:[%s8361_s26 + $0xd58] sm:$0xf]  ;;  %4478 = vmatpush.bf16.msrb.mxu1 %v6843_v20 }
 0x317   : > { %v7852_v18 = vld [vmem:[%s8361_s26 + $0xd74] sm:$0xf0]  ;;  %4395 = vmatmul.bf16.gmra.mxu0 %v8559_v60 }
 0x318   : > { %v6554_v50 = vld [vmem:[%s8361_s26 + $0x958] sm:$0xf]  ;;  %4516 = vmatpush.bf16.msrb.mxu3 %v7355_v27  ;;  %v7067_v45 = vor.u32 %v7852_v18, %v7066_v23 }
 0x319   : > { %v7724_v28 = vld [vmem:[%s8361_s26 + $0x974] sm:$0xf0]  ;;  %4414 = vmatmul.bf16.gmra.mxu1 %v8564_v2 }
 0x31a   : > { %v6810_v34 = vld [vmem:[%s8361_s26 + $0xb58] sm:$0xf]  ;;  %v6555_v47 = vor.u32 %v7724_v28, %v6554_v50  ;;  %4498 = vmatpush.bf16.msrb.mxu2 %v7067_v45  ;;  %v4125_v28 = vpop.f32.mrf.mxu2 }
 0x31b   : > { %v7788_v59 = vld [vmem:[%s8361_s26 + $0xb74] sm:$0xf0]  ;;  %4452 = vmatmul.bf16.gmra.mxu3 %v8570_v8 }
 0x31c   : > { %v7322_v39 = vld [vmem:[%s8361_s26 + $0xf58] sm:$0xf]  ;;  %v6811_v53 = vor.u32 %v7788_v59, %v6810_v34  ;;  %4460 = vmatpush.bf16.msrb.mxu0 %v6555_v47  ;;  %v4144_v34 = vpop.f32.mrf.mxu3 }
 0x31d   : > { %v7916_v35 = vld [vmem:[%s8361_s26 + $0xf74] sm:$0xf0] }
 0x31e   : > { %v7034_v48 = vld [vmem:[%s8361_s26 + $0xd18] sm:$0xf]  ;;  %v7323_v54 = vor.u32 %v7916_v35, %v7322_v39  ;;  %4479 = vmatpush.bf16.msrb.mxu1 %v6811_v53  ;;  %v4126_v39 = vadd.f32 %v4125_v28, %v4107_v44  ;;  %v4089_v35 = vpop.f32.mrf.mxu0 }
 0x31f   : > { %v7844_v52 = vld [vmem:[%s8361_s26 + $0xd34] sm:$0xf0]  ;;  %v4109_v15 = vadd.f32 %v4108_v42, %v4089_v35  ;;  %v4111_v35 = vpop.f32.mrf.mxu1 }
 0x320   : > { %v6522_v58 = vld [vmem:[%s8361_s26 + $0x918] sm:$0xf]  ;;  %v7035_v11 = vor.u32 %v7844_v52, %v7034_v48  ;;  %4517 = vmatpush.bf16.msrb.mxu3 %v7323_v54  ;;  %v9546_v52 = vadd.f32 %v4144_v34, %v4126_v39 }
 0x321   : > { %v7716_v41 = vld [vmem:[%s8361_s26 + $0x934] sm:$0xf0] }
 0x322   : > { %v6778_v12 = vld [vmem:[%s8361_s26 + $0xb18] sm:$0xf]  ;;  %v6523_v13 = vor.u32 %v7716_v41, %v6522_v58  ;;  %4499 = vmatpush.bf16.msrb.mxu2 %v7035_v11 }
 0x323   : > { %v7780_v57 = vld [vmem:[%s8361_s26 + $0xb34] sm:$0xf0] }
 0x324   : > { %v7290_v51 = vld [vmem:[%s8361_s26 + $0xf18] sm:$0xf]  ;;  %v6779_v20 = vor.u32 %v7780_v57, %v6778_v12  ;;  %4461 = vmatpush.bf16.msrb.mxu0 %v6523_v13  ;;  %v4146_v28 = vpop.f32.mrf.mxu3 }
 0x325   : > { %v7908_v31 = vld [vmem:[%s8361_s26 + $0xf34] sm:$0xf0] }
 0x326   : > { %v7002_v14 = vld [vmem:[%s8361_s26 + $0xcd8] sm:$0xf]  ;;  %v7291_v27 = vor.u32 %v7908_v31, %v7290_v51  ;;  %4480 = vmatpush.bf16.msrb.mxu1 %v6779_v20  ;;  %v4092_v39 = vpop.f32.mrf.mxu0 }
 0x327   : > { %v7836_v7 = vld [vmem:[%s8361_s26 + $0xcf4] sm:$0xf0] }
 0x328   : > { %v6490_v23 = vld [vmem:[%s8361_s26 + $0x8d8] sm:$0xf]  ;;  %v7003_v43 = vor.u32 %v7836_v7, %v7002_v14  ;;  %4518 = vmatpush.bf16.msrb.mxu3 %v7291_v27 }
 0x329   : > { %v7708_v18 = vld [vmem:[%s8361_s26 + $0x8f4] sm:$0xf0] }
 0x32a   : > { %v6746_v50 = vld [vmem:[%s8361_s26 + $0xad8] sm:$0xf]  ;;  %v6491_v45 = vor.u32 %v7708_v18, %v6490_v23  ;;  %4500 = vmatpush.bf16.msrb.mxu2 %v7003_v43  ;;  %v4112_v43 = vadd.f32 %v4111_v35, %v4092_v39  ;;  %v7600_v35 = vld [vmem:[%s8361_s26 + $0x59c] sm:$0xf] }
 0x32b   : > { %v7772_v32 = vld [vmem:[%s8361_s26 + $0xaf4] sm:$0xf0] }
 0x32c   : > { %v7258_v36 = vld [vmem:[%s8361_s26 + $0xed8] sm:$0xf]  ;;  %v6747_v44 = vor.u32 %v7772_v32, %v6746_v50  ;;  %4462 = vmatpush.bf16.msrb.mxu0 %v6491_v45  ;;  %v4127_v50 = vpop.f32.mrf.mxu2 }
 0x32d   : > { %v7900_v59 = vld [vmem:[%s8361_s26 + $0xef4] sm:$0xf0] }
 0x32e   : > { %v6970_v47 = vld [vmem:[%s8361_s26 + $0xc98] sm:$0xf]  ;;  %v7259_v53 = vor.u32 %v7900_v59, %v7258_v36  ;;  %4481 = vmatpush.bf16.msrb.mxu1 %v6747_v44  ;;  %v4128_v59 = vadd.f32 %v4127_v50, %v4109_v15  ;;  %v6364_v50 = vld [vmem:[%s8361_s26 + $0x7f8] sm:$0xf0] }
 0x32f   : > { %v7828_v48 = vld [vmem:[%s8361_s26 + $0xcb4] sm:$0xf0] }
 0x330   : > { %v6458_v54 = vld [vmem:[%s8361_s26 + $0x898] sm:$0xf]  ;;  %v6971_v31 = vor.u32 %v7828_v48, %v6970_v47  ;;  %4519 = vmatpush.bf16.msrb.mxu3 %v7259_v53 }
 0x331   : > { %v7700_v58 = vld [vmem:[%s8361_s26 + $0x8b4] sm:$0xf0] }
 0x332   : > { %v6714_v41 = vld [vmem:[%s8361_s26 + $0xa98] sm:$0xf]  ;;  %v6459_v11 = vor.u32 %v7700_v58, %v6458_v54  ;;  %4501 = vmatpush.bf16.msrb.mxu2 %v6971_v31  ;;  %v9566_v54 = vadd.f32 %v4146_v28, %v4128_v59  ;;  %v7608_v31 = vld [vmem:[%s8361_s26 + $0x5dc] sm:$0xf] }
 0x333   : > { %v7764_v12 = vld [vmem:[%s8361_s26 + $0xab4] sm:$0xf0] }
 0x334   : > { %v7226_v57 = vld [vmem:[%s8361_s26 + $0xe98] sm:$0xf]  ;;  %v6715_v7 = vor.u32 %v7764_v12, %v6714_v41  ;;  %4463 = vmatpush.bf16.msrb.mxu0 %v6459_v11  ;;  %v6108_v11 = vld [vmem:[%s8361_s26 + $0x5f8] sm:$0xf0] }
 0x335   : > { %v7892_v51 = vld [vmem:[%s8361_s26 + $0xeb4] sm:$0xf0]  ;;  %v6111_v59 = vor.u32 %v7608_v31, %v6108_v11 }
 0x336   : > { %v6938_v13 = vld [vmem:[%s8361_s26 + $0xc58] sm:$0xf]  ;;  %v7227_v20 = vor.u32 %v7892_v51, %v7226_v57  ;;  %4482 = vmatpush.bf16.msrb.mxu1 %v6715_v7  ;;  %v7544_v7 = vld [vmem:[%s8361_s26 + $0x3dc] sm:$0xf] }
 0x337   : > { %v7820_v14 = vld [vmem:[%s8361_s26 + $0xc74] sm:$0xf0] }
 0x338   : > { %v6426_v27 = vld [vmem:[%s8361_s26 + $0x858] sm:$0xf]  ;;  %v6939_v45 = vor.u32 %v7820_v14, %v6938_v13  ;;  %4520 = vmatpush.bf16.msrb.mxu3 %v7227_v20  ;;  %v7480_v13 = vld [vmem:[%s8361_s26 + $0x1dc] sm:$0xf] }
 0x339   : > { %v7692_v23 = vld [vmem:[%s8361_s26 + $0x874] sm:$0xf0]  ;;  %v5596_v14 = vld [vmem:[%s8361_s26 + $0x1f8] sm:$0xf0] }
 0x33a   : > { %v6682_v18 = vld [vmem:[%s8361_s26 + $0xa58] sm:$0xf]  ;;  %v6427_v47 = vor.u32 %v7692_v23, %v6426_v27  ;;  %4502 = vmatpush.bf16.msrb.mxu2 %v6939_v45  ;;  %v5852_v23 = vld [vmem:[%s8361_s26 + $0x3f8] sm:$0xf0]  ;;  %v5599_v39 = vor.u32 %v7480_v13, %v5596_v14 }
 0x33b   : > { %v7756_v34 = vld [vmem:[%s8361_s26 + $0xa74] sm:$0xf0]  ;;  %v7592_v14 = vld [vmem:[%s8361_s26 + $0x55c] sm:$0xf] }
 0x33c   : > { %v7194_v32 = vld [vmem:[%s8361_s26 + $0xe58] sm:$0xf]  ;;  %v6683_v15 = vor.u32 %v7756_v34, %v6682_v18  ;;  %4464 = vmatpush.bf16.msrb.mxu0 %v6427_v47  ;;  %v7672_v18 = vld [vmem:[%s8361_s26 + $0x7dc] sm:$0xf]  ;;  %v4094_v47 = vpop.f32.mrf.mxu0 }
 0x33d   : > { %v7884_v36 = vld [vmem:[%s8361_s26 + $0xe74] sm:$0xf0] }
 0x33e   : > { %v6906_v42 = vld [vmem:[%s8361_s26 + $0xc18] sm:$0xf]  ;;  %v7195_v58 = vor.u32 %v7884_v36, %v7194_v32  ;;  %4483 = vmatpush.bf16.msrb.mxu1 %v6683_v15  ;;  %v4130_v32 = vpop.f32.mrf.mxu2  ;;  %v4149_v36 = vpop.f32.mrf.mxu3  ;;  %v7472_v15 = vld [vmem:[%s8361_s26 + $0x19c] sm:$0xf] }
 0x33f   : > { %v7812_v48 = vld [vmem:[%s8361_s26 + $0xc34] sm:$0xf0]  ;;  %v4131_v45 = vadd.f32 %v4130_v32, %v4112_v43  ;;  %v5567_v31 = vor.u32 %v7472_v15, %v5564_v38  ;;  %v6300_v38 = vld [vmem:[%s8361_s26 + $0x778] sm:$0xf0] }
 0x340   : > { %v6394_v44 = vld [vmem:[%s8361_s26 + $0x818] sm:$0xf]  ;;  %v6907_v20 = vor.u32 %v7812_v48, %v6906_v42  ;;  %4521 = vmatpush.bf16.msrb.mxu3 %v7195_v58  ;;  %v6076_v42 = vld [vmem:[%s8361_s26 + $0x5b8] sm:$0xf0]  ;;  %v4113_v48 = vpop.f32.mrf.mxu1 }
 0x341   : > { %v7684_v53 = vld [vmem:[%s8361_s26 + $0x834] sm:$0xf0]  ;;  %v7536_v58 = vld [vmem:[%s8361_s26 + $0x39c] sm:$0xf]  ;;  %v4114_v19 = vadd.f32 %v4113_v48, %v4094_v47  ;;  %v6079_v43 = vor.u32 %v7600_v35, %v6076_v42 }
 0x342   : > { %v6650_v41 = vld [vmem:[%s8361_s26 + $0xa18] sm:$0xf]  ;;  %v6395_v27 = vor.u32 %v7684_v53, %v6394_v44  ;;  %v5855_v44 = vor.u32 %v7544_v7, %v5852_v23  ;;  %v6367_v53 = vor.u32 %v7672_v18, %v6364_v50  ;;  %4503 = vmatpush.bf16.msrb.mxu2 %v6907_v20  ;;  %v6044_v7 = vld [vmem:[%s8361_s26 + $0x578] sm:$0xf0] }
 0x343   : > { %v7748_v12 = vld [vmem:[%s8361_s26 + $0xa34] sm:$0xf0]  ;;  %v7464_v20 = vld [vmem:[%s8361_s26 + $0x15c] sm:$0xf]  ;;  %v6047_v35 = vor.u32 %v7592_v14, %v6044_v7 }
 0x344   : > { %v7162_v57 = vld [vmem:[%s8361_s26 + $0xe18] sm:$0xf]  ;;  %v6651_v28 = vor.u32 %v7748_v12, %v6650_v41  ;;  %4465 = vmatpush.bf16.msrb.mxu0 %v6395_v27  ;;  %v5820_v41 = vld [vmem:[%s8361_s26 + $0x3b8] sm:$0xf0] }
 0x345   : > { %v7876_v51 = vld [vmem:[%s8361_s26 + $0xe34] sm:$0xf0]  ;;  %v7664_v12 = vld [vmem:[%s8361_s26 + $0x79c] sm:$0xf]  ;;  %v5823_v11 = vor.u32 %v7536_v58, %v5820_v41  ;;  %4504 = vmatmul.bf16.vlgmr.msrb.gmra.mxu2 %v8626_v21 }
 0x346   : > { %v7163_v34 = vor.u32 %v7876_v51, %v7162_v57  ;;  %v6332_v57 = vld [vmem:[%s8361_s26 + $0x7b8] sm:$0xf0]  ;;  %v9592_v51 = vadd.f32 %v4149_v36, %v4131_v45  ;;  %4484 = vmatpush.bf16.msrb.mxu1 %v6651_v28  ;;  %4572 = vmatpush.bf16.msra.mxu2 %v6111_v59  ;;  %v4132_v18 = vpop.f32.mrf.mxu2  ;;  %v4151_v50 = vpop.f32.mrf.mxu3 }
 0x347   : > { %v6335_v13 = vor.u32 %v7664_v12, %v6332_v57  ;;  %v5532_v27 = vld [vmem:[%s8361_s26 + $0x178] sm:$0xf0]  ;;  %v4133_v32 = vadd.f32 %v4132_v18, %v4114_v19  ;;  %v4163_v36 = vpop.f32.mrf.mxu0  ;;  %4466 = vmatmul.bf16.vlgmr.msrb.gmra.mxu0 %v8619_v16 }
 0x348   : > { %4522 = vmatpush.bf16.msrb.mxu3 %v7163_v34  ;;  %4534 = vmatpush.bf16.msra.mxu0 %v5599_v39  ;;  %v7528_v23 = vld [vmem:[%s8361_s26 + $0x35c] sm:$0xf]  ;;  %v4182_v59 = vpop.f32.mrf.mxu1  ;;  %v4164_v39 = vadd.f32 %v4163_v36, %v9546_v52  ;;  %v5535_v42 = vor.u32 %v7464_v20, %v5532_v27 }
 0x349   : > { %v5788_v28 = vld [vmem:[%s8361_s26 + $0x378] sm:$0xf0]  ;;  %v9605_v48 = vadd.f32 %v4151_v50, %v4133_v32  ;;  %4485 = vmatmul.bf16.vlgmr.msrb.gmra.mxu1 %v8621_v17 }
 0x34a   : > { %4553 = vmatpush.bf16.msra.mxu1 %v5855_v44  ;;  %4573 = vmatpush.bf16.msra.mxu2 %v6079_v43  ;;  %v7656_v34 = vld [vmem:[%s8361_s26 + $0x75c] sm:$0xf]  ;;  %v5791_v44 = vor.u32 %v7528_v23, %v5788_v28  ;;  %v4183_v41 = vadd.f32 %v4182_v59, %v4164_v39 }
 0x34b   : > { %v7584_v45 = vld [vmem:[%s8361_s26 + $0x51c] sm:$0xf]  ;;  %4523 = vmatmul.bf16.vlgmr.msrb.gmra.mxu3 %v8628_v22 }
 0x34c   : > { %4591 = vmatpush.bf16.msra.mxu3 %v6367_v53  ;;  %4535 = vmatpush.bf16.msra.mxu0 %v5567_v31  ;;  %v6012_v47 = vld [vmem:[%s8361_s26 + $0x538] sm:$0xf0]  ;;  %v6303_v53 = vor.u32 %v7656_v34, %v6300_v38 }
 0x34d   : > { %v7456_v15 = vld [vmem:[%s8361_s26 + $0x11c] sm:$0xf]  ;;  %v6015_v43 = vor.u32 %v7584_v45, %v6012_v47 }
 0x34e   : > { %4554 = vmatpush.bf16.msra.mxu1 %v5823_v11  ;;  %v5500_v19 = vld [vmem:[%s8361_s26 + $0x138] sm:$0xf0]  ;;  %4574 = vmatpush.bf16.msra.mxu2 %v6047_v35  ;;  %v4201_v18 = vpop.f32.mrf.mxu2  ;;  %v4220_v50 = vpop.f32.mrf.mxu3 }
 0x34f   : > { %v7520_v58 = vld [vmem:[%s8361_s26 + $0x31c] sm:$0xf]  ;;  %v5503_v31 = vor.u32 %v7456_v15, %v5500_v19  ;;  %v4202_v32 = vadd.f32 %v4201_v18, %v4183_v41  ;;  %v4165_v36 = vpop.f32.mrf.mxu0 }
 0x350   : > { %4592 = vmatpush.bf16.msra.mxu3 %v6335_v13  ;;  %v5756_v52 = vld [vmem:[%s8361_s26 + $0x338] sm:$0xf0]  ;;  %4536 = vmatpush.bf16.msra.mxu0 %v5535_v42  ;;  %v4184_v59 = vpop.f32.mrf.mxu1  ;;  %v4166_v39 = vadd.f32 %v4165_v36, %v9566_v54 }
 0x351   : > { %v7648_v12 = vld [vmem:[%s8361_s26 + $0x71c] sm:$0xf]  ;;  %v5759_v14 = vor.u32 %v7520_v58, %v5756_v52 }
 0x352   : > { %v6268_v57 = vld [vmem:[%s8361_s26 + $0x738] sm:$0xf0]  ;;  %4555 = vmatpush.bf16.msra.mxu1 %v5791_v44  ;;  %4575 = vmatpush.bf16.msra.mxu2 %v6015_v43  ;;  %v9628_v44 = vadd.f32 %v4220_v50, %v4202_v32  ;;  %v4185_v41 = vadd.f32 %v4184_v59, %v4166_v39 }
 0x353   : > { %v7576_v11 = vld [vmem:[%s8361_s26 + $0x4dc] sm:$0xf]  ;;  %v6271_v7 = vor.u32 %v7648_v12, %v6268_v57 }
 0x354   : > { %v5980_v13 = vld [vmem:[%s8361_s26 + $0x4f8] sm:$0xf0]  ;;  %4593 = vmatpush.bf16.msra.mxu3 %v6303_v53  ;;  %4537 = vmatpush.bf16.msra.mxu0 %v5503_v31 }
 0x355   : > { %v7448_v20 = vld [vmem:[%s8361_s26 + $0xdc] sm:$0xf]  ;;  %v5983_v35 = vor.u32 %v7576_v11, %v5980_v13  ;;  %4509 = vmatmul.bf16.gmra.mxu2 %v8678_v29 }
 0x356   : > { %v5468_v27 = vld [vmem:[%s8361_s26 + $0xf8] sm:$0xf0]  ;;  %4556 = vmatpush.bf16.msra.mxu1 %v5759_v14  ;;  %v4203_v18 = vpop.f32.mrf.mxu2  ;;  %v4222_v50 = vpop.f32.mrf.mxu3 }
 0x357   : > { %v7512_v23 = vld [vmem:[%s8361_s26 + $0x2dc] sm:$0xf]  ;;  %v5471_v42 = vor.u32 %v7448_v20, %v5468_v27  ;;  %4576 = vmatpush.bf16.msra.mxu2 %v5983_v35  ;;  %v4204_v32 = vadd.f32 %v4203_v18, %v4185_v41  ;;  %v4168_v36 = vpop.f32.mrf.mxu0  ;;  %4471 = vmatmul.bf16.gmra.mxu0 %v8671_v24 }
 0x358   : > { %v5724_v28 = vld [vmem:[%s8361_s26 + $0x2f8] sm:$0xf0]  ;;  %4594 = vmatpush.bf16.msra.mxu3 %v6271_v7  ;;  %v4187_v59 = vpop.f32.mrf.mxu1  ;;  %v4169_v35 = vadd.f32 %v4168_v36, %v9592_v51 }
 0x359   : > { %v7640_v34 = vld [vmem:[%s8361_s26 + $0x6dc] sm:$0xf]  ;;  %v5727_v53 = vor.u32 %v7512_v23, %v5724_v28  ;;  %4538 = vmatpush.bf16.msra.mxu0 %v5471_v42  ;;  %4490 = vmatmul.bf16.gmra.mxu1 %v8673_v25 }
 0x35a   : > { %v6236_v38 = vld [vmem:[%s8361_s26 + $0x6f8] sm:$0xf0] }
 0x35b   : > { %v7568_v45 = vld [vmem:[%s8361_s26 + $0x49c] sm:$0xf]  ;;  %v6239_v15 = vor.u32 %v7640_v34, %v6236_v38  ;;  %4557 = vmatpush.bf16.msra.mxu1 %v5727_v53  ;;  %4528 = vmatmul.bf16.gmra.mxu3 %v8680_v30 }
 0x35c   : > { %v5948_v47 = vld [vmem:[%s8361_s26 + $0x4b8] sm:$0xf0] }
 0x35d   : > { %v7440_v19 = vld [vmem:[%s8361_s26 + $0x9c] sm:$0xf]  ;;  %v5951_v43 = vor.u32 %v7568_v45, %v5948_v47  ;;  %4595 = vmatpush.bf16.msra.mxu3 %v6239_v15 }
 0x35e   : > { %v5436_v58 = vld [vmem:[%s8361_s26 + $0xb8] sm:$0xf0] }
 0x35f   : > { %v7504_v54 = vld [vmem:[%s8361_s26 + $0x29c] sm:$0xf]  ;;  %v5439_v31 = vor.u32 %v7440_v19, %v5436_v58  ;;  %4577 = vmatpush.bf16.msra.mxu2 %v5951_v43  ;;  %v9649_v19 = vadd.f32 %v4222_v50, %v4204_v32 }
 0x360   : > { %v5692_v52 = vld [vmem:[%s8361_s26 + $0x2b8] sm:$0xf0] }
 0x361   : > { %v7632_v12 = vld [vmem:[%s8361_s26 + $0x69c] sm:$0xf]  ;;  %v5695_v14 = vor.u32 %v7504_v54, %v5692_v52  ;;  %4539 = vmatpush.bf16.msra.mxu0 %v5439_v31 }
 0x362   : > { %v6204_v57 = vld [vmem:[%s8361_s26 + $0x6b8] sm:$0xf0] }
 0x363   : > { %v7560_v11 = vld [vmem:[%s8361_s26 + $0x45c] sm:$0xf]  ;;  %v6207_v7 = vor.u32 %v7632_v12, %v6204_v57  ;;  %4558 = vmatpush.bf16.msra.mxu1 %v5695_v14  ;;  %v4188_v12 = vadd.f32 %v4187_v59, %v4169_v35 }
 0x364   : > { %v5916_v13 = vld [vmem:[%s8361_s26 + $0x478] sm:$0xf0] }
 0x365   : > { %v7432_v20 = vld [vmem:[%s8361_s26 + $0x5c] sm:$0xf]  ;;  %v5919_v42 = vor.u32 %v7560_v11, %v5916_v13  ;;  %4596 = vmatpush.bf16.msra.mxu3 %v6207_v7 }
 0x366   : > { %v5404_v27 = vld [vmem:[%s8361_s26 + $0x78] sm:$0xf0] }
 0x367   : > { %v7496_v23 = vld [vmem:[%s8361_s26 + $0x25c] sm:$0xf]  ;;  %v5407_v45 = vor.u32 %v7432_v20, %v5404_v27  ;;  %4578 = vmatpush.bf16.msra.mxu2 %v5919_v42  ;;  %v4170_v42 = vpop.f32.mrf.mxu0 }
 0x368   : > { %v5660_v28 = vld [vmem:[%s8361_s26 + $0x278] sm:$0xf0] }
 0x369   : > { %v7624_v34 = vld [vmem:[%s8361_s26 + $0x65c] sm:$0xf]  ;;  %v5663_v58 = vor.u32 %v7496_v23, %v5660_v28  ;;  %4540 = vmatpush.bf16.msra.mxu0 %v5407_v45  ;;  %v4189_v45 = vpop.f32.mrf.mxu1 }
 0x36a   : > { %v6172_v38 = vld [vmem:[%s8361_s26 + $0x678] sm:$0xf0] }
 0x36b   : > { %v7552_v39 = vld [vmem:[%s8361_s26 + $0x41c] sm:$0xf]  ;;  %v6175_v54 = vor.u32 %v7624_v34, %v6172_v38  ;;  %4559 = vmatpush.bf16.msra.mxu1 %v5663_v58  ;;  %v4206_v34 = vpop.f32.mrf.mxu2  ;;  %v4225_v38 = vpop.f32.mrf.mxu3 }
 0x36c   : > { %v5884_v47 = vld [vmem:[%s8361_s26 + $0x438] sm:$0xf0]  ;;  %v4207_v35 = vadd.f32 %v4206_v34, %v4188_v12 }
 0x36d   : > { %v7424_v53 = vld [vmem:[%s8361_s26 + $0x1c] sm:$0xf]  ;;  %v5887_v7 = vor.u32 %v7552_v39, %v5884_v47  ;;  %4597 = vmatpush.bf16.msra.mxu3 %v6175_v54 }
 0x36e   : > { %v5372_v15 = vld [vmem:[%s8361_s26 + $0x38] sm:$0xf0] }
 0x36f   : > { %v7488_v51 = vld [vmem:[%s8361_s26 + $0x21c] sm:$0xf]  ;;  %v5375_v20 = vor.u32 %v7424_v53, %v5372_v15  ;;  %4579 = vmatpush.bf16.msra.mxu2 %v5887_v7 }
 0x370   : > { %v5628_v41 = vld [vmem:[%s8361_s26 + $0x238] sm:$0xf0] }
 0x371   : > { %v7616_v52 = vld [vmem:[%s8361_s26 + $0x61c] sm:$0xf]  ;;  %v5631_v50 = vor.u32 %v7488_v51, %v5628_v41  ;;  %v4171_v51 = vadd.f32 %v4170_v42, %v9605_v48  ;;  %4541 = vmatpush.bf16.msra.mxu0 %v5375_v20 }
 0x372   : > { %v6140_v57 = vld [vmem:[%s8361_s26 + $0x638] sm:$0xf0]  ;;  %4580 = vmatmul.bf16.vlgmr.msra.gmra.mxu2 %v8513_v5 }
 0x373   : > { %v7864_v43 = vld [vmem:[%s8361_s26 + $0xddc] sm:$0xf]  ;;  %v6143_v28 = vor.u32 %v7616_v52, %v6140_v57  ;;  %4560 = vmatpush.bf16.msra.mxu1 %v5631_v50  ;;  %v4190_v12 = vadd.f32 %v4189_v45, %v4171_v51  ;;  %v4227_v50 = vpop.f32.mrf.mxu3 }
 0x374   : > { %v7132_v31 = vld [vmem:[%s8361_s26 + $0xdf8] sm:$0xf0]  ;;  %4542 = vmatmul.bf16.vlgmr.msra.gmra.mxu0 %v8506_v63 }
 0x375   : > { %v7736_v11 = vld [vmem:[%s8361_s26 + $0x9dc] sm:$0xf]  ;;  %v7135_v32 = vor.u32 %v7864_v43, %v7132_v31  ;;  %v9676_v43 = vadd.f32 %v4225_v38, %v4207_v35  ;;  %4598 = vmatpush.bf16.msra.mxu3 %v6143_v28 }
 0x376   : > { %v6620_v13 = vld [vmem:[%s8361_s26 + $0x9f8] sm:$0xf0]  ;;  %4561 = vmatmul.bf16.vlgmr.msra.gmra.mxu1 %v8511_v4 }
 0x377   : > { %v7800_v14 = vld [vmem:[%s8361_s26 + $0xbdc] sm:$0xf]  ;;  %v6623_v36 = vor.u32 %v7736_v11, %v6620_v13  ;;  %4648 = vmatpush.bf16.msrb.mxu2 %v7135_v32 }
 0x378   : > { %v6876_v27 = vld [vmem:[%s8361_s26 + $0xbf8] sm:$0xf0]  ;;  %4599 = vmatmul.bf16.vlgmr.msra.gmra.mxu3 %v8518_v9 }
 0x379   : > { %v7928_v23 = vld [vmem:[%s8361_s26 + $0xfdc] sm:$0xf]  ;;  %v6879_v47 = vor.u32 %v7800_v14, %v6876_v27  ;;  %4610 = vmatpush.bf16.msrb.mxu0 %v6623_v36  ;;  %v4239_v36 = vpop.f32.mrf.mxu0 }
 0x37a   : > { %v7388_v18 = vld [vmem:[%s8361_s26 + $0xff8] sm:$0xf0] }
 0x37b   : > { %v7856_v59 = vld [vmem:[%s8361_s26 + $0xd9c] sm:$0xf]  ;;  %v7391_v53 = vor.u32 %v7928_v23, %v7388_v18  ;;  %4629 = vmatpush.bf16.msrb.mxu1 %v6879_v47  ;;  %v4208_v18 = vpop.f32.mrf.mxu2  ;;  %v4296_v9 = vpop.f32.mrf.mxu3 }
 0x37c   : > { %v7100_v39 = vld [vmem:[%s8361_s26 + $0xdb8] sm:$0xf0]  ;;  %v4209_v32 = vadd.f32 %v4208_v18, %v4190_v12 }
 0x37d   : > { %v7728_v15 = vld [vmem:[%s8361_s26 + $0x99c] sm:$0xf]  ;;  %v7103_v31 = vor.u32 %v7856_v59, %v7100_v39  ;;  %4667 = vmatpush.bf16.msrb.mxu3 %v7391_v53  ;;  %v4258_v59 = vpop.f32.mrf.mxu1 }
 0x37e   : > { %v6588_v58 = vld [vmem:[%s8361_s26 + $0x9b8] sm:$0xf0]  ;;  %v4259_v39 = vadd.f32 %v4258_v59, %v4239_v36  ;;  %v9688_v53 = vadd.f32 %v4227_v50, %v4209_v32 }
 0x37f   : > { %v7792_v54 = vld [vmem:[%s8361_s26 + $0xb9c] sm:$0xf]  ;;  %v6591_v48 = vor.u32 %v7728_v15, %v6588_v58  ;;  %4649 = vmatpush.bf16.msrb.mxu2 %v7103_v31 }
 0x380   : > { %v6844_v41 = vld [vmem:[%s8361_s26 + $0xbb8] sm:$0xf0] }
 0x381   : > { %v7920_v52 = vld [vmem:[%s8361_s26 + $0xf9c] sm:$0xf]  ;;  %v6847_v11 = vor.u32 %v7792_v54, %v6844_v41  ;;  %4611 = vmatpush.bf16.msrb.mxu0 %v6591_v48 }
 0x382   : > { %v7356_v57 = vld [vmem:[%s8361_s26 + $0xfb8] sm:$0xf0]  ;;  %4585 = vmatmul.bf16.gmra.mxu2 %v8566_v3 }
 0x383   : > { %v7359_v13 = vor.u32 %v7920_v52, %v7356_v57  ;;  %v7848_v14 = vld [vmem:[%s8361_s26 + $0xd5c] sm:$0xf]  ;;  %4630 = vmatpush.bf16.msrb.mxu1 %v6847_v11 }
 0x384   : > { %v7068_v7 = vld [vmem:[%s8361_s26 + $0xd78] sm:$0xf0]  ;;  %4547 = vmatmul.bf16.gmra.mxu0 %v8559_v60 }
 0x385   : > { %v7720_v20 = vld [vmem:[%s8361_s26 + $0x95c] sm:$0xf]  ;;  %4668 = vmatpush.bf16.msrb.mxu3 %v7359_v13  ;;  %v7071_v35 = vor.u32 %v7848_v14, %v7068_v7 }
 0x386   : > { %v6556_v27 = vld [vmem:[%s8361_s26 + $0x978] sm:$0xf0]  ;;  %4566 = vmatmul.bf16.gmra.mxu1 %v8564_v2 }
 0x387   : > { %v7784_v23 = vld [vmem:[%s8361_s26 + $0xb5c] sm:$0xf]  ;;  %v6559_v42 = vor.u32 %v7720_v20, %v6556_v27  ;;  %4650 = vmatpush.bf16.msrb.mxu2 %v7071_v35  ;;  %v4277_v20 = vpop.f32.mrf.mxu2 }
 0x388   : > { %v6812_v28 = vld [vmem:[%s8361_s26 + $0xb78] sm:$0xf0]  ;;  %v4278_v50 = vadd.f32 %v4277_v20, %v4259_v39  ;;  %4604 = vmatmul.bf16.gmra.mxu3 %v8570_v8 }
 0x389   : > { %v7912_v34 = vld [vmem:[%s8361_s26 + $0xf5c] sm:$0xf]  ;;  %v6815_v15 = vor.u32 %v7784_v23, %v6812_v28  ;;  %4612 = vmatpush.bf16.msrb.mxu0 %v6559_v42  ;;  %v4241_v28 = vpop.f32.mrf.mxu0 }
 0x38a   : > { %v7324_v38 = vld [vmem:[%s8361_s26 + $0xf78] sm:$0xf0]  ;;  %v9710_v42 = vadd.f32 %v4296_v9, %v4278_v50 }
 0x38b   : > { %v7840_v45 = vld [vmem:[%s8361_s26 + $0xd1c] sm:$0xf]  ;;  %v7327_v58 = vor.u32 %v7912_v34, %v7324_v38  ;;  %4631 = vmatpush.bf16.msrb.mxu1 %v6815_v15  ;;  %v4260_v34 = vpop.f32.mrf.mxu1 }
 0x38c   : > { %v7036_v47 = vld [vmem:[%s8361_s26 + $0xd38] sm:$0xf0]  ;;  %v4261_v38 = vadd.f32 %v4260_v34, %v4241_v28 }
 0x38d   : > { %v7712_v54 = vld [vmem:[%s8361_s26 + $0x91c] sm:$0xf]  ;;  %v7039_v31 = vor.u32 %v7840_v45, %v7036_v47  ;;  %4669 = vmatpush.bf16.msrb.mxu3 %v7327_v58 }
 0x38e   : > { %v6524_v51 = vld [vmem:[%s8361_s26 + $0x938] sm:$0xf0] }
 0x38f   : > { %v7776_v41 = vld [vmem:[%s8361_s26 + $0xb1c] sm:$0xf]  ;;  %v6527_v48 = vor.u32 %v7712_v54, %v6524_v51  ;;  %4651 = vmatpush.bf16.msrb.mxu2 %v7039_v31 }
 0x390   : > { %v6780_v52 = vld [vmem:[%s8361_s26 + $0xb38] sm:$0xf0] }
 0x391   : > { %v7904_v57 = vld [vmem:[%s8361_s26 + $0xf1c] sm:$0xf]  ;;  %v6783_v4 = vor.u32 %v7776_v41, %v6780_v52  ;;  %4613 = vmatpush.bf16.msrb.mxu0 %v6527_v48 }
 0x392   : > { %v7292_v12 = vld [vmem:[%s8361_s26 + $0xf38] sm:$0xf0] }
 0x393   : > { %v7832_v63 = vld [vmem:[%s8361_s26 + $0xcdc] sm:$0xf]  ;;  %v7295_v13 = vor.u32 %v7904_v57, %v7292_v12  ;;  %4632 = vmatpush.bf16.msrb.mxu1 %v6783_v4 }
 0x394   : > { %v7004_v11 = vld [vmem:[%s8361_s26 + $0xcf8] sm:$0xf0] }
 0x395   : > { %v7704_v14 = vld [vmem:[%s8361_s26 + $0x8dc] sm:$0xf]  ;;  %v7007_v32 = vor.u32 %v7832_v63, %v7004_v11  ;;  %4670 = vmatpush.bf16.msrb.mxu3 %v7295_v13 }
 0x396   : > { %v6492_v7 = vld [vmem:[%s8361_s26 + $0x8f8] sm:$0xf0] }
 0x397   : > { %v7768_v5 = vld [vmem:[%s8361_s26 + $0xadc] sm:$0xf]  ;;  %v6495_v36 = vor.u32 %v7704_v14, %v6492_v7  ;;  %4652 = vmatpush.bf16.msrb.mxu2 %v7007_v32  ;;  %v4279_v14 = vpop.f32.mrf.mxu2  ;;  %v4298_v7 = vpop.f32.mrf.mxu3 }
 0x398   : > { %v6748_v27 = vld [vmem:[%s8361_s26 + $0xaf8] sm:$0xf0] }
 0x399   : > { %v7896_v23 = vld [vmem:[%s8361_s26 + $0xedc] sm:$0xf]  ;;  %v6751_v39 = vor.u32 %v7768_v5, %v6748_v27  ;;  %4614 = vmatpush.bf16.msrb.mxu0 %v6495_v36  ;;  %v4280_v27 = vadd.f32 %v4279_v14, %v4261_v38 }
 0x39a   : > { %v7260_v18 = vld [vmem:[%s8361_s26 + $0xef8] sm:$0xf0] }
 0x39b   : > { %v7824_v59 = vld [vmem:[%s8361_s26 + $0xc9c] sm:$0xf]  ;;  %v7263_v45 = vor.u32 %v7896_v23, %v7260_v18  ;;  %4633 = vmatpush.bf16.msrb.mxu1 %v6751_v39  ;;  %v4244_v23 = vpop.f32.mrf.mxu0  ;;  %v4263_v18 = vpop.f32.mrf.mxu1 }
 0x39c   : > { %v6972_v35 = vld [vmem:[%s8361_s26 + $0xcb8] sm:$0xf0]  ;;  %v4264_v50 = vadd.f32 %v4263_v18, %v4244_v23 }
 0x39d   : > { %v7696_v47 = vld [vmem:[%s8361_s26 + $0x89c] sm:$0xf]  ;;  %v6975_v52 = vor.u32 %v7824_v59, %v6972_v35  ;;  %4671 = vmatpush.bf16.msrb.mxu3 %v7263_v45  ;;  %v4299_v59 = vadd.f32 %v4298_v7, %v4280_v27 }
 0x39e   : > { %v6460_v15 = vld [vmem:[%s8361_s26 + $0x8b8] sm:$0xf0] }
 0x39f   : > { %v7760_v58 = vld [vmem:[%s8361_s26 + $0xa9c] sm:$0xf]  ;;  %v6463_v57 = vor.u32 %v7696_v47, %v6460_v15  ;;  %4653 = vmatpush.bf16.msrb.mxu2 %v6975_v52 }
 0x3a0   : > { %v6716_v54 = vld [vmem:[%s8361_s26 + $0xab8] sm:$0xf0] }
 0x3a1   : > { %v7888_v51 = vld [vmem:[%s8361_s26 + $0xe9c] sm:$0xf]  ;;  %v6719_v48 = vor.u32 %v7760_v58, %v6716_v54  ;;  %4615 = vmatpush.bf16.msrb.mxu0 %v6463_v57 }
 0x3a2   : > { %v7228_v41 = vld [vmem:[%s8361_s26 + $0xeb8] sm:$0xf0] }
 0x3a3   : > { %v7816_v12 = vld [vmem:[%s8361_s26 + $0xc5c] sm:$0xf]  ;;  %v7231_v63 = vor.u32 %v7888_v51, %v7228_v41  ;;  %4634 = vmatpush.bf16.msrb.mxu1 %v6719_v48  ;;  %v4246_v48 = vpop.f32.mrf.mxu0  ;;  %v4265_v2 = vpop.f32.mrf.mxu1 }
 0x3a4   : > { %v6940_v31 = vld [vmem:[%s8361_s26 + $0xc78] sm:$0xf0] }
 0x3a5   : > { %v7688_v11 = vld [vmem:[%s8361_s26 + $0x85c] sm:$0xf]  ;;  %v6943_v28 = vor.u32 %v7816_v12, %v6940_v31  ;;  %4672 = vmatpush.bf16.msrb.mxu3 %v7231_v63  ;;  %v4282_v12 = vpop.f32.mrf.mxu2  ;;  %v4301_v31 = vpop.f32.mrf.mxu3  ;;  %v4266_v63 = vadd.f32 %v4265_v2, %v4246_v48 }
 0x3a6   : > { %v6428_v4 = vld [vmem:[%s8361_s26 + $0x878] sm:$0xf0]  ;;  %v4283_v60 = vadd.f32 %v4282_v12, %v4264_v50 }
 0x3a7   : > { %v7752_v13 = vld [vmem:[%s8361_s26 + $0xa5c] sm:$0xf]  ;;  %v6431_v34 = vor.u32 %v7688_v11, %v6428_v4  ;;  %4654 = vmatpush.bf16.msrb.mxu2 %v6943_v28 }
 0x3a8   : > { %v6684_v5 = vld [vmem:[%s8361_s26 + $0xa78] sm:$0xf0]  ;;  %v4302_v11 = vadd.f32 %v4301_v31, %v4283_v60 }
 0x3a9   : > { %v7880_v20 = vld [vmem:[%s8361_s26 + $0xe5c] sm:$0xf]  ;;  %v6687_v35 = vor.u32 %v7752_v13, %v6684_v5  ;;  %4616 = vmatpush.bf16.msrb.mxu0 %v6431_v34 }
 0x3aa   : > { %v7196_v9 = vld [vmem:[%s8361_s26 + $0xe78] sm:$0xf0] }
 0x3ab   : > { %v7808_v32 = vld [vmem:[%s8361_s26 + $0xc1c] sm:$0xf]  ;;  %v7199_v39 = vor.u32 %v7880_v20, %v7196_v9  ;;  %4635 = vmatpush.bf16.msrb.mxu1 %v6687_v35  ;;  %v4315_v13 = vpop.f32.mrf.mxu0  ;;  %v4334_v14 = vpop.f32.mrf.mxu1 }
 0x3ac   : > { %v6908_v36 = vld [vmem:[%s8361_s26 + $0xc38] sm:$0xf0]  ;;  %v4316_v7 = vadd.f32 %v4315_v13, %v9710_v42 }
 0x3ad   : > { %v7680_v38 = vld [vmem:[%s8361_s26 + $0x81c] sm:$0xf]  ;;  %v6911_v51 = vor.u32 %v7808_v32, %v6908_v36  ;;  %4673 = vmatpush.bf16.msrb.mxu3 %v7199_v39  ;;  %v4284_v3 = vpop.f32.mrf.mxu2  ;;  %v4303_v8 = vpop.f32.mrf.mxu3 }
 0x3ae   : > { %v6396_v45 = vld [vmem:[%s8361_s26 + $0x838] sm:$0xf0]  ;;  %v4285_v4 = vadd.f32 %v4284_v3, %v4266_v63  ;;  %v4335_v20 = vadd.f32 %v4334_v14, %v4316_v7 }
 0x3af   : > { %v7744_v47 = vld [vmem:[%s8361_s26 + $0xa1c] sm:$0xf]  ;;  %v6399_v41 = vor.u32 %v7680_v38, %v6396_v45  ;;  %4655 = vmatpush.bf16.msrb.mxu2 %v6911_v51 }
 0x3b0   : > { %v6652_v15 = vld [vmem:[%s8361_s26 + $0xa38] sm:$0xf0]  ;;  %v4304_v5 = vadd.f32 %v4303_v8, %v4285_v4 }
 0x3b1   : > { %v7872_v58 = vld [vmem:[%s8361_s26 + $0xe1c] sm:$0xf]  ;;  %v6655_v52 = vor.u32 %v7744_v47, %v6652_v15  ;;  %4617 = vmatpush.bf16.msrb.mxu0 %v6399_v41 }
 0x3b2   : > { %v7164_v54 = vld [vmem:[%s8361_s26 + $0xe38] sm:$0xf0]  ;;  %4656 = vmatmul.bf16.vlgmr.msrb.gmra.mxu2 %v8626_v21  ;;  %s9756_s26 = sld [smem:[#allocation7 + %s8280_s6]] }
 0x3b3   : > { %v7167_v57 = vor.u32 %v7872_v58, %v7164_v54  ;;  %4636 = vmatpush.bf16.msrb.mxu1 %v6655_v52  ;;  %v4317_v18 = vpop.f32.mrf.mxu0  ;;  %v4336_v50 = vpop.f32.mrf.mxu1 }
 0x3b4   : > { %4618 = vmatmul.bf16.vlgmr.msrb.gmra.mxu0 %v8619_v16  ;;  %v4318_v28 = vadd.f32 %v4317_v18, %v4299_v59 }
 0x3b5   : > { %4674 = vmatpush.bf16.msrb.mxu3 %v7167_v57  ;;  %v4353_v9 = vpop.f32.mrf.mxu2  ;;  %v4372_v27 = vpop.f32.mrf.mxu3 }
 0x3b6   : > { %4637 = vmatmul.bf16.vlgmr.msrb.gmra.mxu1 %v8621_v17  ;;  %v4354_v23 = vadd.f32 %v4353_v9, %v4335_v20  ;;  %v4337_v32 = vadd.f32 %v4336_v50, %v4318_v28 }
 0x3b8   : > { %4675 = vmatmul.bf16.vlgmr.msrb.gmra.mxu3 %v8628_v22  ;;  %v9743_v34 = vadd.f32 %v4372_v27, %v4354_v23  ;;  %p7392_p7 = scmp.ne.s32.totalorder %s9756_s26, 1 }
 0x3bb   : > { %v4320_v39 = vpop.f32.mrf.mxu0  ;;  %v4339_v16 = vpop.f32.mrf.mxu1 }
 0x3bc   : > { %v4321_v38 = vadd.f32 %v4320_v39, %v4302_v11 }
 0x3bd   : > { %v4355_v42 = vpop.f32.mrf.mxu2  ;;  %v4374_v36 = vpop.f32.mrf.mxu3 }
 0x3be   : > { %v4356_v35 = vadd.f32 %v4355_v42, %v4337_v32  ;;  %v4340_v21 = vadd.f32 %v4339_v16, %v4321_v38 }
 0x3c0   : > { %v9745_v17 = vadd.f32 %v4374_v36, %v4356_v35 }
 0x3c2   : > { %4661 = vmatmul.bf16.gmra.mxu2 %v8678_v29 }
 0x3c3   : > { %v4322_v47 = vpop.f32.mrf.mxu0  ;;  %v4341_v15 = vpop.f32.mrf.mxu1 }
 0x3c4   : > { %4623 = vmatmul.bf16.gmra.mxu0 %v8671_v24  ;;  %v4323_v58 = vadd.f32 %v4322_v47, %v4304_v5 }
 0x3c5   : > { %v4358_v22 = vpop.f32.mrf.mxu2  ;;  %v4377_v59 = vpop.f32.mrf.mxu3 }
 0x3c6   : > { %4642 = vmatmul.bf16.gmra.mxu1 %v8673_v25  ;;  %v4359_v45 = vadd.f32 %v4358_v22, %v4340_v21  ;;  %v4342_v51 = vadd.f32 %v4341_v15, %v4323_v58 }
 0x3c8   : > { %4680 = vmatmul.bf16.gmra.mxu3 %v8680_v30  ;;  %v9751_v54 = vadd.f32 %v4377_v59, %v4359_v45 }
 0x3cb   : > { %v4391_v24 = vpop.f32.mrf.mxu0  ;;  %v4410_v12 = vpop.f32.mrf.mxu1 }
 0x3cc   : > { %v4411_v25 = vadd.f32 %v4410_v12, %v4391_v24 }
 0x3cd   : > { %v4360_v41 = vpop.f32.mrf.mxu2  ;;  %v4379_v52 = vpop.f32.mrf.mxu3 }
 0x3ce   : > { %v4361_v57 = vadd.f32 %v4360_v41, %v4342_v51 }
 0x3d0   : > { %v9753_v31 = vadd.f32 %v4379_v52, %v4361_v57 }
 0x3d3   : > { %v4393_v48 = vpop.f32.mrf.mxu0  ;;  %v4412_v2 = vpop.f32.mrf.mxu1 }
 0x3d4   : > { %v4413_v63 = vadd.f32 %v4412_v2, %v4393_v48 }
 0x3d5   : > { %v4429_v29 = vpop.f32.mrf.mxu2  ;;  %v4448_v30 = vpop.f32.mrf.mxu3 }
 0x3d6   : > { %v4430_v60 = vadd.f32 %v4429_v29, %v4411_v25 }
 0x3d8   : > { %v4449_v11 = vadd.f32 %v4448_v30, %v4430_v60 }
 0x3db   : > { %v4396_v13 = vpop.f32.mrf.mxu0  ;;  %v4415_v14 = vpop.f32.mrf.mxu1 }
 0x3dc   : > { %v4416_v7 = vadd.f32 %v4415_v14, %v4396_v13 }
 0x3dd   : > { %v4431_v3 = vpop.f32.mrf.mxu2  ;;  %v4450_v8 = vpop.f32.mrf.mxu3 }
 0x3de   : > { %v4432_v4 = vadd.f32 %v4431_v3, %v4413_v63 }
 0x3e0   : > { %v4451_v5 = vadd.f32 %v4450_v8, %v4432_v4 }
 0x3e3   : > { %v4398_v23 = vpop.f32.mrf.mxu0  ;;  %v4417_v18 = vpop.f32.mrf.mxu1 }
 0x3e4   : > { %v4418_v50 = vadd.f32 %v4417_v18, %v4398_v23 }
 0x3e5   : > { %v4434_v20 = vpop.f32.mrf.mxu2  ;;  %v4453_v9 = vpop.f32.mrf.mxu3 }
 0x3e6   : > { %v4435_v27 = vadd.f32 %v4434_v20, %v4416_v7 }
 0x3e8   : > { %v4454_v28 = vadd.f32 %v4453_v9, %v4435_v27 }
 0x3eb   : > { %v4467_v35 = vpop.f32.mrf.mxu0  ;;  %v4486_v39 = vpop.f32.mrf.mxu1 }
 0x3ec   : > { %v4468_v16 = vadd.f32 %v4467_v35, %v4449_v11 }
 0x3ed   : > { %v4436_v32 = vpop.f32.mrf.mxu2  ;;  %v4455_v42 = vpop.f32.mrf.mxu3 }
 0x3ee   : > { %v4437_v36 = vadd.f32 %v4436_v32, %v4418_v50  ;;  %v4487_v21 = vadd.f32 %v4486_v39, %v4468_v16 }
 0x3f0   : > { %v4456_v38 = vadd.f32 %v4455_v42, %v4437_v36 }
 0x3f3   : > { %v4469_v47 = vpop.f32.mrf.mxu0  ;;  %v4488_v15 = vpop.f32.mrf.mxu1 }
 0x3f4   : > { %v4470_v58 = vadd.f32 %v4469_v47, %v4451_v5 }
 0x3f5   : > { %v4505_v22 = vpop.f32.mrf.mxu2  ;;  %v4524_v59 = vpop.f32.mrf.mxu3 }
 0x3f6   : > { %v4506_v45 = vadd.f32 %v4505_v22, %v4487_v21  ;;  %v4489_v41 = vadd.f32 %v4488_v15, %v4470_v58 }
 0x3f8   : > { %v9758_v51 = vadd.f32 %v4524_v59, %v4506_v45 }
 0x3fb   : > { %v4472_v12 = vpop.f32.mrf.mxu0  ;;  %v4491_v25 = vpop.f32.mrf.mxu1 }
 0x3fc   : > { %v4473_v29 = vadd.f32 %v4472_v12, %v4454_v28 }
 0x3fd   : > { %v4507_v52 = vpop.f32.mrf.mxu2  ;;  %v4526_v57 = vpop.f32.mrf.mxu3 }
 0x3fe   : > { %v4508_v24 = vadd.f32 %v4507_v52, %v4489_v41  ;;  %v4492_v60 = vadd.f32 %v4491_v25, %v4473_v29 }
 0x400   : > { %v9760_v30 = vadd.f32 %v4526_v57, %v4508_v24 }
 0x403   : > { %v4474_v11 = vpop.f32.mrf.mxu0  ;;  %v4493_v3 = vpop.f32.mrf.mxu1 }
 0x404   : > { %v4475_v8 = vadd.f32 %v4474_v11, %v4456_v38 }
 0x405   : > { %v4510_v48 = vpop.f32.mrf.mxu2  ;;  %v4529_v2 = vpop.f32.mrf.mxu3 }
 0x406   : > { %v4511_v63 = vadd.f32 %v4510_v48, %v4492_v60  ;;  %v4494_v13 = vadd.f32 %v4493_v3, %v4475_v8 }
 0x408   : > { %v9762_v4 = vadd.f32 %v4529_v2, %v4511_v63 }
 0x40b   : > { %v4543_v20 = vpop.f32.mrf.mxu0  ;;  %v4562_v9 = vpop.f32.mrf.mxu1 }
 0x40c   : > { %v4563_v22 = vadd.f32 %v4562_v9, %v4543_v20 }
 0x40d   : > { %v4512_v14 = vpop.f32.mrf.mxu2  ;;  %v4531_v7 = vpop.f32.mrf.mxu3 }
 0x40e   : > { %v4513_v5 = vadd.f32 %v4512_v14, %v4494_v13 }
 0x410   : > { %v9764_v27 = vadd.f32 %v4531_v7, %v4513_v5 }
 0x413   : > { %v4545_v50 = vpop.f32.mrf.mxu0  ;;  %v4564_v28 = vpop.f32.mrf.mxu1 }
 0x414   : > { %v4565_v52 = vadd.f32 %v4564_v28, %v4545_v50 }
 0x415   : > { %v4581_v23 = vpop.f32.mrf.mxu2  ;;  %v4600_v18 = vpop.f32.mrf.mxu3 }
 0x416   : > { %v4582_v59 = vadd.f32 %v4581_v23, %v4563_v22 }
 0x418   : > { %v4601_v15 = vadd.f32 %v4600_v18, %v4582_v59 }
 0x41b   : > { %v4548_v36 = vpop.f32.mrf.mxu0  ;;  %v4567_v35 = vpop.f32.mrf.mxu1 }
 0x41c   : > { %v4568_v11 = vadd.f32 %v4567_v35, %v4548_v36 }
 0x41d   : > { %v4583_v32 = vpop.f32.mrf.mxu2  ;;  %v4602_v42 = vpop.f32.mrf.mxu3 }
 0x41e   : > { %v4584_v24 = vadd.f32 %v4583_v32, %v4565_v52 }
 0x420   : > { %v4603_v60 = vadd.f32 %v4602_v42, %v4584_v24 }
 0x423   : > { %v4550_v38 = vpop.f32.mrf.mxu0  ;;  %v4569_v21 = vpop.f32.mrf.mxu1 }
 0x424   : > { %v4570_v18 = vadd.f32 %v4569_v21, %v4550_v38 }
 0x425   : > { %v4586_v39 = vpop.f32.mrf.mxu2  ;;  %v4605_v16 = vpop.f32.mrf.mxu3 }
 0x426   : > { %v4587_v13 = vadd.f32 %v4586_v39, %v4568_v11 }
 0x428   : > { %v4606_v20 = vadd.f32 %v4605_v16, %v4587_v13 }
 0x42d   : > { %v4588_v45 = vpop.f32.mrf.mxu2  ;;  %v4607_v47 = vpop.f32.mrf.mxu3 }
 0x42e   : > { %v4589_v42 = vadd.f32 %v4588_v45, %v4570_v18 }
 0x430   : > { %v4608_v36 = vadd.f32 %v4607_v47, %v4589_v42 }
 0x431   : > { %v4619_v58 = vpop.f32.mrf.mxu0 }
 0x432   : > { %v4620_v57 = vadd.f32 %v4619_v58, %v4601_v15 }
 0x433   : > { %v4638_v41 = vpop.f32.mrf.mxu1 }
 0x434   : > { %v4639_v12 = vadd.f32 %v4638_v41, %v4620_v57 }
 0x435   : > { %v4657_v25 = vpop.f32.mrf.mxu2 }
 0x436   : > { %v4658_v48 = vadd.f32 %v4657_v25, %v4639_v12 }
 0x439   : > { %v4621_v2 = vpop.f32.mrf.mxu0 }
 0x43a   : > { %v4622_v8 = vadd.f32 %v4621_v2, %v4603_v60 }
 0x43b   : > { %v4676_v29 = vpop.f32.mrf.mxu3  ;;  %v4640_v63 = vpop.f32.mrf.mxu1 }
 0x43c   : > { %v9766_v3 = vadd.f32 %v4676_v29, %v4658_v48  ;;  %v4641_v14 = vadd.f32 %v4640_v63, %v4622_v8 }
 0x43d   : > { %v4659_v7 = vpop.f32.mrf.mxu2 }
 0x43e   : > { %v4660_v9 = vadd.f32 %v4659_v7, %v4641_v14 }
 0x441   : > { %v4624_v23 = vpop.f32.mrf.mxu0 }
 0x442   : > { %v4625_v28 = vadd.f32 %v4624_v23, %v4606_v20 }
 0x443   : > { %v4678_v5 = vpop.f32.mrf.mxu3  ;;  %v4643_v32 = vpop.f32.mrf.mxu1 }
 0x444   : > { %v9768_v50 = vadd.f32 %v4678_v5, %v4660_v9  ;;  %v4644_v22 = vadd.f32 %v4643_v32, %v4625_v28 }
 0x445   : > { %v4662_v59 = vpop.f32.mrf.mxu2 }
 0x446   : > { %v4663_v35 = vadd.f32 %v4662_v59, %v4644_v22 }
 0x449   : > { %v4626_v58 = vpop.f32.mrf.mxu0 }
 0x44a   : > { %v4627_v39 = vadd.f32 %v4626_v58, %v4608_v36 }
 0x44b   : > { %v4681_v15 = vpop.f32.mrf.mxu3  ;;  %v4645_v52 = vpop.f32.mrf.mxu1 }
 0x44c   : > { %v9770_v41 = vadd.f32 %v4681_v15, %v4663_v35  ;;  %v4646_v57 = vadd.f32 %v4645_v52, %v4627_v39 }
 0x44d   : > { %v4664_v16 = vpop.f32.mrf.mxu2 }
 0x44e   : > { %v4665_v24 = vadd.f32 %v4664_v16, %v4646_v57 }
 0x450   : > { %4690 = sbr.rel (%p7392_p7) target bundleno = 1141 (0x475), region = 48 }
 0x453   : > { %v4683_v12 = vpop.f32.mrf.mxu3 }
 0x454   : > { %v9772_v38 = vadd.f32 %v4683_v12, %v4665_v24 }
 0x455   : > { %4691 = vst [vmem:[#allocation3 + $0xb0] sm:$0xff] %v8972_v0  ;;  %v10241_v21 = vld [vmem:[#allocation19_spill] sm:$0xff]  ;;  %v10242_v45 = vld [vmem:[#allocation20_spill] sm:$0xff] }
 0x456   : > { %4692 = vst [vmem:[#allocation3] sm:$0xff] %v9136_v46 }
 0x457   : > { %4693 = vst [vmem:[#allocation3 + $0xd8] sm:$0xff] %v9300_v1 }
 0x458   : > { %4694 = vst [vmem:[#allocation3 + $0x18] sm:$0xff] %v9464_v61 }
 0x459   : > { %4695 = vst [vmem:[#allocation3 + $0x50] sm:$0xff] %v9628_v44 }
 0x45a   : > { %4696 = vst [vmem:[#allocation3 + $0x68] sm:$0xff] %v9743_v34 }
 0x45b   : > { %4697 = vst [vmem:[#allocation3 + $0x30] sm:$0xff] %v9758_v51 }
 0x45c   : > { %4698 = vst [vmem:[#allocation3 + $0x48] sm:$0xff] %v9766_v3 }
 0x45d   : > { %4699 = vst [vmem:[#allocation3 + $0x80] sm:$0xff] %v8993_v49 }
 0x45e   : > { %4700 = vst [vmem:[#allocation3 + $0x88] sm:$0xff] %v9157_v37 }
 0x45f   : > { %4701 = vst [vmem:[#allocation3 + $0xe8] sm:$0xff] %v9321_v55 }
 0x460   : > { %4702 = vst [vmem:[#allocation3 + $0xb8] sm:$0xff] %v9485_v6 }
 0x461   : > { %4703 = vst [vmem:[#allocation3 + $0x60] sm:$0xff] %v9649_v19 }
 0x462   : > { %4704 = vst [vmem:[#allocation3 + $0xf0] sm:$0xff] %v9745_v17 }
 0x463   : > { %4705 = vst [vmem:[#allocation3 + $0x8] sm:$0xff] %v9760_v30 }
 0x464   : > { %4706 = vst [vmem:[#allocation3 + $0x78] sm:$0xff] %v9768_v50 }
 0x465   : > { %4707 = vst [vmem:[#allocation3 + $0x38] sm:$0xff] %v9020_v40 }
 0x466   : > { %4708 = vst [vmem:[#allocation3 + $0x58] sm:$0xff] %v9184_v33 }
 0x467   : > { %4709 = vst [vmem:[#allocation3 + $0x40] sm:$0xff] %v9348_v56 }
 0x468   : > { %4710 = vst [vmem:[#allocation3 + $0xc8] sm:$0xff] %v9512_v26 }
 0x469   : > { %4711 = vst [vmem:[#allocation3 + $0xe0] sm:$0xff] %v9676_v43 }
 0x46a   : > { %4712 = vst [vmem:[#allocation3 + $0x90] sm:$0xff] %v9751_v54 }
 0x46b   : > { %4713 = vst [vmem:[#allocation3 + $0x70] sm:$0xff] %v9762_v4 }
 0x46c   : > { %4714 = vst [vmem:[#allocation3 + $0xc0] sm:$0xff] %v9770_v41 }
 0x46d   : > { %4715 = vst [vmem:[#allocation3 + $0xa8] sm:$0xff] %v9032_v10 }
 0x46e   : > { %4716 = vst [vmem:[#allocation3 + $0xd0] sm:$0xff] %v9196_v62 }
 0x46f   : > { %4717 = vst [vmem:[#allocation3 + $0x10] sm:$0xff] %v10241_v21 }
 0x470   : > { %4718 = vst [vmem:[#allocation3 + $0x28] sm:$0xff] %v10242_v45 }
 0x471   : > { %4719 = vst [vmem:[#allocation3 + $0xa0] sm:$0xff] %v9688_v53 }
 0x472   : > { %4720 = vst [vmem:[#allocation3 + $0xf8] sm:$0xff] %v9753_v31 }
 0x473   : > { %4721 = vst [vmem:[#allocation3 + $0x20] sm:$0xff] %v9764_v27 }
 0x474   : > { %4722 = vst [vmem:[#allocation3 + $0x98] sm:$0xff] %v9772_v38 }
 0x475 PF: > { %p7393_p11 = scmp.eq.s32.totalorder %s9756_s26, 1 }
 0x477   : > { %4726 = sbr.rel (%p7393_p11) target bundleno = 1183 (0x49f), region = 52 }
 0x47c   : > { %v4727_v47 = vld [vmem:[#allocation3 + $0xb0] sm:$0xff]  ;;  %v4728_v25 = vld [vmem:[#allocation3] sm:$0xff]  ;;  %v4729_v29 = vld [vmem:[#allocation3 + $0xd8] sm:$0xff] }
 0x47d   : > { %v4759_v60 = vadd.f32 %v4727_v47, %v8972_v0  ;;  %v4760_v48 = vadd.f32 %v4728_v25, %v9136_v46  ;;  %v4761_v2 = vadd.f32 %v4729_v29, %v9300_v1  ;;  %v4730_v63 = vld [vmem:[#allocation3 + $0x18] sm:$0xff]  ;;  %v4731_v11 = vld [vmem:[#allocation3 + $0x50] sm:$0xff]  ;;  %v4732_v8 = vld [vmem:[#allocation3 + $0x68] sm:$0xff] }
 0x47e   : > { %v4762_v13 = vadd.f32 %v4730_v63, %v9464_v61  ;;  %v4733_v14 = vld [vmem:[#allocation3 + $0x30] sm:$0xff]  ;;  %v4763_v7 = vadd.f32 %v4731_v11, %v9628_v44  ;;  %v4734_v5 = vld [vmem:[#allocation3 + $0x48] sm:$0xff]  ;;  %v4764_v20 = vadd.f32 %v4732_v8, %v9743_v34  ;;  %v4735_v9 = vld [vmem:[#allocation3 + $0x80] sm:$0xff] }
 0x47f   : > { %4791 = vst [vmem:[#allocation3 + $0xb0] sm:$0xff] %v4759_v60  ;;  %v4765_v0 = vadd.f32 %v4733_v14, %v9758_v51  ;;  %v4736_v46 = vld [vmem:[#allocation3 + $0x88] sm:$0xff]  ;;  %v4766_v1 = vadd.f32 %v4734_v5, %v9766_v3  ;;  %v4767_v61 = vadd.f32 %v4735_v9, %v8993_v49  ;;  %v4738_v18 = vld [vmem:[#allocation3 + $0xb8] sm:$0xff]  ;;  %v4739_v28 = vld [vmem:[#allocation3 + $0x60] sm:$0xff] }
 0x480   : > { %4792 = vst [vmem:[#allocation3] sm:$0xff] %v4760_v48  ;;  %v4737_v23 = vld [vmem:[#allocation3 + $0xe8] sm:$0xff]  ;;  %v4768_v44 = vadd.f32 %v4736_v46, %v9157_v37  ;;  %v4740_v32 = vld [vmem:[#allocation3 + $0xf0] sm:$0xff]  ;;  %v4770_v51 = vadd.f32 %v4738_v18, %v9485_v6  ;;  %v4771_v3 = vadd.f32 %v4739_v28, %v9649_v19  ;;  %v4742_v22 = vld [vmem:[#allocation3 + $0x78] sm:$0xff] }
 0x481   : > { %4793 = vst [vmem:[#allocation3 + $0xd8] sm:$0xff] %v4761_v2  ;;  %v4769_v34 = vadd.f32 %v4737_v23, %v9321_v55  ;;  %v4741_v42 = vld [vmem:[#allocation3 + $0x8] sm:$0xff]  ;;  %v4772_v49 = vadd.f32 %v4740_v32, %v9745_v17  ;;  %v4743_v59 = vld [vmem:[#allocation3 + $0x38] sm:$0xff]  ;;  %v4774_v55 = vadd.f32 %v4742_v22, %v9768_v50  ;;  %v4745_v36 = vld [vmem:[#allocation3 + $0x40] sm:$0xff] }
 0x482   : > { %4794 = vst [vmem:[#allocation3 + $0x18] sm:$0xff] %v4762_v13  ;;  %v4773_v37 = vadd.f32 %v4741_v42, %v9760_v30  ;;  %v4744_v15 = vld [vmem:[#allocation3 + $0x58] sm:$0xff]  ;;  %v4775_v6 = vadd.f32 %v4743_v59, %v9020_v40  ;;  %v4746_v35 = vld [vmem:[#allocation3 + $0xc8] sm:$0xff]  ;;  %v4747_v58 = vld [vmem:[#allocation3 + $0xe0] sm:$0xff]  ;;  %v4777_v17 = vadd.f32 %v4745_v36, %v9348_v56 }
 0x483   : > { %4795 = vst [vmem:[#allocation3 + $0x50] sm:$0xff] %v4763_v7  ;;  %v4776_v19 = vadd.f32 %v4744_v15, %v9184_v33  ;;  %v4748_v39 = vld [vmem:[#allocation3 + $0x90] sm:$0xff]  ;;  %v4778_v30 = vadd.f32 %v4746_v35, %v9512_v26  ;;  %v4779_v50 = vadd.f32 %v4747_v58, %v9676_v43  ;;  %v4750_v57 = vld [vmem:[#allocation3 + $0xc0] sm:$0xff]  ;;  %v4751_v16 = vld [vmem:[#allocation3 + $0xa8] sm:$0xff] }
 0x484   : > { %4796 = vst [vmem:[#allocation3 + $0x68] sm:$0xff] %v4764_v20  ;;  %v4749_v52 = vld [vmem:[#allocation3 + $0x70] sm:$0xff]  ;;  %v4780_v40 = vadd.f32 %v4748_v39, %v9751_v54  ;;  %v4782_v56 = vadd.f32 %v4750_v57, %v9770_v41  ;;  %v4783_v26 = vadd.f32 %v4751_v16, %v9032_v10  ;;  %v4754_v21 = vld [vmem:[#allocation3 + $0x28] sm:$0xff]  ;;  %v4755_v45 = vld [vmem:[#allocation3 + $0xa0] sm:$0xff] }
 0x485   : > { %4797 = vst [vmem:[#allocation3 + $0x30] sm:$0xff] %v4765_v0  ;;  %v4781_v33 = vadd.f32 %v4749_v52, %v9762_v4  ;;  %v4752_v24 = vld [vmem:[#allocation3 + $0xd0] sm:$0xff]  ;;  %v4756_v25 = vld [vmem:[#allocation3 + $0xf8] sm:$0xff]  ;;  %v4757_v60 = vld [vmem:[#allocation3 + $0x20] sm:$0xff]  ;;  %v4787_v41 = vadd.f32 %v4755_v45, %v9688_v53 }
 0x486   : > { %4798 = vst [vmem:[#allocation3 + $0x48] sm:$0xff] %v4766_v1  ;;  %v4753_v12 = vld [vmem:[#allocation3 + $0x10] sm:$0xff]  ;;  %v4784_v43 = vadd.f32 %v4752_v24, %v9196_v62  ;;  %v10244_v29 = vld [vmem:[#allocation20_spill] sm:$0xff]  ;;  %v4788_v10 = vadd.f32 %v4756_v25, %v9753_v31  ;;  %v4789_v2 = vadd.f32 %v4757_v60, %v9764_v27 }
 0x487   : > { %4799 = vst [vmem:[#allocation3 + $0x80] sm:$0xff] %v4767_v61  ;;  %v10243_v47 = vld [vmem:[#allocation19_spill] sm:$0xff]  ;;  %v4786_v4 = vadd.f32 %v4754_v21, %v10244_v29  ;;  %v4758_v48 = vld [vmem:[#allocation3 + $0x98] sm:$0xff] }
 0x488   : > { %4800 = vst [vmem:[#allocation3 + $0x88] sm:$0xff] %v4768_v44  ;;  %v4785_v54 = vadd.f32 %v4753_v12, %v10243_v47  ;;  %v4790_v62 = vadd.f32 %v4758_v48, %v9772_v38 }
 0x489   : > { %4801 = vst [vmem:[#allocation3 + $0xe8] sm:$0xff] %v4769_v34 }
 0x48a   : > { %4802 = vst [vmem:[#allocation3 + $0xb8] sm:$0xff] %v4770_v51 }
 0x48b   : > { %4803 = vst [vmem:[#allocation3 + $0x60] sm:$0xff] %v4771_v3 }
 0x48c   : > { %4804 = vst [vmem:[#allocation3 + $0xf0] sm:$0xff] %v4772_v49 }
 0x48d   : > { %4805 = vst [vmem:[#allocation3 + $0x8] sm:$0xff] %v4773_v37 }
 0x48e   : > { %4806 = vst [vmem:[#allocation3 + $0x78] sm:$0xff] %v4774_v55 }
 0x48f   : > { %4807 = vst [vmem:[#allocation3 + $0x38] sm:$0xff] %v4775_v6 }
 0x490   : > { %4808 = vst [vmem:[#allocation3 + $0x58] sm:$0xff] %v4776_v19 }
 0x491   : > { %4809 = vst [vmem:[#allocation3 + $0x40] sm:$0xff] %v4777_v17 }
 0x492   : > { %4810 = vst [vmem:[#allocation3 + $0xc8] sm:$0xff] %v4778_v30 }
 0x493   : > { %4811 = vst [vmem:[#allocation3 + $0xe0] sm:$0xff] %v4779_v50 }
 0x494   : > { %4812 = vst [vmem:[#allocation3 + $0x90] sm:$0xff] %v4780_v40 }
 0x495   : > { %4813 = vst [vmem:[#allocation3 + $0x70] sm:$0xff] %v4781_v33 }
 0x496   : > { %4814 = vst [vmem:[#allocation3 + $0xc0] sm:$0xff] %v4782_v56 }
 0x497   : > { %4815 = vst [vmem:[#allocation3 + $0xa8] sm:$0xff] %v4783_v26 }
 0x498   : > { %4816 = vst [vmem:[#allocation3 + $0xd0] sm:$0xff] %v4784_v43 }
 0x499   : > { %4817 = vst [vmem:[#allocation3 + $0x10] sm:$0xff] %v4785_v54 }
 0x49a   : > { %4818 = vst [vmem:[#allocation3 + $0x28] sm:$0xff] %v4786_v4 }
 0x49b   : > { %4819 = vst [vmem:[#allocation3 + $0xa0] sm:$0xff] %v4787_v41 }
 0x49c   : > { %4820 = vst [vmem:[#allocation3 + $0xf8] sm:$0xff] %v4788_v10 }
 0x49d   : > { %4821 = vst [vmem:[#allocation3 + $0x20] sm:$0xff] %v4789_v2 }
 0x49e   : > { %4822 = vst [vmem:[#allocation3 + $0x98] sm:$0xff] %v4790_v62 }
 0x49f PF: > { %s4823_s25 = sld [smem:[#allocation8 + %s8280_s6]] }
 0x4a5   : > { %p7394_p2 = scmp.ne.s32.totalorder %s4823_s25, 1 }
 0x4a7   : > { %4827 = sbr.rel (%p7394_p2) target bundleno = 1308 (0x51c), region = 56 }
 0x4ac   : > { %s4910_s21 = sld [smem:[#allocation9 + %s8280_s6]]  ;;  %v4828_v53 = vld [vmem:[#allocation3 + $0xb0] sm:$0xff]  ;;  %v4829_v31 = vld [vmem:[#allocation3] sm:$0xff]  ;;  %v4830_v27 = vld [vmem:[#allocation3 + $0xd8] sm:$0xff] }
 0x4ad   : > { %s9843_s23 = sld [smem:[#allocation6 + %s8280_s6]]  ;;  %v4831_v38 = vld [vmem:[#allocation3 + $0x18] sm:$0xff]  ;;  %v4832_v63 = vld [vmem:[#allocation3 + $0x50] sm:$0xff]  ;;  %v4833_v11 = vld [vmem:[#allocation3 + $0x68] sm:$0xff] }
 0x4ae   : > { %s9846_s0 = sld [smem:[#allocation10 + %s8280_s6]]  ;;  %v4834_v8 = vld [vmem:[#allocation3 + $0x30] sm:$0xff]  ;;  %v4835_v13 = vld [vmem:[#allocation3 + $0x48] sm:$0xff]  ;;  %v4836_v14 = vld [vmem:[#allocation3 + $0x80] sm:$0xff] }
 0x4af   : > { %s9849_s1 = sld [smem:[#allocation11 + %s8280_s6]]  ;;  %v4860_v7 = vld [vmem:[%s8367_s12] sm:$0xff]  ;;  %v4839_v9 = vld [vmem:[#allocation3 + $0xb8] sm:$0xff]  ;;  %v4841_v18 = vld [vmem:[#allocation3 + $0xf0] sm:$0xff] }
 0x4b0   : > { %v4837_v5 = vld [vmem:[#allocation3 + $0x88] sm:$0xff]  ;;  %v4862_v0 = vperm.slane %v4860_v7, 0  ;;  %v4863_v46 = vperm.slane %v4860_v7, 1  ;;  %v4864_v1 = vperm.slane %v4860_v7, 2  ;;  %v4865_v23 = vperm.slane %v4860_v7, 3  ;;  %v4840_v61 = vld [vmem:[#allocation3 + $0x60] sm:$0xff] }
 0x4b1   : > { %v4838_v20 = vld [vmem:[#allocation3 + $0xe8] sm:$0xff]  ;;  %v4866_v44 = vperm.slane %v4860_v7, 4  ;;  %v4867_v28 = vperm.slane %v4860_v7, 5  ;;  %v4868_v34 = vperm.slane %v4860_v7, 6  ;;  %v4869_v32 = vperm.slane %v4860_v7, 7  ;;  %v4843_v42 = vld [vmem:[#allocation3 + $0x78] sm:$0xff] }
 0x4b2   : > { %p4911_p3 = scmp.eq.s32.totalorder %s4910_s21, 1  ;;  %v4842_v51 = vld [vmem:[#allocation3 + $0x8] sm:$0xff]  ;;  %v4844_v3 = vld [vmem:[#allocation3 + $0x38] sm:$0xff]  ;;  %v9864_v22 = vadd.f32 %v4862_v0, %v4828_v53  ;;  %v4846_v37 = vld [vmem:[#allocation3 + $0x40] sm:$0xff]  ;;  %v9867_v55 = vadd.f32 %v4863_v46, %v4829_v31  ;;  %v9869_v36 = vadd.f32 %v4864_v1, %v4830_v27  ;;  %v9871_v6 = vadd.f32 %v4865_v23, %v4831_v38 }
 0x4b3   : > { %v4845_v59 = vld [vmem:[#allocation3 + $0x58] sm:$0xff]  ;;  %v4847_v15 = vld [vmem:[#allocation3 + $0xc8] sm:$0xff]  ;;  %v9873_v35 = vadd.f32 %v4866_v44, %v4832_v63  ;;  %v4848_v19 = vld [vmem:[#allocation3 + $0xe0] sm:$0xff]  ;;  %v9875_v39 = vadd.f32 %v4867_v28, %v4833_v11  ;;  %v9877_v30 = vadd.f32 %v4868_v34, %v4834_v8  ;;  %v9879_v52 = vadd.f32 %v4869_v32, %v4835_v13 }
 0x4b4   : > { %s9851_s27 = scalar_select %p4911_p3, 1, 0  ;;  %v4849_v58 = vld [vmem:[#allocation3 + $0x90] sm:$0xff]  ;;  %v9881_v50 = vadd.f32 %v4862_v0, %v4836_v14  ;;  %v4851_v57 = vld [vmem:[#allocation3 + $0xc0] sm:$0xff]  ;;  %v4852_v40 = vld [vmem:[#allocation3 + $0xa8] sm:$0xff]  ;;  %v9883_v33 = vadd.f32 %v4863_v46, %v4837_v5  ;;  %v9885_v24 = vadd.f32 %v4864_v1, %v4838_v20  ;;  %v9887_v56 = vadd.f32 %v4865_v23, %v4839_v9 }
 0x4b5   : > { %p4981_p4 = scmp.eq.s32.totalorder %s9846_s0, 1  ;;  %p4983_p5 = scmp.eq.s32.totalorder %s9849_s1, 1  ;;  %v4850_v17 = vld [vmem:[#allocation3 + $0x70] sm:$0xff]  ;;  %v9889_v12 = vadd.f32 %v4866_v44, %v4840_v61  ;;  %v4855_v21 = vld [vmem:[#allocation3 + $0x28] sm:$0xff]  ;;  %v4856_v43 = vld [vmem:[#allocation3 + $0xa0] sm:$0xff]  ;;  %v9891_v45 = vadd.f32 %v4867_v28, %v4841_v18  ;;  %v9893_v47 = vadd.f32 %v4868_v34, %v4842_v51  ;;  %v9895_v54 = vadd.f32 %v4869_v32, %v4843_v42 }
 0x4b6   : > { %v4853_v16 = vld [vmem:[#allocation3 + $0xd0] sm:$0xff]  ;;  %v9897_v25 = vadd.f32 %v4862_v0, %v4844_v3  ;;  %v4857_v29 = vld [vmem:[#allocation3 + $0xf8] sm:$0xff]  ;;  %v4858_v4 = vld [vmem:[#allocation3 + $0x20] sm:$0xff]  ;;  %v9899_v41 = vadd.f32 %v4863_v46, %v4845_v59  ;;  %v9901_v48 = vadd.f32 %v4864_v1, %v4846_v37  ;;  %v9903_v10 = vadd.f32 %v4865_v23, %v4847_v15 }
 0x4b7   : > { %p9860_p6 = por %p4983_p5, %p4981_p4  ;;  %v4854_v26 = vld [vmem:[#allocation3 + $0x10] sm:$0xff]  ;;  %v4859_v60 = vld [vmem:[#allocation3 + $0x98] sm:$0xff]  ;;  %v9905_v2 = vadd.f32 %v4866_v44, %v4848_v19  ;;  %v9907_v62 = vadd.f32 %v4867_v28, %v4849_v58  ;;  %v9909_v53 = vadd.f32 %v4868_v34, %v4850_v17  ;;  %v9911_v31 = vadd.f32 %v4869_v32, %v4851_v57 }
 0x4b8   : > { %v9913_v27 = vadd.f32 %v4862_v0, %v4852_v40  ;;  %v9915_v38 = vadd.f32 %v4863_v46, %v4853_v16  ;;  %v9917_v63 = vadd.f32 %v4864_v1, %v4854_v26  ;;  %v9919_v11 = vadd.f32 %v4865_v23, %v4855_v21  ;;  %s7933_s12 = sshll.u32 (!%p9860_p6), %s9843_s23, 7 }
 0x4b9   : > { %10246 = vst [vmem:[#allocation21_spill] sm:$0xff] %v9907_v62  ;;  %v9921_v8 = vadd.f32 %v4866_v44, %v4856_v43  ;;  %v9923_v13 = vadd.f32 %v4867_v28, %v4857_v29  ;;  %v9925_v14 = vadd.f32 %v4868_v34, %v4858_v4  ;;  %v9927_v7 = vadd.f32 %v4869_v32, %v4859_v60  ;;  %s5006_s28 = scalar_lea.vmem (!%p9860_p6), [#allocation2], %s7933_s12 }
 0x4ba   : > { %10247 = vst [vmem:[#allocation22_spill] sm:$0xff] %v9909_v53  ;;  %v4912_v5 = vmax.f32 %v9864_v22, 0.0  ;;  %v4913_v20 = vmax.f32 %v9867_v55, 0.0  ;;  %v4914_v9 = vmax.f32 %v9869_v36, 0.0  ;;  %v4915_v0 = vmax.f32 %v9871_v6, 0.0 }
 0x4bb   : > { %10248 = vst [vmem:[#allocation23_spill] sm:$0xff] %v9915_v38  ;;  %v4916_v46 = vmax.f32 %v9873_v35, 0.0  ;;  %v4917_v1 = vmax.f32 %v9875_v39, 0.0  ;;  %v4918_v23 = vmax.f32 %v9877_v30, 0.0  ;;  %v4919_v61 = vmax.f32 %v9879_v52, 0.0 }
 0x4bc   : > { %10249 = vst [vmem:[#allocation24_spill] sm:$0xff] %v9921_v8  ;;  %v4920_v18 = vmax.f32 %v9881_v50, 0.0  ;;  %v4921_v44 = vmax.f32 %v9883_v33, 0.0  ;;  %v4922_v28 = vmax.f32 %v9885_v24, 0.0  ;;  %v4923_v34 = vmax.f32 %v9887_v56, 0.0 }
 0x4bd   : > { %10250 = vst [vmem:[#allocation25_spill] sm:$0xff] %v9925_v14  ;;  %v4924_v32 = vmax.f32 %v9889_v12, 0.0  ;;  %v4925_v51 = vmax.f32 %v9891_v45, 0.0  ;;  %v4926_v42 = vmax.f32 %v9893_v47, 0.0  ;;  %v4927_v3 = vmax.f32 %v9895_v54, 0.0 }
 0x4be   : > { %v4928_v59 = vmax.f32 %v9897_v25, 0.0  ;;  %v4929_v37 = vmax.f32 %v9899_v41, 0.0  ;;  %v4930_v15 = vmax.f32 %v9901_v48, 0.0  ;;  %v4931_v19 = vmax.f32 %v9903_v10, 0.0 }
 0x4bf   : > { %v4932_v58 = vmax.f32 %v9905_v2, 0.0  ;;  %v4933_v17 = vmax.f32 %v9907_v62, 0.0  ;;  %v4934_v57 = vmax.f32 %v9909_v53, 0.0  ;;  %v4935_v40 = vmax.f32 %v9911_v31, 0.0 }
 0x4c0   : > { %v4936_v16 = vmax.f32 %v9913_v27, 0.0  ;;  %v4937_v26 = vmax.f32 %v9915_v38, 0.0  ;;  %v4938_v21 = vmax.f32 %v9917_v63, 0.0  ;;  %v4939_v43 = vmax.f32 %v9919_v11, 0.0 }
 0x4c1   : > { %v4940_v29 = vmax.f32 %v9921_v8, 0.0  ;;  %v4941_v4 = vmax.f32 %v9923_v13, 0.0  ;;  %v4942_v60 = vmax.f32 %v9925_v14, 0.0  ;;  %v4943_v49 = vmax.f32 %v9927_v7, 0.0 }
 0x4c2   : > { %v10251_v62 = vstv %s9851_s27 }
 0x4c3   : > { %vm9963_vm0 = vcmp.eq.s32.totalorder %v10251_v62, 1 }
 0x4c4   : > { %v9970_v38 = vsel %vm9963_vm0, %v4912_v5, %v9864_v22  ;;  %v9975_v8 = vsel %vm9963_vm0, %v4913_v20, %v9867_v55  ;;  %v9980_v14 = vsel %vm9963_vm0, %v4914_v9, %v9869_v36  ;;  %v9985_v62 = vsel %vm9963_vm0, %v4915_v0, %v9871_v6  ;;  %v10256_v9 = vld [vmem:[#allocation23_spill] sm:$0xff] }
 0x4c5   : > { %v9990_v22 = vsel %vm9963_vm0, %v4916_v46, %v9873_v35  ;;  %v9995_v55 = vsel %vm9963_vm0, %v4917_v1, %v9875_v39  ;;  %v10000_v36 = vsel %vm9963_vm0, %v4918_v23, %v9877_v30  ;;  %v10005_v6 = vsel %vm9963_vm0, %v4919_v61, %v9879_v52  ;;  %v10257_v23 = vld [vmem:[#allocation24_spill] sm:$0xff]  ;;  %v10258_v61 = vld [vmem:[#allocation25_spill] sm:$0xff] }
 0x4c6   : > { %v4955_v35 = vsel %vm9963_vm0, %v4920_v18, %v9881_v50  ;;  %v4956_v5 = vsel %vm9963_vm0, %v4921_v44, %v9883_v33  ;;  %v10016_v39 = vsel %vm9963_vm0, %v4922_v28, %v9885_v24  ;;  %v10021_v30 = vsel %vm9963_vm0, %v4923_v34, %v9887_v56 }
 0x4c7   : > { %v10026_v52 = vsel %vm9963_vm0, %v4924_v32, %v9889_v12  ;;  %v10031_v50 = vsel %vm9963_vm0, %v4925_v51, %v9891_v45  ;;  %v10036_v33 = vsel %vm9963_vm0, %v4926_v42, %v9893_v47  ;;  %v10041_v24 = vsel %vm9963_vm0, %v4927_v3, %v9895_v54  ;;  %4987 = sbr.rel (%p9860_p6) target bundleno = 1246 (0x4de), region = 60 }
 0x4c8   : > { %v4963_v56 = vsel %vm9963_vm0, %v4928_v59, %v9897_v25  ;;  %v4964_v12 = vsel %vm9963_vm0, %v4929_v37, %v9899_v41  ;;  %v10052_v45 = vsel %vm9963_vm0, %v4930_v15, %v9901_v48  ;;  %v10057_v47 = vsel %vm9963_vm0, %v4931_v19, %v9903_v10  ;;  %v10254_v25 = vld [vmem:[#allocation21_spill] sm:$0xff]  ;;  %v10255_v41 = vld [vmem:[#allocation22_spill] sm:$0xff] }
 0x4c9   : > { %v10062_v54 = vsel %vm9963_vm0, %v4932_v58, %v9905_v2  ;;  %v10067_v20 = vsel %vm9963_vm0, %v4933_v17, %v10254_v25  ;;  %v10072_v48 = vsel %vm9963_vm0, %v4934_v57, %v10255_v41  ;;  %v10077_v10 = vsel %vm9963_vm0, %v4935_v40, %v9911_v31 }
 0x4ca   : > { %v4971_v2 = vsel %vm9963_vm0, %v4936_v16, %v9913_v27  ;;  %v4972_v0 = vsel %vm9963_vm0, %v4937_v26, %v10256_v9  ;;  %v4973_v46 = vsel %vm9963_vm0, %v4938_v21, %v9917_v63  ;;  %v4974_v1 = vsel %vm9963_vm0, %v4939_v43, %v9919_v11 }
 0x4cb   : > { %v10094_v31 = vsel %vm9963_vm0, %v4940_v29, %v10257_v23  ;;  %v10099_v27 = vsel %vm9963_vm0, %v4941_v4, %v9923_v13  ;;  %v10104_v18 = vsel %vm9963_vm0, %v4942_v60, %v10258_v61  ;;  %v10109_v63 = vsel %vm9963_vm0, %v4943_v49, %v9927_v7 }
 0x4cc   : > { %v4988_v11 = vpack.c.bf16 %v9975_v8, %v9970_v38  ;;  %v4989_v13 = vpack.c.bf16 %v9985_v62, %v9980_v14  ;;  %v4990_v44 = vpack.c.bf16 %v9995_v55, %v9990_v22  ;;  %v4991_v28 = vpack.c.bf16 %v10005_v6, %v10000_v36 }
 0x4cd   : > { %v4992_v49 = vpack.c.bf16 %v4956_v5, %v4955_v35  ;;  %v4993_v53 = vpack.c.bf16 %v10021_v30, %v10016_v39  ;;  %v4994_v7 = vpack.c.bf16 %v10031_v50, %v10026_v52  ;;  %v4995_v34 = vpack.c.bf16 %v10041_v24, %v10036_v33 }
 0x4ce   : > { %5007 = vst [vmem:[%s5006_s28] sm:$0xff] %v4988_v11  ;;  %v4996_v32 = vpack.c.bf16 %v4964_v12, %v4963_v56  ;;  %v4997_v51 = vpack.c.bf16 %v10057_v47, %v10052_v45  ;;  %v4998_v42 = vpack.c.bf16 %v10067_v20, %v10062_v54  ;;  %v4999_v3 = vpack.c.bf16 %v10077_v10, %v10072_v48 }
 0x4cf   : > { %5008 = vst [vmem:[%s5006_s28 + $0x8] sm:$0xff] %v4989_v13  ;;  %v5000_v59 = vpack.c.bf16 %v4972_v0, %v4971_v2  ;;  %v5001_v37 = vpack.c.bf16 %v4974_v1, %v4973_v46  ;;  %v5002_v15 = vpack.c.bf16 %v10099_v27, %v10094_v31  ;;  %v5003_v19 = vpack.c.bf16 %v10109_v63, %v10104_v18 }
 0x4d0   : > { %5009 = vst [vmem:[%s5006_s28 + $0x10] sm:$0xff] %v4990_v44 }
 0x4d1   : > { %5010 = vst [vmem:[%s5006_s28 + $0x18] sm:$0xff] %v4991_v28 }
 0x4d2   : > { %5011 = vst [vmem:[%s5006_s28 + $0x20] sm:$0xff] %v4992_v49 }
 0x4d3   : > { %5012 = vst [vmem:[%s5006_s28 + $0x28] sm:$0xff] %v4993_v53 }
 0x4d4   : > { %5013 = vst [vmem:[%s5006_s28 + $0x30] sm:$0xff] %v4994_v7 }
 0x4d5   : > { %5014 = vst [vmem:[%s5006_s28 + $0x38] sm:$0xff] %v4995_v34 }
 0x4d6   : > { %5015 = vst [vmem:[%s5006_s28 + $0x40] sm:$0xff] %v4996_v32 }
 0x4d7   : > { %5016 = vst [vmem:[%s5006_s28 + $0x48] sm:$0xff] %v4997_v51 }
 0x4d8   : > { %5017 = vst [vmem:[%s5006_s28 + $0x50] sm:$0xff] %v4998_v42 }
 0x4d9   : > { %5018 = vst [vmem:[%s5006_s28 + $0x58] sm:$0xff] %v4999_v3 }
 0x4da   : > { %5019 = vst [vmem:[%s5006_s28 + $0x60] sm:$0xff] %v5000_v59 }
 0x4db   : > { %5020 = vst [vmem:[%s5006_s28 + $0x68] sm:$0xff] %v5001_v37 }
 0x4dc   : > { %5021 = vst [vmem:[%s5006_s28 + $0x70] sm:$0xff] %v5002_v15 }
 0x4dd   : > { %5022 = vst [vmem:[%s5006_s28 + $0x78] sm:$0xff] %v5003_v19 }
 0x4de PF: > { %p7397_p9 = scmp.ne.s32.totalorder %s9846_s0, 1 }
 0x4df   : > { %s7934_s29 = sshll.u32 (!%p7397_p9), %s9843_s23, 7 }
 0x4e0   : > { %5025 = sbr.rel (%p7397_p9) target bundleno = 1296 (0x510), region = 64  ;;  %s10164_s13 = scalar_lea.vmem (!%p7397_p9), [#allocation2], %s7934_s29 }
 0x4e5   : > { %v5026_v58 = vmax.f32 %v9970_v38, %v4955_v35  ;;  %v5033_v17 = vmax.f32 %v9975_v8, %v4956_v5  ;;  %v5082_v57 = vmax.f32 %v4963_v56, %v4971_v2  ;;  %v5089_v40 = vmax.f32 %v4964_v12, %v4972_v0 }
 0x4e6   : > { %v5040_v16 = vmax.f32 %v9980_v14, %v10016_v39  ;;  %v5047_v26 = vmax.f32 %v9985_v62, %v10021_v30  ;;  %vm5138_vm1 = vcmask 1040384   ;;  %v5096_v41 = vmax.f32 %v10052_v45, %v4973_v46 }
 0x4e7   : > { %v5027_v21 = vrot.slane %v5026_v58, 4  ;;  %v5034_v43 = vrot.slane %v5033_v17, 4  ;;  %v5083_v29 = vrot.slane %v5082_v57, 4  ;;  %v5090_v4 = vrot.slane %v5089_v40, 4 }
 0x4e8   : > { %v5041_v60 = vrot.slane %v5040_v16, 4  ;;  %v5048_v25 = vrot.slane %v5047_v26, 4  ;;  %v5103_v35 = vmax.f32 %v10057_v47, %v4974_v1  ;;  %vm5147_vm2 = vcmask 1041408  }
 0x4e9   : > { %v5028_v5 = vmax.f32 %v5026_v58, %v5027_v21  ;;  %v5035_v56 = vmax.f32 %v5033_v17, %v5034_v43  ;;  %v5084_v12 = vmax.f32 %v5082_v57, %v5083_v29  ;;  %v5091_v2 = vmax.f32 %v5089_v40, %v5090_v4 }
 0x4ea   : > { %v5042_v39 = vmax.f32 %v5040_v16, %v5041_v60  ;;  %v5049_v9 = vmax.f32 %v5047_v26, %v5048_v25  ;;  %v5097_v0 = vrot.slane %v5096_v41, 4  ;;  %v5104_v30 = vrot.slane %v5103_v35, 4 }
 0x4eb   : > { %v5029_v23 = vrot.slane %v5028_v5, 2  ;;  %v5036_v61 = vrot.slane %v5035_v56, 2  ;;  %v5085_v11 = vrot.slane %v5084_v12, 2  ;;  %v5092_v13 = vrot.slane %v5091_v2, 2 }
 0x4ec   : > { %v5043_v44 = vrot.slane %v5042_v39, 2  ;;  %v5050_v28 = vrot.slane %v5049_v9, 2  ;;  %v5098_v49 = vmax.f32 %v5096_v41, %v5097_v0  ;;  %v5105_v53 = vmax.f32 %v5103_v35, %v5104_v30 }
 0x4ed   : > { %v5030_v45 = vmax.f32 %v5028_v5, %v5029_v23  ;;  %v5037_v46 = vmax.f32 %v5035_v56, %v5036_v61  ;;  %v5086_v47 = vmax.f32 %v5084_v12, %v5085_v11  ;;  %v5093_v1 = vmax.f32 %v5091_v2, %v5092_v13 }
 0x4ee   : > { %v5044_v7 = vmax.f32 %v5042_v39, %v5043_v44  ;;  %v5051_v34 = vmax.f32 %v5049_v9, %v5050_v28  ;;  %v5099_v32 = vrot.slane %v5098_v49, 2  ;;  %v5106_v51 = vrot.slane %v5105_v53, 2 }
 0x4ef   : > { %v5031_v42 = vrot.slane %v5030_v45, 1  ;;  %v5038_v3 = vrot.slane %v5037_v46, 1  ;;  %v5087_v59 = vrot.slane %v5086_v47, 1  ;;  %v5094_v37 = vrot.slane %v5093_v1, 1 }
 0x4f0   : > { %v5045_v15 = vrot.slane %v5044_v7, 1  ;;  %v5052_v19 = vrot.slane %v5051_v34, 1  ;;  %v5100_v58 = vmax.f32 %v5098_v49, %v5099_v32  ;;  %v5107_v17 = vmax.f32 %v5105_v53, %v5106_v51 }
 0x4f1   : > { %v5032_v57 = vmax.f32 %v5030_v45, %v5031_v42  ;;  %v5039_v40 = vmax.f32 %v5037_v46, %v5038_v3  ;;  %v5088_v16 = vmax.f32 %v5086_v47, %v5087_v59  ;;  %v5095_v26 = vmax.f32 %v5093_v1, %v5094_v37 }
 0x4f2   : > { %v5046_v21 = vmax.f32 %v5044_v7, %v5045_v15  ;;  %v5053_v43 = vmax.f32 %v5051_v34, %v5052_v19  ;;  %v5101_v29 = vrot.slane %v5100_v58, 1  ;;  %v5108_v4 = vrot.slane %v5107_v17, 1 }
 0x4f3   : > { %v5139_v60 = vsel %vm5138_vm1, %v5032_v57, %v5088_v16  ;;  %v5140_v25 = vsel %vm5138_vm1, %v5039_v40, %v5095_v26  ;;  %v5054_v41 = vmax.f32 %v9990_v22, %v10026_v52  ;;  %v5061_v35 = vmax.f32 %v9995_v55, %v10031_v50 }
 0x4f4   : > { %v5148_v5 = vsel %vm5147_vm2, %v5139_v60, 0.0  ;;  %v5149_v56 = vsel %vm5147_vm2, %v5140_v25, 0.0  ;;  %v5102_v12 = vmax.f32 %v5100_v58, %v5101_v29  ;;  %v5109_v2 = vmax.f32 %v5107_v17, %v5108_v4 }
 0x4f5   : > { %v5156_v39 = vpack.c.bf16 %v5149_v56, %v5148_v5  ;;  %v5055_v9 = vrot.slane %v5054_v41, 4  ;;  %v5062_v0 = vrot.slane %v5061_v35, 4  ;;  %v5110_v30 = vmax.f32 %v10062_v54, %v10094_v31 }
 0x4f6   : > { %v5141_v23 = vsel %vm5138_vm1, %v5046_v21, %v5102_v12  ;;  %v5142_v61 = vsel %vm5138_vm1, %v5053_v43, %v5109_v2  ;;  %v5117_v22 = vmax.f32 %v10067_v20, %v10099_v27  ;;  %v5068_v55 = vmax.f32 %v10000_v36, %v10036_v33 }
 0x4f7   : > { %5164 = vst [vmem:[%s10164_s13] sm:$0xff] %v5156_v39  ;;  %v5150_v52 = vsel %vm5147_vm2, %v5141_v23, 0.0  ;;  %v5151_v50 = vsel %vm5147_vm2, %v5142_v61, 0.0  ;;  %v5056_v54 = vmax.f32 %v5054_v41, %v5055_v9  ;;  %v5063_v31 = vmax.f32 %v5061_v35, %v5062_v0 }
 0x4f8   : > { %v5157_v11 = vpack.c.bf16 %v5151_v50, %v5150_v52  ;;  %v5111_v13 = vrot.slane %v5110_v30, 4  ;;  %v5118_v44 = vrot.slane %v5117_v22, 4  ;;  %v5069_v28 = vrot.slane %v5068_v55, 4 }
 0x4f9   : > { %v5057_v49 = vrot.slane %v5056_v54, 2  ;;  %v5064_v20 = vrot.slane %v5063_v31, 2  ;;  %v5075_v36 = vmax.f32 %v10005_v6, %v10041_v24  ;;  %v5124_v33 = vmax.f32 %v10072_v48, %v10104_v18 }
 0x4fa   : > { %5165 = vst [vmem:[%s10164_s13 + $0x8] sm:$0xff] %v5157_v11  ;;  %v5112_v27 = vmax.f32 %v5110_v30, %v5111_v13  ;;  %v5119_v53 = vmax.f32 %v5117_v22, %v5118_v44  ;;  %v5070_v45 = vmax.f32 %v5068_v55, %v5069_v28  ;;  %v5131_v46 = vmax.f32 %v10077_v10, %v10109_v63 }
 0x4fb   : > { %v5058_v47 = vmax.f32 %v5056_v54, %v5057_v49  ;;  %v5065_v1 = vmax.f32 %v5063_v31, %v5064_v20  ;;  %v5076_v7 = vrot.slane %v5075_v36, 4  ;;  %v5125_v34 = vrot.slane %v5124_v33, 4 }
 0x4fc   : > { %v5113_v32 = vrot.slane %v5112_v27, 2  ;;  %v5120_v51 = vrot.slane %v5119_v53, 2  ;;  %v5071_v42 = vrot.slane %v5070_v45, 2  ;;  %v5132_v3 = vrot.slane %v5131_v46, 4 }
 0x4fd   : > { %v5059_v59 = vrot.slane %v5058_v47, 1  ;;  %v5066_v6 = vrot.slane %v5065_v1, 1  ;;  %v5077_v24 = vmax.f32 %v5075_v36, %v5076_v7  ;;  %v5126_v37 = vmax.f32 %v5124_v33, %v5125_v34 }
 0x4fe   : > { %v5114_v48 = vmax.f32 %v5112_v27, %v5113_v32  ;;  %v5121_v18 = vmax.f32 %v5119_v53, %v5120_v51  ;;  %v5072_v15 = vmax.f32 %v5070_v45, %v5071_v42  ;;  %v5133_v19 = vmax.f32 %v5131_v46, %v5132_v3 }
 0x4ff   : > { %v5060_v58 = vmax.f32 %v5058_v47, %v5059_v59  ;;  %v5067_v17 = vmax.f32 %v5065_v1, %v5066_v6  ;;  %v5078_v10 = vrot.slane %v5077_v24, 2  ;;  %v5127_v63 = vrot.slane %v5126_v37, 2 }
 0x500   : > { %v5115_v57 = vrot.slane %v5114_v48, 1  ;;  %v5122_v40 = vrot.slane %v5121_v18, 1  ;;  %v5073_v16 = vrot.slane %v5072_v15, 1  ;;  %v5134_v26 = vrot.slane %v5133_v19, 2 }
 0x501   : > { %v5079_v21 = vmax.f32 %v5077_v24, %v5078_v10  ;;  %v5128_v43 = vmax.f32 %v5126_v37, %v5127_v63  ;;  %v8184_v25 = vmov 0.0|0.0  }
 0x502   : > { %v5116_v29 = vmax.f32 %v5114_v48, %v5115_v57  ;;  %v5123_v4 = vmax.f32 %v5121_v18, %v5122_v40  ;;  %v5135_v60 = vmax.f32 %v5133_v19, %v5134_v26  ;;  %5168 = vst [vmem:[%s10164_s13 + $0x20] sm:$0xff] %v8184_v25  ;;  %v5074_v41 = vmax.f32 %v5072_v15, %v5073_v16 }
 0x503   : > { %v5080_v35 = vrot.slane %v5079_v21, 1  ;;  %v5129_v5 = vrot.slane %v5128_v43, 1  ;;  %5169 = vst [vmem:[%s10164_s13 + $0x28] sm:$0xff] %v8184_v25 }
 0x504   : > { %v5143_v56 = vsel %vm5138_vm1, %v5060_v58, %v5116_v29  ;;  %v5144_v12 = vsel %vm5138_vm1, %v5067_v17, %v5123_v4  ;;  %v5136_v2 = vrot.slane %v5135_v60, 1  ;;  %5170 = vst [vmem:[%s10164_s13 + $0x30] sm:$0xff] %v8184_v25 }
 0x505   : > { %v5152_v39 = vsel %vm5147_vm2, %v5143_v56, 0.0  ;;  %v5153_v9 = vsel %vm5147_vm2, %v5144_v12, 0.0  ;;  %v5081_v0 = vmax.f32 %v5079_v21, %v5080_v35  ;;  %v5130_v30 = vmax.f32 %v5128_v43, %v5129_v5  ;;  %5171 = vst [vmem:[%s10164_s13 + $0x38] sm:$0xff] %v8184_v25 }
 0x506   : > { %v5158_v23 = vpack.c.bf16 %v5153_v9, %v5152_v39  ;;  %v5137_v61 = vmax.f32 %v5135_v60, %v5136_v2  ;;  %5172 = vst [vmem:[%s10164_s13 + $0x40] sm:$0xff] %v8184_v25 }
 0x507   : > { %v5145_v22 = vsel %vm5138_vm1, %v5074_v41, %v5130_v30  ;;  %5173 = vst [vmem:[%s10164_s13 + $0x48] sm:$0xff] %v8184_v25 }
 0x508   : > { %5166 = vst [vmem:[%s10164_s13 + $0x10] sm:$0xff] %v5158_v23  ;;  %v5146_v55 = vsel %vm5138_vm1, %v5081_v0, %v5137_v61  ;;  %v5154_v52 = vsel %vm5147_vm2, %v5145_v22, 0.0 }
 0x509   : > { %v5155_v50 = vsel %vm5147_vm2, %v5146_v55, 0.0  ;;  %5174 = vst [vmem:[%s10164_s13 + $0x50] sm:$0xff] %v8184_v25 }
 0x50a   : > { %v5159_v54 = vpack.c.bf16 %v5155_v50, %v5154_v52  ;;  %5175 = vst [vmem:[%s10164_s13 + $0x58] sm:$0xff] %v8184_v25 }
 0x50b   : > { %5176 = vst [vmem:[%s10164_s13 + $0x60] sm:$0xff] %v8184_v25 }
 0x50c   : > { %5167 = vst [vmem:[%s10164_s13 + $0x18] sm:$0xff] %v5159_v54 }
 0x50d   : > { %5177 = vst [vmem:[%s10164_s13 + $0x68] sm:$0xff] %v8184_v25 }
 0x50e   : > { %5178 = vst [vmem:[%s10164_s13 + $0x70] sm:$0xff] %v8184_v25 }
 0x50f   : > { %5179 = vst [vmem:[%s10164_s13 + $0x78] sm:$0xff] %v8184_v25 }
 0x510 PF: > { %p7400_p10 = scmp.ne.s32.totalorder %s9849_s1, 1 }
 0x512   : > { %5182 = sbr.rel (%p7400_p10) target bundleno = 1308 (0x51c), region = 68 }
 0x517   : > { %v5187_v31 = vrot.slane %v9975_v8, 6  ;;  %v5188_v11 = vrot.slane %v9980_v14, 4  ;;  %v5189_v13 = vrot.slane %v9985_v62, 2  ;;  %vm5190_vm3 = vcmask 1041408  }
 0x518   : > { %vm5192_vm4 = vcmask 1045508   ;;  %vm5194_vm5 = vcmask 1043456  }
 0x519   : > { %v5191_v44 = vsel %vm5190_vm3, %v9970_v38, %v5187_v31  ;;  %v5193_v28 = vsel %vm5192_vm4, %v5188_v11, %v5189_v13 }
 0x51a   : > { %v5195_v49 = vsel %vm5194_vm5, %v5191_v44, %v5193_v28 }
 0x51b   : > { %5197 = vst [vmem:[%s10223_s10] sm:$0xff] %v5195_v49 }
 0x51c PF: > { %p61_p12 = scmp.ge.s32.totalorder %s8283_s19, 51   ;;  %s10259_s4 = smov %s8165_s5 }
 0x51d   : > { %s10260_s5 = smov %s8169_s17  ;;  %s10261_s17 = smov %s8293_s22 }
 0x51e   : > { %s10262_s18 = smov %s8283_s19  ;;  %63 = sbr.rel (!%p61_p12) target bundleno = 22 (0x16), region = 112 }
 0x523   :  { %5209 = vsyncpa [#allocation13], 1 }
 0x524   :  { %5211 = vsyncpa [#allocation13 + $0x1], 1 }
 0x525   :  { %5212 = vsyncpa [#allocation15], 1 }
 0x526   :  { %5214 = vsyncpa [#allocation15 + $0x1], 1 }

</bundles_post_ra>
